<compile_context>
chip_gen: v7x
topology: tpu7x:2x2x1
jax: 0.10.0
libtpu: 0.0.40
codegen_flags: <defaults>
</compile_context>

<pallas_src>
import functools

import jax
import jax.numpy as jnp
from jax.experimental import pallas as pl
from jax.experimental.pallas import tpu as pltpu


# ------------------------------------------------------------------ helpers

def _round_up(x, m):
    return (x + m - 1) // m * m


def _pad_axis(a, axis, target):
    pad = target - a.shape[axis]
    if pad == 0:
        return a
    widths = [(0, 0)] * a.ndim
    widths[axis] = (0, pad)
    return jnp.pad(a, widths)


def _pad_reorder_gates(w, hidden, hidden_p):
    """Last axis (4*hidden, gate-blocked i|f|g|o) -> (4*hidden_p) ordered i|f|o|g.

    Per-gate zero padding keeps every gate an exact 128-lane block; the i|f|o
    gates become one contiguous sigmoid slab and g one tanh slab.
    """
    order = (0, 1, 3, 2)  # i, f, o, g
    parts = []
    for k in order:
        blk = w[..., k * hidden:(k + 1) * hidden]
        parts.append(_pad_axis(blk, w.ndim - 1, hidden_p))
    return jnp.concatenate(parts, axis=-1)


# ------------------------------------------------------------------ kernel

def make_fused_lstm_kernel(n_layers):
    """Fused kernel: n LSTM layers (wavefront) + max-pool over T + FC + sigmoid.

    Ref order:
      x (T,TB,Ep bf16),
      layer 0: w_ih0 (Ep,4Hp bf16), w_hh0 (Hp,4Hp bf16), b0 (1,4Hp f32),
               h00 (TB,Hp f32), c00 (TB,Hp f32),
      layers l>=1: w_cat (2Hp,4Hp bf16), b (1,4Hp f32), h0 (TB,Hp), c0 (TB,Hp),
      w_fc (Hp,Op bf16), b_fc (1,Op f32),
      out (TB,Op f32),
      xproj_sc (T,TB,4Hp f32)  [scratch]
    """

    def kernel(*refs):
        idx = 0
        x_ref = refs[idx]; idx += 1
        w_ih0, w_hh0, b0, h00, c00 = refs[idx:idx + 5]; idx += 5
        upper = []
        for _ in range(n_layers - 1):
            upper.append(refs[idx:idx + 4])
            idx += 4
        w_fc_ref, b_fc_ref, out_ref, xproj_sc = refs[idx:idx + 4]

        T, TB, Ep = x_ref.shape
        Hp = h00.shape[1]
        f32 = jnp.float32
        bf16 = jnp.bfloat16

        # ---- layer-0 hoisted input projection: one big bf16 MXU matmul, off
        #      the serial critical path ------------------------------------
        xw = jnp.dot(x_ref[...].reshape(T * TB, Ep), w_ih0[...],
                     preferred_element_type=f32)            # (T*TB, 4Hp) f32
        xproj_sc[...] = xw.reshape(T, TB, 4 * Hp) + b0[...]

        def lstm_cell(gates, c_prev):
            # gate order i|f|o|g: one sigmoid slab + one tanh slab (fewer EUP
            # dispatches).  All elementwise math in f32.
            sg = jax.nn.sigmoid(gates[:, 0:3 * Hp])
            i_g = sg[:, 0 * Hp:1 * Hp]
            f_g = sg[:, 1 * Hp:2 * Hp]
            o_g = sg[:, 2 * Hp:3 * Hp]
            g_g = jnp.tanh(gates[:, 3 * Hp:4 * Hp])
            c_new = f_g * c_prev + i_g * g_g
            h_new = o_g * jnp.tanh(c_new)
            return h_new, c_new

        h = [None] * n_layers
        c = [None] * n_layers
        h[0], c[0] = h00[...], c00[...]
        for l in range(1, n_layers):
            _, _, h0_l, c0_l = upper[l - 1]
            h[l], c[l] = h0_l[...], c0_l[...]

        y_latest = [None] * n_layers
        run_max = jnp.full((TB, Hp), -jnp.inf, f32)

        # ---- wavefront over (layer, time): layer l runs step t = s - l, so
        #      up to n_layers independent matmul->EUP->VPU chains overlap. ----
        # Fully unrolled: T is static and tiny here.
        # TODO(synk): for realistic T use lax.fori_loop(..., unroll=4..8) on the
        #             steady-state region to bound code size and vreg live ranges.
        for s in range(T + n_layers - 1):
            for l in reversed(range(n_layers)):   # high layers first: read the
                t = s - l                         # producer's output *before* it
                if not (0 <= t < T):              # advances to t+1 this wave.
                    continue
                if l == 0:
                    # only h @ W_hh on the serial chain (input proj hoisted)
                    gates = xproj_sc[t] + jnp.dot(
                        h[0].astype(bf16), w_hh0[...],
                        preferred_element_type=f32)
                else:
                    w_cat, b_l, _, _ = upper[l - 1]
                    # fused input+recurrent matmul: K = 2*Hp fills the MXU
                    inp = jnp.concatenate(
                        [y_latest[l - 1].astype(bf16), h[l].astype(bf16)],
                        axis=1)                              # (TB, 2Hp) bf16
                    gates = jnp.dot(inp, w_cat[...],
                                    preferred_element_type=f32) + b_l[...]
                h[l], c[l] = lstm_cell(gates, c[l])
                y_latest[l] = h[l]
                if l == n_layers - 1:
                    run_max = jnp.maximum(run_max, h[l])     # fused max-pool

        # ---- head: pooled max -> FC -> sigmoid (lane-dense (TB,Op) store) ----
        logits = jnp.dot(run_max.astype(bf16), w_fc_ref[...],
                         preferred_element_type=f32) + b_fc_ref[...]
        out_ref[...] = jax.nn.sigmoid(logits)

    return kernel


# ------------------------------------------------------------------ wrapper

def fused_lstm_head(x_tbe, layer0, upper_layers, w_fc, b_fc, *, batch_tile):
    """x_tbe: (T, Bp, Ep) bf16 (padded). layer0: (w_ih0, w_hh0, b0, h00, c00).
    upper_layers: [(w_cat, b, h0, c0), ...] for layers >= 1."""
    T, Bp, Ep = x_tbe.shape
    Hp = layer0[3].shape[1]
    Op = w_fc.shape[1]
    n_layers = 1 + len(upper_layers)
    TB = batch_tile
    assert Bp % TB == 0
    nb = Bp // TB

    def full_spec(shape):
        return pl.BlockSpec(shape, lambda b: tuple(0 for _ in shape))

    def bsliced(shape):
        return pl.BlockSpec(shape, lambda b: (b, 0))

    flat_inputs = [x_tbe]
    in_specs = [pl.BlockSpec((T, TB, Ep), lambda b: (0, b, 0))]

    w_ih0, w_hh0, b0, h00, c00 = layer0
    flat_inputs += [w_ih0, w_hh0, b0, h00, c00]
    in_specs += [full_spec(w_ih0.shape), full_spec(w_hh0.shape),
                 full_spec(b0.shape), bsliced((TB, Hp)), bsliced((TB, Hp))]

    for (w_cat, b_l, h0_l, c0_l) in upper_layers:
        flat_inputs += [w_cat, b_l, h0_l, c0_l]
        in_specs += [full_spec(w_cat.shape), full_spec(b_l.shape),
                     bsliced((TB, Hp)), bsliced((TB, Hp))]

    flat_inputs += [w_fc, b_fc]
    in_specs += [full_spec(w_fc.shape), full_spec(b_fc.shape)]

    # Rough cost estimate (whole call) for XLA scheduling around the fused op.
    flops = 2 * Bp * T * (Ep * 4 * Hp + Hp * 4 * Hp
                          + (n_layers - 1) * 2 * Hp * 4 * Hp) + 2 * Bp * Hp * Op
    transcendentals = Bp * T * n_layers * 5 * Hp + Bp * Op
    bytes_accessed = (sum(int(v.size) * v.dtype.itemsize for v in flat_inputs)
                      + Bp * Op * 4)

    # Scoped-VMEM budget: weights + double-buffered batch-sliced blocks + scratch.
    weight_bytes = sum(int(v.size) * v.dtype.itemsize
                       for v in flat_inputs[1:] if v.shape[0] != Bp)
    sliced_bytes = 2 * (T * TB * Ep * 2 + 2 * n_layers * TB * Hp * 4
                        + TB * Op * 4)
    scratch_bytes = T * TB * 4 * Hp * 4
    vmem_limit = int(min(64 * 1024 * 1024,
                         max(16 * 1024 * 1024,
                             2 * (weight_bytes + sliced_bytes + scratch_bytes))))

    return pl.pallas_call(
        make_fused_lstm_kernel(n_layers),
        out_shape=jax.ShapeDtypeStruct((Bp, Op), jnp.float32),
        grid_spec=pltpu.PrefetchScalarGridSpec(
            num_scalar_prefetch=0,
            grid=(nb,),
            in_specs=in_specs,
            out_specs=pl.BlockSpec((TB, Op), lambda b: (b, 0)),
            scratch_shapes=[
                pltpu.VMEM((T, TB, 4 * Hp), jnp.float32),  # layer-0 hoisted proj
            ],
        ),
        compiler_params=pltpu.CompilerParams(
            dimension_semantics=("parallel",),      # shards batch tiles over TCs
            vmem_limit_bytes=vmem_limit,
        ),
        cost_estimate=pl.CostEstimate(
            flops=int(flops),
            transcendentals=int(transcendentals),
            bytes_accessed=int(bytes_accessed)),
    )(*flat_inputs)


@functools.partial(jax.jit, static_argnames=("n_layers",))
def lstm_model_forward(tokens, params, h0, c0, *, n_layers):
    B, _ = tokens.shape
    E = params["embedding"].shape[1]
    H = h0.shape[-1]
    O = params["w_fc"].shape[1]

    # Batch tile: multiple of 8 (sublane), capped at 256 rows (MXU M-fill vs.
    # h/c/run_max vreg pressure).
    if B <= 256:
        Bp = _round_up(B, 8)
        TB = Bp
    else:
        Bp = _round_up(B, 256)
        TB = 256
    Ep = _round_up(E, 128)   # lane
    Hp = _round_up(H, 128)   # lane (each gate = one full 128-lane block)
    Op = _round_up(O, 128)   # lane-dense output store

    # Embedding lookup — pure gather glue, left to XLA.
    # TODO(synk): fuse the gather in-kernel (scalar-prefetch token ids + DMA
    #             gather) to remove this transpose+pad HBM round trip.
    embeds = jnp.take(params["embedding"], tokens, axis=0)        # (B, T, E)
    x = jnp.transpose(embeds, (1, 0, 2)).astype(jnp.float32)      # (T, B, E)
    x = jnp.pad(x, ((0, 0), (0, Bp - B), (0, Ep - E)))            # (T, Bp, Ep)
    x = x.astype(jnp.bfloat16)                                    # bf16 MXU operand

    # Layer 0: separate W_ih (hoisted proj) and W_hh (per-step recurrence).
    w_ih0 = _pad_reorder_gates(_pad_axis(params["w_ih_0"], 0, Ep),
                               H, Hp).astype(jnp.bfloat16)
    w_hh0 = _pad_reorder_gates(_pad_axis(params["w_hh_0"], 0, Hp),
                               H, Hp).astype(jnp.bfloat16)
    b0 = _pad_reorder_gates(params["b_0"], H, Hp)
    h00 = _pad_axis(_pad_axis(h0[0], 0, Bp), 1, Hp)
    c00 = _pad_axis(_pad_axis(c0[0], 0, Bp), 1, Hp)
    layer0 = (w_ih0, w_hh0, b0, h00, c00)

    # Layers >= 1: stacked [W_ih; W_hh] for the fused per-step K=2*Hp matmul.
    upper_layers = []
    for l in range(1, n_layers):
        w_ih = _pad_reorder_gates(_pad_axis(params[f"w_ih_{l}"], 0, Hp), H, Hp)
        w_hh = _pad_reorder_gates(_pad_axis(params[f"w_hh_{l}"], 0, Hp), H, Hp)
        w_cat = jnp.concatenate([w_ih, w_hh], axis=0).astype(jnp.bfloat16)
        b_l = _pad_reorder_gates(params[f"b_{l}"], H, Hp)
        h0_l = _pad_axis(_pad_axis(h0[l], 0, Bp), 1, Hp)
        c0_l = _pad_axis(_pad_axis(c0[l], 0, Bp), 1, Hp)
        upper_layers.append((w_cat, b_l, h0_l, c0_l))

    w_fc = _pad_axis(_pad_axis(params["w_fc"], 0, Hp), 1, Op).astype(jnp.bfloat16)
    b_fc = _pad_axis(params["b_fc"], 1, Op)                        # (1, Op) f32

    out_p = fused_lstm_head(x, layer0, upper_layers, w_fc, b_fc, batch_tile=TB)

    # TODO(synk): nn.Dropout(0.3) is identity at inference; no RNG mask applied.
    return out_p[:B, 0]                                            # (B,)


# ------------------------------------------------------------------ references

def lstm_model_reference(tokens, params, h0, c0, n_layers, mxu_dtype=None):
    """Pure-JAX reference. mxu_dtype=jnp.bfloat16 matches the kernel's MXU
    operand precision (f32 accumulation); None = exact f32."""

    def mm(a, b):
        if mxu_dtype is None:
            return jnp.dot(a, b, preferred_element_type=jnp.float32)
        return jnp.dot(a.astype(mxu_dtype), b.astype(mxu_dtype),
                       preferred_element_type=jnp.float32)

    embeds = jnp.take(params["embedding"], tokens, axis=0)
    x = jnp.transpose(embeds, (1, 0, 2)).astype(jnp.float32)       # (T, B, E)
    H = h0.shape[-1]
    for l in range(n_layers):
        w_ih, w_hh, b = params[f"w_ih_{l}"], params[f"w_hh_{l}"], params[f"b_{l}"]
        h, c = h0[l], c0[l]
        outs = []
        for t in range(x.shape[0]):
            gates = mm(x[t], w_ih) + mm(h, w_hh) + b
            i_g = jax.nn.sigmoid(gates[:, 0 * H:1 * H])
            f_g = jax.nn.sigmoid(gates[:, 1 * H:2 * H])
            g_g = jnp.tanh(gates[:, 2 * H:3 * H])
            o_g = jax.nn.sigmoid(gates[:, 3 * H:4 * H])
            c = f_g * c + i_g * g_g
            h = o_g * jnp.tanh(c)
            outs.append(h)
        x = jnp.stack(outs, axis=0)
    pooled = jnp.max(x, axis=0)
    logits = mm(pooled, params["w_fc"]) + params["b_fc"]
    return jax.nn.sigmoid(logits)[:, 0]


# ------------------------------------------------------------------ main

if __name__ == "__main__":
    # Small shapes consistent with the module.
    VOCAB, OUT_SIZE, EMB, HID, N_LAYERS, SEQ, BATCH = 50, 4, 32, 32, 2, 8, 2

    key = jax.random.PRNGKey(0)
    ks = jax.random.split(key, 16)

    params = {
        # nn.Embedding.init_weights(): uniform(-0.1, 0.1)
        "embedding": jax.random.uniform(ks[0], (VOCAB, EMB), jnp.float32, -0.1, 0.1),
        "w_fc": jax.random.uniform(ks[1], (HID, OUT_SIZE), jnp.float32,
                                   -1.0 / HID ** 0.5, 1.0 / HID ** 0.5),
        "b_fc": jax.random.uniform(ks[2], (1, OUT_SIZE), jnp.float32,
                                   -1.0 / HID ** 0.5, 1.0 / HID ** 0.5),
    }
    bound = 1.0 / HID ** 0.5  # torch.nn.LSTM default init scale
    for l in range(N_LAYERS):
        d_in = EMB if l == 0 else HID
        params[f"w_ih_{l}"] = jax.random.uniform(
            ks[3 + 3 * l], (d_in, 4 * HID), jnp.float32, -bound, bound)
        params[f"w_hh_{l}"] = jax.random.uniform(
            ks[4 + 3 * l], (HID, 4 * HID), jnp.float32, -bound, bound)
        # b_ih + b_hh combined
        params[f"b_{l}"] = jax.random.uniform(
            ks[5 + 3 * l], (1, 4 * HID), jnp.float32, -2 * bound, 2 * bound)

    # _init_hidden: torch.randn -> deterministic normal here.
    h0 = jax.random.normal(ks[10], (N_LAYERS, BATCH, HID), jnp.float32)
    c0 = jax.random.normal(ks[11], (N_LAYERS, BATCH, HID), jnp.float32)

    tokens = jax.random.randint(ks[12], (BATCH, SEQ), 0, VOCAB, jnp.int32)

    out = lstm_model_forward(tokens, params, h0, c0, n_layers=N_LAYERS)
    out = jax.block_until_ready(out)
    assert out.shape == (BATCH,)

    # Matched-precision reference (bf16 MXU operands, f32 accumulation).
    ref_bf16 = lstm_model_reference(tokens, params, h0, c0, N_LAYERS,
                                    mxu_dtype=jnp.bfloat16)
    assert jnp.allclose(out, ref_bf16, atol=2e-3, rtol=2e-3), (out, ref_bf16)

    # Loose sanity check against the exact-f32 reference.
    ref_f32 = lstm_model_reference(tokens, params, h0, c0, N_LAYERS)
    assert jnp.allclose(out, ref_f32, atol=3e-2, rtol=3e-2), (out, ref_f32)

    print("KERNEL_OK")
</pallas_src>

<mosaic_0001>
module attributes {stable_mosaic.version = 11 : i64} {
  func.func @kernel(%arg0: i32, %arg1: memref<8x8x128xbf16, #tpu.memory_space<vmem>>, %arg2: memref<128x512xbf16, #tpu.memory_space<vmem>>, %arg3: memref<128x512xbf16, #tpu.memory_space<vmem>>, %arg4: memref<1x512xf32, #tpu.memory_space<vmem>>, %arg5: memref<8x128xf32, #tpu.memory_space<vmem>>, %arg6: memref<8x128xf32, #tpu.memory_space<vmem>>, %arg7: memref<256x512xbf16, #tpu.memory_space<vmem>>, %arg8: memref<1x512xf32, #tpu.memory_space<vmem>>, %arg9: memref<8x128xf32, #tpu.memory_space<vmem>>, %arg10: memref<8x128xf32, #tpu.memory_space<vmem>>, %arg11: memref<128x128xbf16, #tpu.memory_space<vmem>>, %arg12: memref<1x128xf32, #tpu.memory_space<vmem>>, %arg13: memref<8x128xf32, #tpu.memory_space<vmem>>, %arg14: memref<8x8x512xf32, #tpu.memory_space<vmem>>) attributes {dimension_semantics = [#tpu.dimension_semantics<parallel>], iteration_bounds = array<i64: 1>, scalar_prefetch = 0 : i64, scratch_operands = 1 : i64, tpu.core_type = #tpu.core_type<tc>, window_params = [{transform_indices = @transform_0, window_bounds = array<i64: 8, 8, 128>}, {pipeline_mode = #tpu.pipeline_mode<synchronous>, transform_indices = @transform_1, window_bounds = array<i64: 128, 512>}, {pipeline_mode = #tpu.pipeline_mode<synchronous>, transform_indices = @transform_2, window_bounds = array<i64: 128, 512>}, {pipeline_mode = #tpu.pipeline_mode<synchronous>, transform_indices = @transform_3, window_bounds = array<i64: 1, 512>}, {transform_indices = @transform_4, window_bounds = array<i64: 8, 128>}, {transform_indices = @transform_5, window_bounds = array<i64: 8, 128>}, {pipeline_mode = #tpu.pipeline_mode<synchronous>, transform_indices = @transform_6, window_bounds = array<i64: 256, 512>}, {pipeline_mode = #tpu.pipeline_mode<synchronous>, transform_indices = @transform_7, window_bounds = array<i64: 1, 512>}, {transform_indices = @transform_8, window_bounds = array<i64: 8, 128>}, {transform_indices = @transform_9, window_bounds = array<i64: 8, 128>}, {pipeline_mode = #tpu.pipeline_mode<synchronous>, transform_indices = @transform_10, window_bounds = array<i64: 128, 128>}, {pipeline_mode = #tpu.pipeline_mode<synchronous>, transform_indices = @transform_11, window_bounds = array<i64: 1, 128>}, {transform_indices = @transform_12, window_bounds = array<i64: 8, 128>}]} {
    %c0 = arith.constant 0 : index
    %c0_0 = arith.constant 0 : index
    %c0_1 = arith.constant 0 : index
    %0 = vector.load %arg1[%c0, %c0_0, %c0_1] : memref<8x8x128xbf16, #tpu.memory_space<vmem>>, vector<8x8x128xbf16>
    %1 = vector.shape_cast %0 : vector<8x8x128xbf16> to vector<64x128xbf16>
    %c0_2 = arith.constant 0 : index
    %c0_3 = arith.constant 0 : index
    %2 = vector.load %arg2[%c0_2, %c0_3] : memref<128x512xbf16, #tpu.memory_space<vmem>>, vector<128x512xbf16>
    %cst = arith.constant dense<0.000000e+00> : vector<64x512xf32>
    %3 = tpu.matmul %1, %2, %cst {dimension_numbers = #tpu.dot_dimension_numbers<[1], [0], [0], [1], [0, 0, 1, 1], [], []>} : vector<64x128xbf16>, vector<128x512xbf16>, vector<64x512xf32> -> vector<64x512xf32>
    %4 = vector.shape_cast %3 : vector<64x512xf32> to vector<8x8x512xf32>
    %c0_4 = arith.constant 0 : index
    %c0_5 = arith.constant 0 : index
    %5 = vector.load %arg4[%c0_4, %c0_5] : memref<1x512xf32, #tpu.memory_space<vmem>>, vector<1x512xf32>
    %6 = vector.shape_cast %5 : vector<1x512xf32> to vector<1x1x512xf32>
    %7 = vector.broadcast %6 : vector<1x1x512xf32> to vector<8x8x512xf32>
    %8 = arith.addf %4, %7 : vector<8x8x512xf32>
    %c0_6 = arith.constant 0 : index
    %c0_7 = arith.constant 0 : index
    %c0_8 = arith.constant 0 : index
    %9 = vector.load %arg14[%c0_6, %c0_7, %c0_8] : memref<8x8x512xf32, #tpu.memory_space<vmem>>, vector<8x8x512xf32>
    tpu.vector_store %arg14[%c0_6, %c0_7, %c0_8], %8 {strides = array<i32>} : memref<8x8x512xf32, #tpu.memory_space<vmem>>, vector<8x8x512xf32>,
    %c0_9 = arith.constant 0 : index
    %c0_10 = arith.constant 0 : index
    %10 = vector.load %arg5[%c0_9, %c0_10] : memref<8x128xf32, #tpu.memory_space<vmem>>, vector<8x128xf32>
    %c0_11 = arith.constant 0 : index
    %c0_12 = arith.constant 0 : index
    %11 = vector.load %arg6[%c0_11, %c0_12] : memref<8x128xf32, #tpu.memory_space<vmem>>, vector<8x128xf32>
    %c0_13 = arith.constant 0 : index
    %c0_14 = arith.constant 0 : index
    %12 = vector.load %arg9[%c0_13, %c0_14] : memref<8x128xf32, #tpu.memory_space<vmem>>, vector<8x128xf32>
    %c0_15 = arith.constant 0 : index
    %c0_16 = arith.constant 0 : index
    %13 = vector.load %arg10[%c0_15, %c0_16] : memref<8x128xf32, #tpu.memory_space<vmem>>, vector<8x128xf32>
    %cst_17 = arith.constant 0xFF800000 : f32
    %14 = vector.broadcast %cst_17 : f32 to vector<8x128xf32>
    %c0_18 = arith.constant 0 : index
    %c0_19 = arith.constant 0 : index
    %c0_20 = arith.constant 0 : index
    %15 = vector.load %arg14[%c0_18, %c0_19, %c0_20] : memref<8x8x512xf32, #tpu.memory_space<vmem>>, vector<1x8x512xf32>
    %16 = vector.shape_cast %15 : vector<1x8x512xf32> to vector<8x512xf32>
    %17 = arith.truncf %10 : vector<8x128xf32> to vector<8x128xbf16>
    %c0_21 = arith.constant 0 : index
    %c0_22 = arith.constant 0 : index
    %18 = vector.load %arg3[%c0_21, %c0_22] : memref<128x512xbf16, #tpu.memory_space<vmem>>, vector<128x512xbf16>
    %cst_23 = arith.constant dense<0.000000e+00> : vector<8x512xf32>
    %19 = tpu.matmul %17, %18, %cst_23 {dimension_numbers = #tpu.dot_dimension_numbers<[1], [0], [0], [1], [0, 0, 1, 1], [], []>} : vector<8x128xbf16>, vector<128x512xbf16>, vector<8x512xf32> -> vector<8x512xf32>
    %20 = arith.addf %16, %19 : vector<8x512xf32>
    %21 = vector.extract_strided_slice %20 {offsets = [0, 0], sizes = [8, 384], strides = [1, 1]} : vector<8x512xf32> to vector<8x384xf32>
    %22 = arith.negf %21 : vector<8x384xf32>
    %23 = math.exp %22 : vector<8x384xf32>
    %cst_24 = arith.constant 1.000000e+00 : f32
    %24 = vector.broadcast %cst_24 : f32 to vector<8x384xf32>
    %25 = arith.addf %24, %23 : vector<8x384xf32>
    %26 = arith.divf %24, %25 : vector<8x384xf32>
    %27 = vector.extract_strided_slice %26 {offsets = [0, 0], sizes = [8, 128], strides = [1, 1]} : vector<8x384xf32> to vector<8x128xf32>
    %28 = vector.extract_strided_slice %26 {offsets = [0, 128], sizes = [8, 128], strides = [1, 1]} : vector<8x384xf32> to vector<8x128xf32>
    %29 = vector.extract_strided_slice %26 {offsets = [0, 256], sizes = [8, 128], strides = [1, 1]} : vector<8x384xf32> to vector<8x128xf32>
    %30 = vector.extract_strided_slice %20 {offsets = [0, 384], sizes = [8, 128], strides = [1, 1]} : vector<8x512xf32> to vector<8x128xf32>
    %31 = math.tanh %30 : vector<8x128xf32>
    %32 = arith.mulf %28, %11 : vector<8x128xf32>
    %33 = arith.mulf %27, %31 : vector<8x128xf32>
    %34 = arith.addf %32, %33 : vector<8x128xf32>
    %35 = math.tanh %34 : vector<8x128xf32>
    %36 = arith.mulf %29, %35 : vector<8x128xf32>
    %37 = arith.truncf %36 : vector<8x128xf32> to vector<8x128xbf16>
    %38 = arith.truncf %12 : vector<8x128xf32> to vector<8x128xbf16>
    %39 = tpu.concatenate %37, %38 in 1 : vector<8x128xbf16>, vector<8x128xbf16> -> vector<8x256xbf16>
    %c0_25 = arith.constant 0 : index
    %c0_26 = arith.constant 0 : index
    %40 = vector.load %arg7[%c0_25, %c0_26] : memref<256x512xbf16, #tpu.memory_space<vmem>>, vector<256x512xbf16>
    %cst_27 = arith.constant dense<0.000000e+00> : vector<8x512xf32>
    %41 = tpu.matmul %39, %40, %cst_27 {dimension_numbers = #tpu.dot_dimension_numbers<[1], [0], [0], [1], [0, 0, 1, 1], [], []>} : vector<8x256xbf16>, vector<256x512xbf16>, vector<8x512xf32> -> vector<8x512xf32>
    %c0_28 = arith.constant 0 : index
    %c0_29 = arith.constant 0 : index
    %42 = vector.load %arg8[%c0_28, %c0_29] : memref<1x512xf32, #tpu.memory_space<vmem>>, vector<1x512xf32>
    %43 = vector.broadcast %42 : vector<1x512xf32> to vector<8x512xf32>
    %44 = arith.addf %41, %43 : vector<8x512xf32>
    %45 = vector.extract_strided_slice %44 {offsets = [0, 0], sizes = [8, 384], strides = [1, 1]} : vector<8x512xf32> to vector<8x384xf32>
    %46 = arith.negf %45 : vector<8x384xf32>
    %47 = math.exp %46 : vector<8x384xf32>
    %cst_30 = arith.constant 1.000000e+00 : f32
    %48 = vector.broadcast %cst_30 : f32 to vector<8x384xf32>
    %49 = arith.addf %48, %47 : vector<8x384xf32>
    %50 = arith.divf %48, %49 : vector<8x384xf32>
    %51 = vector.extract_strided_slice %50 {offsets = [0, 0], sizes = [8, 128], strides = [1, 1]} : vector<8x384xf32> to vector<8x128xf32>
    %52 = vector.extract_strided_slice %50 {offsets = [0, 128], sizes = [8, 128], strides = [1, 1]} : vector<8x384xf32> to vector<8x128xf32>
    %53 = vector.extract_strided_slice %50 {offsets = [0, 256], sizes = [8, 128], strides = [1, 1]} : vector<8x384xf32> to vector<8x128xf32>
    %54 = vector.extract_strided_slice %44 {offsets = [0, 384], sizes = [8, 128], strides = [1, 1]} : vector<8x512xf32> to vector<8x128xf32>
    %55 = math.tanh %54 : vector<8x128xf32>
    %56 = arith.mulf %52, %13 : vector<8x128xf32>
    %57 = arith.mulf %51, %55 : vector<8x128xf32>
    %58 = arith.addf %56, %57 : vector<8x128xf32>
    %59 = math.tanh %58 : vector<8x128xf32>
    %60 = arith.mulf %53, %59 : vector<8x128xf32>
    %61 = arith.maximumf %14, %60 : vector<8x128xf32>
    %c1 = arith.constant 1 : index
    %c0_31 = arith.constant 0 : index
    %c0_32 = arith.constant 0 : index
    %62 = vector.load %arg14[%c1, %c0_31, %c0_32] : memref<8x8x512xf32, #tpu.memory_space<vmem>>, vector<1x8x512xf32>
    %63 = vector.shape_cast %62 : vector<1x8x512xf32> to vector<8x512xf32>
    %64 = arith.truncf %36 : vector<8x128xf32> to vector<8x128xbf16>
    %c0_33 = arith.constant 0 : index
    %c0_34 = arith.constant 0 : index
    %65 = vector.load %arg3[%c0_33, %c0_34] : memref<128x512xbf16, #tpu.memory_space<vmem>>, vector<128x512xbf16>
    %cst_35 = arith.constant dense<0.000000e+00> : vector<8x512xf32>
    %66 = tpu.matmul %64, %65, %cst_35 {dimension_numbers = #tpu.dot_dimension_numbers<[1], [0], [0], [1], [0, 0, 1, 1], [], []>} : vector<8x128xbf16>, vector<128x512xbf16>, vector<8x512xf32> -> vector<8x512xf32>
    %67 = arith.addf %63, %66 : vector<8x512xf32>
    %68 = vector.extract_strided_slice %67 {offsets = [0, 0], sizes = [8, 384], strides = [1, 1]} : vector<8x512xf32> to vector<8x384xf32>
    %69 = arith.negf %68 : vector<8x384xf32>
    %70 = math.exp %69 : vector<8x384xf32>
    %cst_36 = arith.constant 1.000000e+00 : f32
    %71 = vector.broadcast %cst_36 : f32 to vector<8x384xf32>
    %72 = arith.addf %71, %70 : vector<8x384xf32>
    %73 = arith.divf %71, %72 : vector<8x384xf32>
    %74 = vector.extract_strided_slice %73 {offsets = [0, 0], sizes = [8, 128], strides = [1, 1]} : vector<8x384xf32> to vector<8x128xf32>
    %75 = vector.extract_strided_slice %73 {offsets = [0, 128], sizes = [8, 128], strides = [1, 1]} : vector<8x384xf32> to vector<8x128xf32>
    %76 = vector.extract_strided_slice %73 {offsets = [0, 256], sizes = [8, 128], strides = [1, 1]} : vector<8x384xf32> to vector<8x128xf32>
    %77 = vector.extract_strided_slice %67 {offsets = [0, 384], sizes = [8, 128], strides = [1, 1]} : vector<8x512xf32> to vector<8x128xf32>
    %78 = math.tanh %77 : vector<8x128xf32>
    %79 = arith.mulf %75, %34 : vector<8x128xf32>
    %80 = arith.mulf %74, %78 : vector<8x128xf32>
    %81 = arith.addf %79, %80 : vector<8x128xf32>
    %82 = math.tanh %81 : vector<8x128xf32>
    %83 = arith.mulf %76, %82 : vector<8x128xf32>
    %84 = arith.truncf %83 : vector<8x128xf32> to vector<8x128xbf16>
    %85 = arith.truncf %60 : vector<8x128xf32> to vector<8x128xbf16>
    %86 = tpu.concatenate %84, %85 in 1 : vector<8x128xbf16>, vector<8x128xbf16> -> vector<8x256xbf16>
    %c0_37 = arith.constant 0 : index
    %c0_38 = arith.constant 0 : index
    %87 = vector.load %arg7[%c0_37, %c0_38] : memref<256x512xbf16, #tpu.memory_space<vmem>>, vector<256x512xbf16>
    %cst_39 = arith.constant dense<0.000000e+00> : vector<8x512xf32>
    %88 = tpu.matmul %86, %87, %cst_39 {dimension_numbers = #tpu.dot_dimension_numbers<[1], [0], [0], [1], [0, 0, 1, 1], [], []>} : vector<8x256xbf16>, vector<256x512xbf16>, vector<8x512xf32> -> vector<8x512xf32>
    %c0_40 = arith.constant 0 : index
    %c0_41 = arith.constant 0 : index
    %89 = vector.load %arg8[%c0_40, %c0_41] : memref<1x512xf32, #tpu.memory_space<vmem>>, vector<1x512xf32>
    %90 = vector.broadcast %89 : vector<1x512xf32> to vector<8x512xf32>
    %91 = arith.addf %88, %90 : vector<8x512xf32>
    %92 = vector.extract_strided_slice %91 {offsets = [0, 0], sizes = [8, 384], strides = [1, 1]} : vector<8x512xf32> to vector<8x384xf32>
    %93 = arith.negf %92 : vector<8x384xf32>
    %94 = math.exp %93 : vector<8x384xf32>
    %cst_42 = arith.constant 1.000000e+00 : f32
    %95 = vector.broadcast %cst_42 : f32 to vector<8x384xf32>
    %96 = arith.addf %95, %94 : vector<8x384xf32>
    %97 = arith.divf %95, %96 : vector<8x384xf32>
    %98 = vector.extract_strided_slice %97 {offsets = [0, 0], sizes = [8, 128], strides = [1, 1]} : vector<8x384xf32> to vector<8x128xf32>
    %99 = vector.extract_strided_slice %97 {offsets = [0, 128], sizes = [8, 128], strides = [1, 1]} : vector<8x384xf32> to vector<8x128xf32>
    %100 = vector.extract_strided_slice %97 {offsets = [0, 256], sizes = [8, 128], strides = [1, 1]} : vector<8x384xf32> to vector<8x128xf32>
    %101 = vector.extract_strided_slice %91 {offsets = [0, 384], sizes = [8, 128], strides = [1, 1]} : vector<8x512xf32> to vector<8x128xf32>
    %102 = math.tanh %101 : vector<8x128xf32>
    %103 = arith.mulf %99, %58 : vector<8x128xf32>
    %104 = arith.mulf %98, %102 : vector<8x128xf32>
    %105 = arith.addf %103, %104 : vector<8x128xf32>
    %106 = math.tanh %105 : vector<8x128xf32>
    %107 = arith.mulf %100, %106 : vector<8x128xf32>
    %108 = arith.maximumf %61, %107 : vector<8x128xf32>
    %c2 = arith.constant 2 : index
    %c0_43 = arith.constant 0 : index
    %c0_44 = arith.constant 0 : index
    %109 = vector.load %arg14[%c2, %c0_43, %c0_44] : memref<8x8x512xf32, #tpu.memory_space<vmem>>, vector<1x8x512xf32>
    %110 = vector.shape_cast %109 : vector<1x8x512xf32> to vector<8x512xf32>
    %111 = arith.truncf %83 : vector<8x128xf32> to vector<8x128xbf16>
    %c0_45 = arith.constant 0 : index
    %c0_46 = arith.constant 0 : index
    %112 = vector.load %arg3[%c0_45, %c0_46] : memref<128x512xbf16, #tpu.memory_space<vmem>>, vector<128x512xbf16>
    %cst_47 = arith.constant dense<0.000000e+00> : vector<8x512xf32>
    %113 = tpu.matmul %111, %112, %cst_47 {dimension_numbers = #tpu.dot_dimension_numbers<[1], [0], [0], [1], [0, 0, 1, 1], [], []>} : vector<8x128xbf16>, vector<128x512xbf16>, vector<8x512xf32> -> vector<8x512xf32>
    %114 = arith.addf %110, %113 : vector<8x512xf32>
    %115 = vector.extract_strided_slice %114 {offsets = [0, 0], sizes = [8, 384], strides = [1, 1]} : vector<8x512xf32> to vector<8x384xf32>
    %116 = arith.negf %115 : vector<8x384xf32>
    %117 = math.exp %116 : vector<8x384xf32>
    %cst_48 = arith.constant 1.000000e+00 : f32
    %118 = vector.broadcast %cst_48 : f32 to vector<8x384xf32>
    %119 = arith.addf %118, %117 : vector<8x384xf32>
    %120 = arith.divf %118, %119 : vector<8x384xf32>
    %121 = vector.extract_strided_slice %120 {offsets = [0, 0], sizes = [8, 128], strides = [1, 1]} : vector<8x384xf32> to vector<8x128xf32>
    %122 = vector.extract_strided_slice %120 {offsets = [0, 128], sizes = [8, 128], strides = [1, 1]} : vector<8x384xf32> to vector<8x128xf32>
    %123 = vector.extract_strided_slice %120 {offsets = [0, 256], sizes = [8, 128], strides = [1, 1]} : vector<8x384xf32> to vector<8x128xf32>
    %124 = vector.extract_strided_slice %114 {offsets = [0, 384], sizes = [8, 128], strides = [1, 1]} : vector<8x512xf32> to vector<8x128xf32>
    %125 = math.tanh %124 : vector<8x128xf32>
    %126 = arith.mulf %122, %81 : vector<8x128xf32>
    %127 = arith.mulf %121, %125 : vector<8x128xf32>
    %128 = arith.addf %126, %127 : vector<8x128xf32>
    %129 = math.tanh %128 : vector<8x128xf32>
    %130 = arith.mulf %123, %129 : vector<8x128xf32>
    %131 = arith.truncf %130 : vector<8x128xf32> to vector<8x128xbf16>
    %132 = arith.truncf %107 : vector<8x128xf32> to vector<8x128xbf16>
    %133 = tpu.concatenate %131, %132 in 1 : vector<8x128xbf16>, vector<8x128xbf16> -> vector<8x256xbf16>
    %c0_49 = arith.constant 0 : index
    %c0_50 = arith.constant 0 : index
    %134 = vector.load %arg7[%c0_49, %c0_50] : memref<256x512xbf16, #tpu.memory_space<vmem>>, vector<256x512xbf16>
    %cst_51 = arith.constant dense<0.000000e+00> : vector<8x512xf32>
    %135 = tpu.matmul %133, %134, %cst_51 {dimension_numbers = #tpu.dot_dimension_numbers<[1], [0], [0], [1], [0, 0, 1, 1], [], []>} : vector<8x256xbf16>, vector<256x512xbf16>, vector<8x512xf32> -> vector<8x512xf32>
    %c0_52 = arith.constant 0 : index
    %c0_53 = arith.constant 0 : index
    %136 = vector.load %arg8[%c0_52, %c0_53] : memref<1x512xf32, #tpu.memory_space<vmem>>, vector<1x512xf32>
    %137 = vector.broadcast %136 : vector<1x512xf32> to vector<8x512xf32>
    %138 = arith.addf %135, %137 : vector<8x512xf32>
    %139 = vector.extract_strided_slice %138 {offsets = [0, 0], sizes = [8, 384], strides = [1, 1]} : vector<8x512xf32> to vector<8x384xf32>
    %140 = arith.negf %139 : vector<8x384xf32>
    %141 = math.exp %140 : vector<8x384xf32>
    %cst_54 = arith.constant 1.000000e+00 : f32
    %142 = vector.broadcast %cst_54 : f32 to vector<8x384xf32>
    %143 = arith.addf %142, %141 : vector<8x384xf32>
    %144 = arith.divf %142, %143 : vector<8x384xf32>
    %145 = vector.extract_strided_slice %144 {offsets = [0, 0], sizes = [8, 128], strides = [1, 1]} : vector<8x384xf32> to vector<8x128xf32>
    %146 = vector.extract_strided_slice %144 {offsets = [0, 128], sizes = [8, 128], strides = [1, 1]} : vector<8x384xf32> to vector<8x128xf32>
    %147 = vector.extract_strided_slice %144 {offsets = [0, 256], sizes = [8, 128], strides = [1, 1]} : vector<8x384xf32> to vector<8x128xf32>
    %148 = vector.extract_strided_slice %138 {offsets = [0, 384], sizes = [8, 128], strides = [1, 1]} : vector<8x512xf32> to vector<8x128xf32>
    %149 = math.tanh %148 : vector<8x128xf32>
    %150 = arith.mulf %146, %105 : vector<8x128xf32>
    %151 = arith.mulf %145, %149 : vector<8x128xf32>
    %152 = arith.addf %150, %151 : vector<8x128xf32>
    %153 = math.tanh %152 : vector<8x128xf32>
    %154 = arith.mulf %147, %153 : vector<8x128xf32>
    %155 = arith.maximumf %108, %154 : vector<8x128xf32>
    %c3 = arith.constant 3 : index
    %c0_55 = arith.constant 0 : index
    %c0_56 = arith.constant 0 : index
    %156 = vector.load %arg14[%c3, %c0_55, %c0_56] : memref<8x8x512xf32, #tpu.memory_space<vmem>>, vector<1x8x512xf32>
    %157 = vector.shape_cast %156 : vector<1x8x512xf32> to vector<8x512xf32>
    %158 = arith.truncf %130 : vector<8x128xf32> to vector<8x128xbf16>
    %c0_57 = arith.constant 0 : index
    %c0_58 = arith.constant 0 : index
    %159 = vector.load %arg3[%c0_57, %c0_58] : memref<128x512xbf16, #tpu.memory_space<vmem>>, vector<128x512xbf16>
    %cst_59 = arith.constant dense<0.000000e+00> : vector<8x512xf32>
    %160 = tpu.matmul %158, %159, %cst_59 {dimension_numbers = #tpu.dot_dimension_numbers<[1], [0], [0], [1], [0, 0, 1, 1], [], []>} : vector<8x128xbf16>, vector<128x512xbf16>, vector<8x512xf32> -> vector<8x512xf32>
    %161 = arith.addf %157, %160 : vector<8x512xf32>
    %162 = vector.extract_strided_slice %161 {offsets = [0, 0], sizes = [8, 384], strides = [1, 1]} : vector<8x512xf32> to vector<8x384xf32>
    %163 = arith.negf %162 : vector<8x384xf32>
    %164 = math.exp %163 : vector<8x384xf32>
    %cst_60 = arith.constant 1.000000e+00 : f32
    %165 = vector.broadcast %cst_60 : f32 to vector<8x384xf32>
    %166 = arith.addf %165, %164 : vector<8x384xf32>
    %167 = arith.divf %165, %166 : vector<8x384xf32>
    %168 = vector.extract_strided_slice %167 {offsets = [0, 0], sizes = [8, 128], strides = [1, 1]} : vector<8x384xf32> to vector<8x128xf32>
    %169 = vector.extract_strided_slice %167 {offsets = [0, 128], sizes = [8, 128], strides = [1, 1]} : vector<8x384xf32> to vector<8x128xf32>
    %170 = vector.extract_strided_slice %167 {offsets = [0, 256], sizes = [8, 128], strides = [1, 1]} : vector<8x384xf32> to vector<8x128xf32>
    %171 = vector.extract_strided_slice %161 {offsets = [0, 384], sizes = [8, 128], strides = [1, 1]} : vector<8x512xf32> to vector<8x128xf32>
    %172 = math.tanh %171 : vector<8x128xf32>
    %173 = arith.mulf %169, %128 : vector<8x128xf32>
    %174 = arith.mulf %168, %172 : vector<8x128xf32>
    %175 = arith.addf %173, %174 : vector<8x128xf32>
    %176 = math.tanh %175 : vector<8x128xf32>
    %177 = arith.mulf %170, %176 : vector<8x128xf32>
    %178 = arith.truncf %177 : vector<8x128xf32> to vector<8x128xbf16>
    %179 = arith.truncf %154 : vector<8x128xf32> to vector<8x128xbf16>
    %180 = tpu.concatenate %178, %179 in 1 : vector<8x128xbf16>, vector<8x128xbf16> -> vector<8x256xbf16>
    %c0_61 = arith.constant 0 : index
    %c0_62 = arith.constant 0 : index
    %181 = vector.load %arg7[%c0_61, %c0_62] : memref<256x512xbf16, #tpu.memory_space<vmem>>, vector<256x512xbf16>
    %cst_63 = arith.constant dense<0.000000e+00> : vector<8x512xf32>
    %182 = tpu.matmul %180, %181, %cst_63 {dimension_numbers = #tpu.dot_dimension_numbers<[1], [0], [0], [1], [0, 0, 1, 1], [], []>} : vector<8x256xbf16>, vector<256x512xbf16>, vector<8x512xf32> -> vector<8x512xf32>
    %c0_64 = arith.constant 0 : index
    %c0_65 = arith.constant 0 : index
    %183 = vector.load %arg8[%c0_64, %c0_65] : memref<1x512xf32, #tpu.memory_space<vmem>>, vector<1x512xf32>
    %184 = vector.broadcast %183 : vector<1x512xf32> to vector<8x512xf32>
    %185 = arith.addf %182, %184 : vector<8x512xf32>
    %186 = vector.extract_strided_slice %185 {offsets = [0, 0], sizes = [8, 384], strides = [1, 1]} : vector<8x512xf32> to vector<8x384xf32>
    %187 = arith.negf %186 : vector<8x384xf32>
    %188 = math.exp %187 : vector<8x384xf32>
    %cst_66 = arith.constant 1.000000e+00 : f32
    %189 = vector.broadcast %cst_66 : f32 to vector<8x384xf32>
    %190 = arith.addf %189, %188 : vector<8x384xf32>
    %191 = arith.divf %189, %190 : vector<8x384xf32>
    %192 = vector.extract_strided_slice %191 {offsets = [0, 0], sizes = [8, 128], strides = [1, 1]} : vector<8x384xf32> to vector<8x128xf32>
    %193 = vector.extract_strided_slice %191 {offsets = [0, 128], sizes = [8, 128], strides = [1, 1]} : vector<8x384xf32> to vector<8x128xf32>
    %194 = vector.extract_strided_slice %191 {offsets = [0, 256], sizes = [8, 128], strides = [1, 1]} : vector<8x384xf32> to vector<8x128xf32>
    %195 = vector.extract_strided_slice %185 {offsets = [0, 384], sizes = [8, 128], strides = [1, 1]} : vector<8x512xf32> to vector<8x128xf32>
    %196 = math.tanh %195 : vector<8x128xf32>
    %197 = arith.mulf %193, %152 : vector<8x128xf32>
    %198 = arith.mulf %192, %196 : vector<8x128xf32>
    %199 = arith.addf %197, %198 : vector<8x128xf32>
    %200 = math.tanh %199 : vector<8x128xf32>
    %201 = arith.mulf %194, %200 : vector<8x128xf32>
    %202 = arith.maximumf %155, %201 : vector<8x128xf32>
    %c4 = arith.constant 4 : index
    %c0_67 = arith.constant 0 : index
    %c0_68 = arith.constant 0 : index
    %203 = vector.load %arg14[%c4, %c0_67, %c0_68] : memref<8x8x512xf32, #tpu.memory_space<vmem>>, vector<1x8x512xf32>
    %204 = vector.shape_cast %203 : vector<1x8x512xf32> to vector<8x512xf32>
    %205 = arith.truncf %177 : vector<8x128xf32> to vector<8x128xbf16>
    %c0_69 = arith.constant 0 : index
    %c0_70 = arith.constant 0 : index
    %206 = vector.load %arg3[%c0_69, %c0_70] : memref<128x512xbf16, #tpu.memory_space<vmem>>, vector<128x512xbf16>
    %cst_71 = arith.constant dense<0.000000e+00> : vector<8x512xf32>
    %207 = tpu.matmul %205, %206, %cst_71 {dimension_numbers = #tpu.dot_dimension_numbers<[1], [0], [0], [1], [0, 0, 1, 1], [], []>} : vector<8x128xbf16>, vector<128x512xbf16>, vector<8x512xf32> -> vector<8x512xf32>
    %208 = arith.addf %204, %207 : vector<8x512xf32>
    %209 = vector.extract_strided_slice %208 {offsets = [0, 0], sizes = [8, 384], strides = [1, 1]} : vector<8x512xf32> to vector<8x384xf32>
    %210 = arith.negf %209 : vector<8x384xf32>
    %211 = math.exp %210 : vector<8x384xf32>
    %cst_72 = arith.constant 1.000000e+00 : f32
    %212 = vector.broadcast %cst_72 : f32 to vector<8x384xf32>
    %213 = arith.addf %212, %211 : vector<8x384xf32>
    %214 = arith.divf %212, %213 : vector<8x384xf32>
    %215 = vector.extract_strided_slice %214 {offsets = [0, 0], sizes = [8, 128], strides = [1, 1]} : vector<8x384xf32> to vector<8x128xf32>
    %216 = vector.extract_strided_slice %214 {offsets = [0, 128], sizes = [8, 128], strides = [1, 1]} : vector<8x384xf32> to vector<8x128xf32>
    %217 = vector.extract_strided_slice %214 {offsets = [0, 256], sizes = [8, 128], strides = [1, 1]} : vector<8x384xf32> to vector<8x128xf32>
    %218 = vector.extract_strided_slice %208 {offsets = [0, 384], sizes = [8, 128], strides = [1, 1]} : vector<8x512xf32> to vector<8x128xf32>
    %219 = math.tanh %218 : vector<8x128xf32>
    %220 = arith.mulf %216, %175 : vector<8x128xf32>
    %221 = arith.mulf %215, %219 : vector<8x128xf32>
    %222 = arith.addf %220, %221 : vector<8x128xf32>
    %223 = math.tanh %222 : vector<8x128xf32>
    %224 = arith.mulf %217, %223 : vector<8x128xf32>
    %225 = arith.truncf %224 : vector<8x128xf32> to vector<8x128xbf16>
    %226 = arith.truncf %201 : vector<8x128xf32> to vector<8x128xbf16>
    %227 = tpu.concatenate %225, %226 in 1 : vector<8x128xbf16>, vector<8x128xbf16> -> vector<8x256xbf16>
    %c0_73 = arith.constant 0 : index
    %c0_74 = arith.constant 0 : index
    %228 = vector.load %arg7[%c0_73, %c0_74] : memref<256x512xbf16, #tpu.memory_space<vmem>>, vector<256x512xbf16>
    %cst_75 = arith.constant dense<0.000000e+00> : vector<8x512xf32>
    %229 = tpu.matmul %227, %228, %cst_75 {dimension_numbers = #tpu.dot_dimension_numbers<[1], [0], [0], [1], [0, 0, 1, 1], [], []>} : vector<8x256xbf16>, vector<256x512xbf16>, vector<8x512xf32> -> vector<8x512xf32>
    %c0_76 = arith.constant 0 : index
    %c0_77 = arith.constant 0 : index
    %230 = vector.load %arg8[%c0_76, %c0_77] : memref<1x512xf32, #tpu.memory_space<vmem>>, vector<1x512xf32>
    %231 = vector.broadcast %230 : vector<1x512xf32> to vector<8x512xf32>
    %232 = arith.addf %229, %231 : vector<8x512xf32>
    %233 = vector.extract_strided_slice %232 {offsets = [0, 0], sizes = [8, 384], strides = [1, 1]} : vector<8x512xf32> to vector<8x384xf32>
    %234 = arith.negf %233 : vector<8x384xf32>
    %235 = math.exp %234 : vector<8x384xf32>
    %cst_78 = arith.constant 1.000000e+00 : f32
    %236 = vector.broadcast %cst_78 : f32 to vector<8x384xf32>
    %237 = arith.addf %236, %235 : vector<8x384xf32>
    %238 = arith.divf %236, %237 : vector<8x384xf32>
    %239 = vector.extract_strided_slice %238 {offsets = [0, 0], sizes = [8, 128], strides = [1, 1]} : vector<8x384xf32> to vector<8x128xf32>
    %240 = vector.extract_strided_slice %238 {offsets = [0, 128], sizes = [8, 128], strides = [1, 1]} : vector<8x384xf32> to vector<8x128xf32>
    %241 = vector.extract_strided_slice %238 {offsets = [0, 256], sizes = [8, 128], strides = [1, 1]} : vector<8x384xf32> to vector<8x128xf32>
    %242 = vector.extract_strided_slice %232 {offsets = [0, 384], sizes = [8, 128], strides = [1, 1]} : vector<8x512xf32> to vector<8x128xf32>
    %243 = math.tanh %242 : vector<8x128xf32>
    %244 = arith.mulf %240, %199 : vector<8x128xf32>
    %245 = arith.mulf %239, %243 : vector<8x128xf32>
    %246 = arith.addf %244, %245 : vector<8x128xf32>
    %247 = math.tanh %246 : vector<8x128xf32>
    %248 = arith.mulf %241, %247 : vector<8x128xf32>
    %249 = arith.maximumf %202, %248 : vector<8x128xf32>
    %c5 = arith.constant 5 : index
    %c0_79 = arith.constant 0 : index
    %c0_80 = arith.constant 0 : index
    %250 = vector.load %arg14[%c5, %c0_79, %c0_80] : memref<8x8x512xf32, #tpu.memory_space<vmem>>, vector<1x8x512xf32>
    %251 = vector.shape_cast %250 : vector<1x8x512xf32> to vector<8x512xf32>
    %252 = arith.truncf %224 : vector<8x128xf32> to vector<8x128xbf16>
    %c0_81 = arith.constant 0 : index
    %c0_82 = arith.constant 0 : index
    %253 = vector.load %arg3[%c0_81, %c0_82] : memref<128x512xbf16, #tpu.memory_space<vmem>>, vector<128x512xbf16>
    %cst_83 = arith.constant dense<0.000000e+00> : vector<8x512xf32>
    %254 = tpu.matmul %252, %253, %cst_83 {dimension_numbers = #tpu.dot_dimension_numbers<[1], [0], [0], [1], [0, 0, 1, 1], [], []>} : vector<8x128xbf16>, vector<128x512xbf16>, vector<8x512xf32> -> vector<8x512xf32>
    %255 = arith.addf %251, %254 : vector<8x512xf32>
    %256 = vector.extract_strided_slice %255 {offsets = [0, 0], sizes = [8, 384], strides = [1, 1]} : vector<8x512xf32> to vector<8x384xf32>
    %257 = arith.negf %256 : vector<8x384xf32>
    %258 = math.exp %257 : vector<8x384xf32>
    %cst_84 = arith.constant 1.000000e+00 : f32
    %259 = vector.broadcast %cst_84 : f32 to vector<8x384xf32>
    %260 = arith.addf %259, %258 : vector<8x384xf32>
    %261 = arith.divf %259, %260 : vector<8x384xf32>
    %262 = vector.extract_strided_slice %261 {offsets = [0, 0], sizes = [8, 128], strides = [1, 1]} : vector<8x384xf32> to vector<8x128xf32>
    %263 = vector.extract_strided_slice %261 {offsets = [0, 128], sizes = [8, 128], strides = [1, 1]} : vector<8x384xf32> to vector<8x128xf32>
    %264 = vector.extract_strided_slice %261 {offsets = [0, 256], sizes = [8, 128], strides = [1, 1]} : vector<8x384xf32> to vector<8x128xf32>
    %265 = vector.extract_strided_slice %255 {offsets = [0, 384], sizes = [8, 128], strides = [1, 1]} : vector<8x512xf32> to vector<8x128xf32>
    %266 = math.tanh %265 : vector<8x128xf32>
    %267 = arith.mulf %263, %222 : vector<8x128xf32>
    %268 = arith.mulf %262, %266 : vector<8x128xf32>
    %269 = arith.addf %267, %268 : vector<8x128xf32>
    %270 = math.tanh %269 : vector<8x128xf32>
    %271 = arith.mulf %264, %270 : vector<8x128xf32>
    %272 = arith.truncf %271 : vector<8x128xf32> to vector<8x128xbf16>
    %273 = arith.truncf %248 : vector<8x128xf32> to vector<8x128xbf16>
    %274 = tpu.concatenate %272, %273 in 1 : vector<8x128xbf16>, vector<8x128xbf16> -> vector<8x256xbf16>
    %c0_85 = arith.constant 0 : index
    %c0_86 = arith.constant 0 : index
    %275 = vector.load %arg7[%c0_85, %c0_86] : memref<256x512xbf16, #tpu.memory_space<vmem>>, vector<256x512xbf16>
    %cst_87 = arith.constant dense<0.000000e+00> : vector<8x512xf32>
    %276 = tpu.matmul %274, %275, %cst_87 {dimension_numbers = #tpu.dot_dimension_numbers<[1], [0], [0], [1], [0, 0, 1, 1], [], []>} : vector<8x256xbf16>, vector<256x512xbf16>, vector<8x512xf32> -> vector<8x512xf32>
    %c0_88 = arith.constant 0 : index
    %c0_89 = arith.constant 0 : index
    %277 = vector.load %arg8[%c0_88, %c0_89] : memref<1x512xf32, #tpu.memory_space<vmem>>, vector<1x512xf32>
    %278 = vector.broadcast %277 : vector<1x512xf32> to vector<8x512xf32>
    %279 = arith.addf %276, %278 : vector<8x512xf32>
    %280 = vector.extract_strided_slice %279 {offsets = [0, 0], sizes = [8, 384], strides = [1, 1]} : vector<8x512xf32> to vector<8x384xf32>
    %281 = arith.negf %280 : vector<8x384xf32>
    %282 = math.exp %281 : vector<8x384xf32>
    %cst_90 = arith.constant 1.000000e+00 : f32
    %283 = vector.broadcast %cst_90 : f32 to vector<8x384xf32>
    %284 = arith.addf %283, %282 : vector<8x384xf32>
    %285 = arith.divf %283, %284 : vector<8x384xf32>
    %286 = vector.extract_strided_slice %285 {offsets = [0, 0], sizes = [8, 128], strides = [1, 1]} : vector<8x384xf32> to vector<8x128xf32>
    %287 = vector.extract_strided_slice %285 {offsets = [0, 128], sizes = [8, 128], strides = [1, 1]} : vector<8x384xf32> to vector<8x128xf32>
    %288 = vector.extract_strided_slice %285 {offsets = [0, 256], sizes = [8, 128], strides = [1, 1]} : vector<8x384xf32> to vector<8x128xf32>
    %289 = vector.extract_strided_slice %279 {offsets = [0, 384], sizes = [8, 128], strides = [1, 1]} : vector<8x512xf32> to vector<8x128xf32>
    %290 = math.tanh %289 : vector<8x128xf32>
    %291 = arith.mulf %287, %246 : vector<8x128xf32>
    %292 = arith.mulf %286, %290 : vector<8x128xf32>
    %293 = arith.addf %291, %292 : vector<8x128xf32>
    %294 = math.tanh %293 : vector<8x128xf32>
    %295 = arith.mulf %288, %294 : vector<8x128xf32>
    %296 = arith.maximumf %249, %295 : vector<8x128xf32>
    %c6 = arith.constant 6 : index
    %c0_91 = arith.constant 0 : index
    %c0_92 = arith.constant 0 : index
    %297 = vector.load %arg14[%c6, %c0_91, %c0_92] : memref<8x8x512xf32, #tpu.memory_space<vmem>>, vector<1x8x512xf32>
    %298 = vector.shape_cast %297 : vector<1x8x512xf32> to vector<8x512xf32>
    %299 = arith.truncf %271 : vector<8x128xf32> to vector<8x128xbf16>
    %c0_93 = arith.constant 0 : index
    %c0_94 = arith.constant 0 : index
    %300 = vector.load %arg3[%c0_93, %c0_94] : memref<128x512xbf16, #tpu.memory_space<vmem>>, vector<128x512xbf16>
    %cst_95 = arith.constant dense<0.000000e+00> : vector<8x512xf32>
    %301 = tpu.matmul %299, %300, %cst_95 {dimension_numbers = #tpu.dot_dimension_numbers<[1], [0], [0], [1], [0, 0, 1, 1], [], []>} : vector<8x128xbf16>, vector<128x512xbf16>, vector<8x512xf32> -> vector<8x512xf32>
    %302 = arith.addf %298, %301 : vector<8x512xf32>
    %303 = vector.extract_strided_slice %302 {offsets = [0, 0], sizes = [8, 384], strides = [1, 1]} : vector<8x512xf32> to vector<8x384xf32>
    %304 = arith.negf %303 : vector<8x384xf32>
    %305 = math.exp %304 : vector<8x384xf32>
    %cst_96 = arith.constant 1.000000e+00 : f32
    %306 = vector.broadcast %cst_96 : f32 to vector<8x384xf32>
    %307 = arith.addf %306, %305 : vector<8x384xf32>
    %308 = arith.divf %306, %307 : vector<8x384xf32>
    %309 = vector.extract_strided_slice %308 {offsets = [0, 0], sizes = [8, 128], strides = [1, 1]} : vector<8x384xf32> to vector<8x128xf32>
    %310 = vector.extract_strided_slice %308 {offsets = [0, 128], sizes = [8, 128], strides = [1, 1]} : vector<8x384xf32> to vector<8x128xf32>
    %311 = vector.extract_strided_slice %308 {offsets = [0, 256], sizes = [8, 128], strides = [1, 1]} : vector<8x384xf32> to vector<8x128xf32>
    %312 = vector.extract_strided_slice %302 {offsets = [0, 384], sizes = [8, 128], strides = [1, 1]} : vector<8x512xf32> to vector<8x128xf32>
    %313 = math.tanh %312 : vector<8x128xf32>
    %314 = arith.mulf %310, %269 : vector<8x128xf32>
    %315 = arith.mulf %309, %313 : vector<8x128xf32>
    %316 = arith.addf %314, %315 : vector<8x128xf32>
    %317 = math.tanh %316 : vector<8x128xf32>
    %318 = arith.mulf %311, %317 : vector<8x128xf32>
    %319 = arith.truncf %318 : vector<8x128xf32> to vector<8x128xbf16>
    %320 = arith.truncf %295 : vector<8x128xf32> to vector<8x128xbf16>
    %321 = tpu.concatenate %319, %320 in 1 : vector<8x128xbf16>, vector<8x128xbf16> -> vector<8x256xbf16>
    %c0_97 = arith.constant 0 : index
    %c0_98 = arith.constant 0 : index
    %322 = vector.load %arg7[%c0_97, %c0_98] : memref<256x512xbf16, #tpu.memory_space<vmem>>, vector<256x512xbf16>
    %cst_99 = arith.constant dense<0.000000e+00> : vector<8x512xf32>
    %323 = tpu.matmul %321, %322, %cst_99 {dimension_numbers = #tpu.dot_dimension_numbers<[1], [0], [0], [1], [0, 0, 1, 1], [], []>} : vector<8x256xbf16>, vector<256x512xbf16>, vector<8x512xf32> -> vector<8x512xf32>
    %c0_100 = arith.constant 0 : index
    %c0_101 = arith.constant 0 : index
    %324 = vector.load %arg8[%c0_100, %c0_101] : memref<1x512xf32, #tpu.memory_space<vmem>>, vector<1x512xf32>
    %325 = vector.broadcast %324 : vector<1x512xf32> to vector<8x512xf32>
    %326 = arith.addf %323, %325 : vector<8x512xf32>
    %327 = vector.extract_strided_slice %326 {offsets = [0, 0], sizes = [8, 384], strides = [1, 1]} : vector<8x512xf32> to vector<8x384xf32>
    %328 = arith.negf %327 : vector<8x384xf32>
    %329 = math.exp %328 : vector<8x384xf32>
    %cst_102 = arith.constant 1.000000e+00 : f32
    %330 = vector.broadcast %cst_102 : f32 to vector<8x384xf32>
    %331 = arith.addf %330, %329 : vector<8x384xf32>
    %332 = arith.divf %330, %331 : vector<8x384xf32>
    %333 = vector.extract_strided_slice %332 {offsets = [0, 0], sizes = [8, 128], strides = [1, 1]} : vector<8x384xf32> to vector<8x128xf32>
    %334 = vector.extract_strided_slice %332 {offsets = [0, 128], sizes = [8, 128], strides = [1, 1]} : vector<8x384xf32> to vector<8x128xf32>
    %335 = vector.extract_strided_slice %332 {offsets = [0, 256], sizes = [8, 128], strides = [1, 1]} : vector<8x384xf32> to vector<8x128xf32>
    %336 = vector.extract_strided_slice %326 {offsets = [0, 384], sizes = [8, 128], strides = [1, 1]} : vector<8x512xf32> to vector<8x128xf32>
    %337 = math.tanh %336 : vector<8x128xf32>
    %338 = arith.mulf %334, %293 : vector<8x128xf32>
    %339 = arith.mulf %333, %337 : vector<8x128xf32>
    %340 = arith.addf %338, %339 : vector<8x128xf32>
    %341 = math.tanh %340 : vector<8x128xf32>
    %342 = arith.mulf %335, %341 : vector<8x128xf32>
    %343 = arith.maximumf %296, %342 : vector<8x128xf32>
    %c7 = arith.constant 7 : index
    %c0_103 = arith.constant 0 : index
    %c0_104 = arith.constant 0 : index
    %344 = vector.load %arg14[%c7, %c0_103, %c0_104] : memref<8x8x512xf32, #tpu.memory_space<vmem>>, vector<1x8x512xf32>
    %345 = vector.shape_cast %344 : vector<1x8x512xf32> to vector<8x512xf32>
    %346 = arith.truncf %318 : vector<8x128xf32> to vector<8x128xbf16>
    %c0_105 = arith.constant 0 : index
    %c0_106 = arith.constant 0 : index
    %347 = vector.load %arg3[%c0_105, %c0_106] : memref<128x512xbf16, #tpu.memory_space<vmem>>, vector<128x512xbf16>
    %cst_107 = arith.constant dense<0.000000e+00> : vector<8x512xf32>
    %348 = tpu.matmul %346, %347, %cst_107 {dimension_numbers = #tpu.dot_dimension_numbers<[1], [0], [0], [1], [0, 0, 1, 1], [], []>} : vector<8x128xbf16>, vector<128x512xbf16>, vector<8x512xf32> -> vector<8x512xf32>
    %349 = arith.addf %345, %348 : vector<8x512xf32>
    %350 = vector.extract_strided_slice %349 {offsets = [0, 0], sizes = [8, 384], strides = [1, 1]} : vector<8x512xf32> to vector<8x384xf32>
    %351 = arith.negf %350 : vector<8x384xf32>
    %352 = math.exp %351 : vector<8x384xf32>
    %cst_108 = arith.constant 1.000000e+00 : f32
    %353 = vector.broadcast %cst_108 : f32 to vector<8x384xf32>
    %354 = arith.addf %353, %352 : vector<8x384xf32>
    %355 = arith.divf %353, %354 : vector<8x384xf32>
    %356 = vector.extract_strided_slice %355 {offsets = [0, 0], sizes = [8, 128], strides = [1, 1]} : vector<8x384xf32> to vector<8x128xf32>
    %357 = vector.extract_strided_slice %355 {offsets = [0, 128], sizes = [8, 128], strides = [1, 1]} : vector<8x384xf32> to vector<8x128xf32>
    %358 = vector.extract_strided_slice %355 {offsets = [0, 256], sizes = [8, 128], strides = [1, 1]} : vector<8x384xf32> to vector<8x128xf32>
    %359 = vector.extract_strided_slice %349 {offsets = [0, 384], sizes = [8, 128], strides = [1, 1]} : vector<8x512xf32> to vector<8x128xf32>
    %360 = math.tanh %359 : vector<8x128xf32>
    %361 = arith.mulf %357, %316 : vector<8x128xf32>
    %362 = arith.mulf %356, %360 : vector<8x128xf32>
    %363 = arith.addf %361, %362 : vector<8x128xf32>
    %364 = math.tanh %363 : vector<8x128xf32>
    %365 = arith.mulf %358, %364 : vector<8x128xf32>
    %366 = arith.truncf %365 : vector<8x128xf32> to vector<8x128xbf16>
    %367 = arith.truncf %342 : vector<8x128xf32> to vector<8x128xbf16>
    %368 = tpu.concatenate %366, %367 in 1 : vector<8x128xbf16>, vector<8x128xbf16> -> vector<8x256xbf16>
    %c0_109 = arith.constant 0 : index
    %c0_110 = arith.constant 0 : index
    %369 = vector.load %arg7[%c0_109, %c0_110] : memref<256x512xbf16, #tpu.memory_space<vmem>>, vector<256x512xbf16>
    %cst_111 = arith.constant dense<0.000000e+00> : vector<8x512xf32>
    %370 = tpu.matmul %368, %369, %cst_111 {dimension_numbers = #tpu.dot_dimension_numbers<[1], [0], [0], [1], [0, 0, 1, 1], [], []>} : vector<8x256xbf16>, vector<256x512xbf16>, vector<8x512xf32> -> vector<8x512xf32>
    %c0_112 = arith.constant 0 : index
    %c0_113 = arith.constant 0 : index
    %371 = vector.load %arg8[%c0_112, %c0_113] : memref<1x512xf32, #tpu.memory_space<vmem>>, vector<1x512xf32>
    %372 = vector.broadcast %371 : vector<1x512xf32> to vector<8x512xf32>
    %373 = arith.addf %370, %372 : vector<8x512xf32>
    %374 = vector.extract_strided_slice %373 {offsets = [0, 0], sizes = [8, 384], strides = [1, 1]} : vector<8x512xf32> to vector<8x384xf32>
    %375 = arith.negf %374 : vector<8x384xf32>
    %376 = math.exp %375 : vector<8x384xf32>
    %cst_114 = arith.constant 1.000000e+00 : f32
    %377 = vector.broadcast %cst_114 : f32 to vector<8x384xf32>
    %378 = arith.addf %377, %376 : vector<8x384xf32>
    %379 = arith.divf %377, %378 : vector<8x384xf32>
    %380 = vector.extract_strided_slice %379 {offsets = [0, 0], sizes = [8, 128], strides = [1, 1]} : vector<8x384xf32> to vector<8x128xf32>
    %381 = vector.extract_strided_slice %379 {offsets = [0, 128], sizes = [8, 128], strides = [1, 1]} : vector<8x384xf32> to vector<8x128xf32>
    %382 = vector.extract_strided_slice %379 {offsets = [0, 256], sizes = [8, 128], strides = [1, 1]} : vector<8x384xf32> to vector<8x128xf32>
    %383 = vector.extract_strided_slice %373 {offsets = [0, 384], sizes = [8, 128], strides = [1, 1]} : vector<8x512xf32> to vector<8x128xf32>
    %384 = math.tanh %383 : vector<8x128xf32>
    %385 = arith.mulf %381, %340 : vector<8x128xf32>
    %386 = arith.mulf %380, %384 : vector<8x128xf32>
    %387 = arith.addf %385, %386 : vector<8x128xf32>
    %388 = math.tanh %387 : vector<8x128xf32>
    %389 = arith.mulf %382, %388 : vector<8x128xf32>
    %390 = arith.maximumf %343, %389 : vector<8x128xf32>
    %391 = arith.truncf %390 : vector<8x128xf32> to vector<8x128xbf16>
    %c0_115 = arith.constant 0 : index
    %c0_116 = arith.constant 0 : index
    %392 = vector.load %arg11[%c0_115, %c0_116] : memref<128x128xbf16, #tpu.memory_space<vmem>>, vector<128x128xbf16>
    %cst_117 = arith.constant dense<0.000000e+00> : vector<8x128xf32>
    %393 = tpu.matmul %391, %392, %cst_117 {dimension_numbers = #tpu.dot_dimension_numbers<[1], [0], [0], [1], [0, 0, 1, 1], [], []>} : vector<8x128xbf16>, vector<128x128xbf16>, vector<8x128xf32> -> vector<8x128xf32>
    %c0_118 = arith.constant 0 : index
    %c0_119 = arith.constant 0 : index
    %394 = vector.load %arg12[%c0_118, %c0_119] : memref<1x128xf32, #tpu.memory_space<vmem>>, vector<1x128xf32>
    %395 = vector.broadcast %394 : vector<1x128xf32> to vector<8x128xf32>
    %396 = arith.addf %393, %395 : vector<8x128xf32>
    %397 = arith.negf %396 : vector<8x128xf32>
    %398 = math.exp %397 : vector<8x128xf32>
    %cst_120 = arith.constant 1.000000e+00 : f32
    %399 = vector.broadcast %cst_120 : f32 to vector<8x128xf32>
    %400 = arith.addf %399, %398 : vector<8x128xf32>
    %401 = arith.divf %399, %400 : vector<8x128xf32>
    %c0_121 = arith.constant 0 : index
    %c0_122 = arith.constant 0 : index
    %402 = vector.load %arg13[%c0_121, %c0_122] : memref<8x128xf32, #tpu.memory_space<vmem>>, vector<8x128xf32>
    tpu.vector_store %arg13[%c0_121, %c0_122], %401 {strides = array<i32>} : memref<8x128xf32, #tpu.memory_space<vmem>>, vector<8x128xf32>,
    return
  }
  func.func @transform_0(%arg0: i32) -> (i32, i32, i32) {
    %c0_i32 = arith.constant 0 : i32
    %c0_i32_0 = arith.constant 0 : i32
    %c0_i32_1 = arith.constant 0 : i32
    return %c0_i32, %arg0, %c0_i32_0 : i32, i32, i32
  }
  func.func @transform_1(%arg0: i32) -> (i32, i32) {
    %c0_i32 = arith.constant 0 : i32
    %c0_i32_0 = arith.constant 0 : i32
    %c0_i32_1 = arith.constant 0 : i32
    return %c0_i32, %c0_i32_0 : i32, i32
  }
  func.func @transform_2(%arg0: i32) -> (i32, i32) {
    %c0_i32 = arith.constant 0 : i32
    %c0_i32_0 = arith.constant 0 : i32
    %c0_i32_1 = arith.constant 0 : i32
    return %c0_i32, %c0_i32_0 : i32, i32
  }
  func.func @transform_3(%arg0: i32) -> (i32, i32) {
    %c0_i32 = arith.constant 0 : i32
    %c0_i32_0 = arith.constant 0 : i32
    %c0_i32_1 = arith.constant 0 : i32
    return %c0_i32, %c0_i32_0 : i32, i32
  }
  func.func @transform_4(%arg0: i32) -> (i32, i32) {
    %c0_i32 = arith.constant 0 : i32
    %c0_i32_0 = arith.constant 0 : i32
    return %arg0, %c0_i32 : i32, i32
  }
  func.func @transform_5(%arg0: i32) -> (i32, i32) {
    %c0_i32 = arith.constant 0 : i32
    %c0_i32_0 = arith.constant 0 : i32
    return %arg0, %c0_i32 : i32, i32
  }
  func.func @transform_6(%arg0: i32) -> (i32, i32) {
    %c0_i32 = arith.constant 0 : i32
    %c0_i32_0 = arith.constant 0 : i32
    %c0_i32_1 = arith.constant 0 : i32
    return %c0_i32, %c0_i32_0 : i32, i32
  }
  func.func @transform_7(%arg0: i32) -> (i32, i32) {
    %c0_i32 = arith.constant 0 : i32
    %c0_i32_0 = arith.constant 0 : i32
    %c0_i32_1 = arith.constant 0 : i32
    return %c0_i32, %c0_i32_0 : i32, i32
  }
  func.func @transform_8(%arg0: i32) -> (i32, i32) {
    %c0_i32 = arith.constant 0 : i32
    %c0_i32_0 = arith.constant 0 : i32
    return %arg0, %c0_i32 : i32, i32
  }
  func.func @transform_9(%arg0: i32) -> (i32, i32) {
    %c0_i32 = arith.constant 0 : i32
    %c0_i32_0 = arith.constant 0 : i32
    return %arg0, %c0_i32 : i32, i32
  }
  func.func @transform_10(%arg0: i32) -> (i32, i32) {
    %c0_i32 = arith.constant 0 : i32
    %c0_i32_0 = arith.constant 0 : i32
    %c0_i32_1 = arith.constant 0 : i32
    return %c0_i32, %c0_i32_0 : i32, i32
  }
  func.func @transform_11(%arg0: i32) -> (i32, i32) {
    %c0_i32 = arith.constant 0 : i32
    %c0_i32_0 = arith.constant 0 : i32
    %c0_i32_1 = arith.constant 0 : i32
    return %c0_i32, %c0_i32_0 : i32, i32
  }
  func.func @transform_12(%arg0: i32) -> (i32, i32) {
    %c0_i32 = arith.constant 0 : i32
    %c0_i32_0 = arith.constant 0 : i32
    return %arg0, %c0_i32 : i32, i32
  }
}

</mosaic_0001>

<bundles_post_ra>
// kernel: lstm_model_forward.1
= control target key start
LH: loop header
LB: loop body
LE: loop exit
PB: predicated region body
PF: predicated region fallthrough
CT: control target
= control target key end

     0   :  { %v6636_v1 = vmov 0   ;;  %vm3894_vm0 = vmmov 0   ;;  %s6623_s1 = inlined_call_operand.vmem [shape: bf16[128,512], index: 1, kind: input, shape index: {}]   ;;  %s6624_s0 = inlined_call_operand.vmem [shape: bf16[8,8,128], index: 0, kind: input, shape index: {}]   ;;  %s6625_s2 = inlined_call_operand.vmem [shape: bf16[128,512], index: 2, kind: input, shape index: {}]   ;;  %s6626_s4 = inlined_call_operand.vmem [shape: f32[8,128], index: 4, kind: input, shape index: {}]   ;;  %s6627_s6 = inlined_call_operand.vmem [shape: bf16[256,512], index: 6, kind: input, shape index: {}]   ;;  %s6628_s8 = inlined_call_operand.vmem [shape: f32[8,128], index: 8, kind: input, shape index: {}]   ;;  %s6629_s3 = inlined_call_operand.vmem [shape: f32[1,512], index: 3, kind: input, shape index: {}]   ;;  %s6630_s5 = inlined_call_operand.vmem [shape: f32[8,128], index: 5, kind: input, shape index: {}]   ;;  %s6631_s7 = inlined_call_operand.vmem [shape: f32[1,512], index: 7, kind: input, shape index: {}]   ;;  %s6632_s9 = inlined_call_operand.vmem [shape: f32[8,128], index: 9, kind: input, shape index: {}]   ;;  %s6633_s10 = inlined_call_operand.vmem [shape: bf16[128,128], index: 10, kind: input, shape index: {}]   ;;  %s6634_s11 = inlined_call_operand.vmem [shape: f32[1,128], index: 11, kind: input, shape index: {}]   ;;  %s6635_s12 = inlined_call_operand.vmem [shape: f32[8,128], index: 12, kind: output, shape index: {}]  }
   0x1   :  { %v3236_v0 = vld [vmem:[%s6623_s1 + $0x4] ss:$16 sps:$4 sm:$0xff]   ;;  %298 = vmatprep.mubr.bf16.mxu0 %v6636_v1  ;;  %371 = vmatprep.mubr.bf16.mxu1 %v6636_v1  ;;  %v3238_v2 = vld [vmem:[%s6623_s1 + $0xc] ss:$16 sps:$4 sm:$0xff]   ;;  %v3240_v3 = vld [vmem:[%s6623_s1] ss:$16 sps:$4 sm:$0xff]  }
   0x2   :  { %266 = vmatprep.subr.bf16.mxu0 %v3236_v0  ;;  %v3241_v4 = vld [vmem:[%s6623_s1 + $0x8] ss:$16 sps:$4 sm:$0xff]   ;;  %339 = vmatprep.subr.bf16.mxu1 %v3238_v2  ;;  %v3242_v5 = vld [vmem:[%s6623_s1 + $0x24] ss:$16 sps:$4 sm:$0xff]   ;;  %v3244_v6 = vld [vmem:[%s6623_s1 + $0x2c] ss:$16 sps:$4 sm:$0xff]  }
   0x3   :  { %267 = vmatpush1.bf16.msra.mxu0 %v3240_v3  ;;  %340 = vmatpush1.bf16.msra.mxu1 %v3241_v4  ;;  %v3246_v7 = vld [vmem:[%s6623_s1 + $0x20] ss:$16 sps:$4 sm:$0xff]   ;;  %v3247_v8 = vld [vmem:[%s6623_s1 + $0x28] ss:$16 sps:$4 sm:$0xff]   ;;  %v3248_v9 = vld [vmem:[%s6623_s1 + $0x44] ss:$16 sps:$4 sm:$0xff]  }
   0x4   :  { %268 = vmatprep.subr.bf16.mxu0 %v3242_v5  ;;  %341 = vmatprep.subr.bf16.mxu1 %v3244_v6  ;;  %v3250_v10 = vld [vmem:[%s6623_s1 + $0x4c] ss:$16 sps:$4 sm:$0xff]   ;;  %v3252_v11 = vld [vmem:[%s6623_s1 + $0x40] ss:$16 sps:$4 sm:$0xff]   ;;  %v3253_v12 = vld [vmem:[%s6623_s1 + $0x48] ss:$16 sps:$4 sm:$0xff]  }
   0x5   :  { %v3254_v13 = vld [vmem:[%s6623_s1 + $0x64] ss:$16 sps:$4 sm:$0xff]   ;;  %v3256_v14 = vld [vmem:[%s6623_s1 + $0x6c] ss:$16 sps:$4 sm:$0xff]   ;;  %v3258_v15 = vld [vmem:[%s6623_s1 + $0x60] ss:$16 sps:$4 sm:$0xff]  }
   0x6   :  { %v3259_v16 = vld [vmem:[%s6623_s1 + $0x68] ss:$16 sps:$4 sm:$0xff]   ;;  %v3260_v17 = vld [vmem:[%s6623_s1 + $0x84] ss:$16 sps:$4 sm:$0xff]   ;;  %v3262_v18 = vld [vmem:[%s6623_s1 + $0x8c] ss:$16 sps:$4 sm:$0xff]  }
   0x7   :  { %269 = vmatpush1.bf16.msra.mxu0 %v3246_v7  ;;  %342 = vmatpush1.bf16.msra.mxu1 %v3247_v8  ;;  %v3264_v19 = vld [vmem:[%s6623_s1 + $0x80] ss:$16 sps:$4 sm:$0xff]   ;;  %v3265_v20 = vld [vmem:[%s6623_s1 + $0x88] ss:$16 sps:$4 sm:$0xff]   ;;  %v3266_v21 = vld [vmem:[%s6623_s1 + $0xa4] ss:$16 sps:$4 sm:$0xff]  }
   0x8   :  { %270 = vmatprep.subr.bf16.mxu0 %v3248_v9  ;;  %343 = vmatprep.subr.bf16.mxu1 %v3250_v10  ;;  %v3268_v22 = vld [vmem:[%s6623_s1 + $0xac] ss:$16 sps:$4 sm:$0xff]   ;;  %v3270_v23 = vld [vmem:[%s6623_s1 + $0xa0] ss:$16 sps:$4 sm:$0xff]   ;;  %v3271_v24 = vld [vmem:[%s6623_s1 + $0xa8] ss:$16 sps:$4 sm:$0xff]  }
   0x9   :  { %v3272_v25 = vld [vmem:[%s6623_s1 + $0xc4] ss:$16 sps:$4 sm:$0xff]   ;;  %v3274_v26 = vld [vmem:[%s6623_s1 + $0xcc] ss:$16 sps:$4 sm:$0xff]   ;;  %v3276_v27 = vld [vmem:[%s6623_s1 + $0xc0] ss:$16 sps:$4 sm:$0xff]  }
   0xa   :  { %v3277_v28 = vld [vmem:[%s6623_s1 + $0xc8] ss:$16 sps:$4 sm:$0xff]   ;;  %v3278_v29 = vld [vmem:[%s6623_s1 + $0xe4] ss:$16 sps:$4 sm:$0xff]   ;;  %v3280_v30 = vld [vmem:[%s6623_s1 + $0xec] ss:$16 sps:$4 sm:$0xff]  }
   0xb   :  { %271 = vmatpush1.bf16.msra.mxu0 %v3252_v11  ;;  %344 = vmatpush1.bf16.msra.mxu1 %v3253_v12  ;;  %v3282_v31 = vld [vmem:[%s6623_s1 + $0xe0] ss:$16 sps:$4 sm:$0xff]   ;;  %v3283_v32 = vld [vmem:[%s6623_s1 + $0xe8] ss:$16 sps:$4 sm:$0xff]   ;;  %v4061_v33 = vld [vmem:[%s6625_s2 + $0x4] ss:$16 sps:$4 sm:$0xff]  }
   0xc   :  { %272 = vmatprep.subr.bf16.mxu0 %v3254_v13  ;;  %345 = vmatprep.subr.bf16.mxu1 %v3256_v14  ;;  %v4066_v34 = vld [vmem:[%s6625_s2 + $0xc] ss:$16 sps:$4 sm:$0xff]   ;;  %v3284_v35 = vld [vmem:[%s6624_s0] sm:$0xff]   ;;  %v4079_v37 = vld [vmem:[%s6625_s2 + $0x8] ss:$16 sps:$4 sm:$0xff]  }
   0xd   :  { %v4074_v36 = vld [vmem:[%s6625_s2] ss:$16 sps:$4 sm:$0xff]   ;;  %v4086_v38 = vld [vmem:[%s6625_s2 + $0x24] ss:$16 sps:$4 sm:$0xff]   ;;  %v4091_v39 = vld [vmem:[%s6625_s2 + $0x2c] ss:$16 sps:$4 sm:$0xff]  }
   0xe   :  { %v4096_v40 = vld [vmem:[%s6625_s2 + $0x20] ss:$16 sps:$4 sm:$0xff]   ;;  %v4103_v41 = vld [vmem:[%s6625_s2 + $0x28] ss:$16 sps:$4 sm:$0xff]   ;;  %v4110_v42 = vld [vmem:[%s6625_s2 + $0x44] ss:$16 sps:$4 sm:$0xff]  }
   0xf   :  { %273 = vmatpush1.bf16.msra.mxu0 %v3258_v15  ;;  %346 = vmatpush1.bf16.msra.mxu1 %v3259_v16  ;;  %v4115_v43 = vld [vmem:[%s6625_s2 + $0x4c] ss:$16 sps:$4 sm:$0xff]   ;;  %v4125_v45 = vld [vmem:[%s6625_s2 + $0x40] ss:$16 sps:$4 sm:$0xff]   ;;  %v4130_v46 = vld [vmem:[%s6625_s2 + $0x48] ss:$16 sps:$4 sm:$0xff]  }
  0x10   :  { %274 = vmatprep.subr.bf16.mxu0 %v3260_v17  ;;  %347 = vmatprep.subr.bf16.mxu1 %v3262_v18  ;;  %v3297_v44 = vld [vmem:[%s6624_s0 + $0x8] sm:$0xff]   ;;  %v4137_v47 = vld [vmem:[%s6625_s2 + $0x64] ss:$16 sps:$4 sm:$0xff]   ;;  %v4149_v49 = vld [vmem:[%s6625_s2 + $0x60] ss:$16 sps:$4 sm:$0xff]  }
  0x11   :  { %v4144_v48 = vld [vmem:[%s6625_s2 + $0x6c] ss:$16 sps:$4 sm:$0xff]   ;;  %v4154_v50 = vld [vmem:[%s6625_s2 + $0x68] ss:$16 sps:$4 sm:$0xff]   ;;  %v4161_v51 = vld [vmem:[%s6625_s2 + $0x84] ss:$16 sps:$4 sm:$0xff]  }
  0x12   :  { %v4168_v52 = vld [vmem:[%s6625_s2 + $0x8c] ss:$16 sps:$4 sm:$0xff]   ;;  %v3310_v53 = vld [vmem:[%s6624_s0 + $0x10] sm:$0xff]   ;;  %v4185_v55 = vld [vmem:[%s6625_s2 + $0x88] ss:$16 sps:$4 sm:$0xff]  }
  0x13   :  { %275 = vmatpush1.bf16.msra.mxu0 %v3264_v19  ;;  %348 = vmatpush1.bf16.msra.mxu1 %v3265_v20  ;;  %v4180_v54 = vld [vmem:[%s6625_s2 + $0x80] ss:$16 sps:$4 sm:$0xff]   ;;  %v4192_v56 = vld [vmem:[%s6625_s2 + $0xa4] ss:$16 sps:$4 sm:$0xff]   ;;  %v4197_v57 = vld [vmem:[%s6625_s2 + $0xac] ss:$16 sps:$4 sm:$0xff]  }
  0x14   :  { %276 = vmatprep.subr.bf16.mxu0 %v3266_v21  ;;  %349 = vmatprep.subr.bf16.mxu1 %v3268_v22  ;;  %v4204_v58 = vld [vmem:[%s6625_s2 + $0xa0] ss:$16 sps:$4 sm:$0xff]   ;;  %v4209_v59 = vld [vmem:[%s6625_s2 + $0xa8] ss:$16 sps:$4 sm:$0xff]   ;;  %v4216_v60 = vld [vmem:[%s6625_s2 + $0xc4] ss:$16 sps:$4 sm:$0xff]  }
  0x15   :  { %v4221_v61 = vld [vmem:[%s6625_s2 + $0xcc] ss:$16 sps:$4 sm:$0xff]   ;;  %v4233_v63 = vld [vmem:[%s6625_s2 + $0xc0] ss:$16 sps:$4 sm:$0xff]   ;;  %v4238_v0 = vld [vmem:[%s6625_s2 + $0xc8] ss:$16 sps:$4 sm:$0xff]  }
  0x16   :  { %v3323_v62 = vld [vmem:[%s6624_s0 + $0x18] sm:$0xff]   ;;  %v4245_v2 = vld [vmem:[%s6625_s2 + $0xe4] ss:$16 sps:$4 sm:$0xff]   ;;  %v4257_v4 = vld [vmem:[%s6625_s2 + $0xe0] ss:$16 sps:$4 sm:$0xff]  }
  0x17   :  { %277 = vmatpush1.bf16.msra.mxu0 %v3270_v23  ;;  %350 = vmatpush1.bf16.msra.mxu1 %v3271_v24  ;;  %v4250_v3 = vld [vmem:[%s6625_s2 + $0xec] ss:$16 sps:$4 sm:$0xff]   ;;  %v4262_v5 = vld [vmem:[%s6625_s2 + $0xe8] ss:$16 sps:$4 sm:$0xff]   ;;  %v498_v6 = vld [vmem:[%s6626_s4] sm:$0xff] }
  0x18   :  { %278 = vmatprep.subr.bf16.mxu0 %v3272_v25  ;;  %351 = vmatprep.subr.bf16.mxu1 %v3274_v26  ;;  %v506_v7 = vpack.c.bf16 %v498_v6, %v498_v6  ;;  %v4276_v8 = vld [vmem:[%s6627_s6 + $0x4] ss:$16 sps:$4 sm:$0xff]   ;;  %v4281_v9 = vld [vmem:[%s6627_s6 + $0xc] ss:$16 sps:$4 sm:$0xff]   ;;  %v4287_v10 = vld [vmem:[%s6627_s6] ss:$16 sps:$4 sm:$0xff]  }
  0x19   :  { %v4292_v11 = vld [vmem:[%s6627_s6 + $0x8] ss:$16 sps:$4 sm:$0xff]   ;;  %v4300_v12 = vld [vmem:[%s6627_s6 + $0x24] ss:$16 sps:$4 sm:$0xff]   ;;  %v4305_v13 = vld [vmem:[%s6627_s6 + $0x2c] ss:$16 sps:$4 sm:$0xff]  }
  0x1a   :  { %v4310_v14 = vld [vmem:[%s6627_s6 + $0x20] ss:$16 sps:$4 sm:$0xff]   ;;  %v4315_v15 = vld [vmem:[%s6627_s6 + $0x28] ss:$16 sps:$4 sm:$0xff]   ;;  %v4324_v16 = vld [vmem:[%s6627_s6 + $0x44] ss:$16 sps:$4 sm:$0xff]  }
  0x1b   :  { %279 = vmatpush1.bf16.msra.mxu0 %v3276_v27  ;;  %352 = vmatpush1.bf16.msra.mxu1 %v3277_v28  ;;  %v4329_v17 = vld [vmem:[%s6627_s6 + $0x4c] ss:$16 sps:$4 sm:$0xff]   ;;  %v4334_v18 = vld [vmem:[%s6627_s6 + $0x40] ss:$16 sps:$4 sm:$0xff]   ;;  %v4339_v19 = vld [vmem:[%s6627_s6 + $0x48] ss:$16 sps:$4 sm:$0xff]  }
  0x1c   :  { %280 = vmatprep.subr.bf16.mxu0 %v3278_v29  ;;  %353 = vmatprep.subr.bf16.mxu1 %v3280_v30  ;;  %7024 = vst [vmem:[#allocation3_spill] sm:$0xff] %v4329_v17  ;;  %7025 = vst [vmem:[#allocation4_spill] sm:$0xff] %v4334_v18  ;;  %v4348_v20 = vld [vmem:[%s6627_s6 + $0x64] ss:$16 sps:$4 sm:$0xff]   ;;  %v4353_v21 = vld [vmem:[%s6627_s6 + $0x6c] ss:$16 sps:$4 sm:$0xff]  }
  0x1d   :  { %7026 = vst [vmem:[#allocation5_spill] sm:$0xff] %v4339_v19  ;;  %7027 = vst [vmem:[#allocation6_spill] sm:$0xff] %v4348_v20  ;;  %v4358_v22 = vld [vmem:[%s6627_s6 + $0x60] ss:$16 sps:$4 sm:$0xff]   ;;  %v4363_v23 = vld [vmem:[%s6627_s6 + $0x68] ss:$16 sps:$4 sm:$0xff]  }
  0x1e   :  { %7028 = vst [vmem:[#allocation7_spill] sm:$0xff] %v4353_v21  ;;  %7029 = vst [vmem:[#allocation8_spill] sm:$0xff] %v4358_v22  ;;  %v4372_v24 = vld [vmem:[%s6627_s6 + $0x84] ss:$16 sps:$4 sm:$0xff]   ;;  %v4377_v25 = vld [vmem:[%s6627_s6 + $0x8c] ss:$16 sps:$4 sm:$0xff]  }
  0x1f   :  { %281 = vmatpush1.bf16.msra.mxu0 %v3282_v31  ;;  %354 = vmatpush1.bf16.msra.mxu1 %v3283_v32  ;;  %7030 = vst [vmem:[#allocation9_spill] sm:$0xff] %v4363_v23  ;;  %7031 = vst [vmem:[#allocation10_spill] sm:$0xff] %v4372_v24  ;;  %v4382_v26 = vld [vmem:[%s6627_s6 + $0x80] ss:$16 sps:$4 sm:$0xff]   ;;  %v4387_v27 = vld [vmem:[%s6627_s6 + $0x88] ss:$16 sps:$4 sm:$0xff]  }
  0x20   :  { %699 = vmatprep.subr.bf16.mxu0 %v4061_v33  ;;  %740 = vmatprep.subr.bf16.mxu1 %v4066_v34  ;;  %7032 = vst [vmem:[#allocation11_spill] sm:$0xff] %v4377_v25  ;;  %7033 = vst [vmem:[#allocation12_spill] sm:$0xff] %v4382_v26  ;;  %v4396_v28 = vld [vmem:[%s6627_s6 + $0xa4] ss:$16 sps:$4 sm:$0xff]   ;;  %v4401_v29 = vld [vmem:[%s6627_s6 + $0xac] ss:$16 sps:$4 sm:$0xff]  }
  0x21   :  { %7034 = vst [vmem:[#allocation13_spill] sm:$0xff] %v4387_v27  ;;  %7035 = vst [vmem:[#allocation14_spill] sm:$0xff] %v4396_v28  ;;  %v4406_v30 = vld [vmem:[%s6627_s6 + $0xa0] ss:$16 sps:$4 sm:$0xff]   ;;  %v4411_v31 = vld [vmem:[%s6627_s6 + $0xa8] ss:$16 sps:$4 sm:$0xff]  }
  0x22   :  { %299 = vmatmul.mubr.bf16.vlgmr.msra.gmra.mrb[0].mxu0 %v3284_v35  ;;  %372 = vmatmul.mubr.bf16.vlgmr.msra.gmra.mrb[0].mxu1 %v3284_v35  ;;  %7036 = vst [vmem:[#allocation15_spill] sm:$0xff] %v4401_v29  ;;  %7037 = vst [vmem:[#allocation16_spill] sm:$0xff] %v4406_v30  ;;  %v4420_v32 = vld [vmem:[%s6627_s6 + $0xc4] ss:$16 sps:$4 sm:$0xff]   ;;  %v4425_v35 = vld [vmem:[%s6627_s6 + $0xcc] ss:$16 sps:$4 sm:$0xff]  }
  0x23   :  { %700 = vmatpush1.bf16.msra.mxu0 %v4074_v36  ;;  %741 = vmatpush1.bf16.msra.mxu1 %v4079_v37  ;;  %7038 = vst [vmem:[#allocation17_spill] sm:$0xff] %v4411_v31  ;;  %7039 = vst [vmem:[#allocation18_spill] sm:$0xff] %v4420_v32  ;;  %v4449_v6 = vld [vmem:[%s6627_s6 + $0xec] ss:$16 sps:$4 sm:$0xff]  }
  0x24   :  { %701 = vmatprep.subr.bf16.mxu0 %v4086_v38  ;;  %742 = vmatprep.subr.bf16.mxu1 %v4091_v39  ;;  %7040 = vst [vmem:[#allocation19_spill] sm:$0xff] %v4425_v35  ;;  %7044 = vst [vmem:[#allocation23_spill] sm:$0xff] %v4449_v6 }
  0x25   :  { %308 = vmatprep.mubr.bf16.mxu0 %v6636_v1  ;;  %381 = vmatprep.mubr.bf16.mxu1 %v6636_v1 }
  0x27   :  { %702 = vmatpush1.bf16.msra.mxu0 %v4096_v40  ;;  %743 = vmatpush1.bf16.msra.mxu1 %v4103_v41 }
  0x28   :  { %703 = vmatprep.subr.bf16.mxu0 %v4110_v42  ;;  %744 = vmatprep.subr.bf16.mxu1 %v4115_v43 }
  0x2a   :  { %309 = vmatmul.mubr.bf16.gmra.mrb[4].mxu0 %v3297_v44  ;;  %382 = vmatmul.mubr.bf16.gmra.mrb[4].mxu1 %v3297_v44  ;;  %v4430_v44 = vld [vmem:[%s6627_s6 + $0xc0] ss:$16 sps:$4 sm:$0xff]  }
  0x2b   :  { %704 = vmatpush1.bf16.msra.mxu0 %v4125_v45  ;;  %745 = vmatpush1.bf16.msra.mxu1 %v4130_v46  ;;  %7041 = vst [vmem:[#allocation20_spill] sm:$0xff] %v4430_v44 }
  0x2c   :  { %705 = vmatprep.subr.bf16.mxu0 %v4137_v47  ;;  %746 = vmatprep.subr.bf16.mxu1 %v4144_v48 }
  0x2d   :  { %318 = vmatprep.mubr.bf16.mxu0 %v6636_v1  ;;  %391 = vmatprep.mubr.bf16.mxu1 %v6636_v1 }
  0x2f   :  { %706 = vmatpush1.bf16.msra.mxu0 %v4149_v49  ;;  %747 = vmatpush1.bf16.msra.mxu1 %v4154_v50 }
  0x30   :  { %707 = vmatprep.subr.bf16.mxu0 %v4161_v51  ;;  %748 = vmatprep.subr.bf16.mxu1 %v4168_v52 }
  0x32   :  { %319 = vmatmul.mubr.bf16.gmra.mrb[8].mxu0 %v3310_v53  ;;  %392 = vmatmul.mubr.bf16.gmra.mrb[8].mxu1 %v3310_v53  ;;  %v4435_v53 = vld [vmem:[%s6627_s6 + $0xc8] ss:$16 sps:$4 sm:$0xff]  }
  0x33   :  { %708 = vmatpush1.bf16.msra.mxu0 %v4180_v54  ;;  %749 = vmatpush1.bf16.msra.mxu1 %v4185_v55  ;;  %7042 = vst [vmem:[#allocation21_spill] sm:$0xff] %v4435_v53 }
  0x34   :  { %709 = vmatprep.subr.bf16.mxu0 %v4192_v56  ;;  %750 = vmatprep.subr.bf16.mxu1 %v4197_v57 }
  0x35   :  { %328 = vmatprep.mubr.bf16.mxu0 %v6636_v1  ;;  %401 = vmatprep.mubr.bf16.mxu1 %v6636_v1 }
  0x37   :  { %710 = vmatpush1.bf16.msra.mxu0 %v4204_v58  ;;  %751 = vmatpush1.bf16.msra.mxu1 %v4209_v59 }
  0x38   :  { %711 = vmatprep.subr.bf16.mxu0 %v4216_v60  ;;  %752 = vmatprep.subr.bf16.mxu1 %v4221_v61 }
  0x3a   :  { %329 = vmatmul.mubr.bf16.gmra.mrb[12].mxu0 %v3323_v62  ;;  %402 = vmatmul.mubr.bf16.gmra.mrb[12].mxu1 %v3323_v62  ;;  %v4444_v62 = vld [vmem:[%s6627_s6 + $0xe4] ss:$16 sps:$4 sm:$0xff]  }
  0x3b   :  { %712 = vmatpush1.bf16.msra.mxu0 %v4233_v63  ;;  %753 = vmatpush1.bf16.msra.mxu1 %v4238_v0  ;;  %7043 = vst [vmem:[#allocation22_spill] sm:$0xff] %v4444_v62 }
  0x3c   :  { %713 = vmatprep.subr.bf16.mxu0 %v4245_v2  ;;  %754 = vmatprep.subr.bf16.mxu1 %v4250_v3 }
  0x3d   :  { %731 = vmatprep.mubr.bf16.mxu0 %v6636_v1  ;;  %772 = vmatprep.mubr.bf16.mxu1 %v6636_v1  ;;  %v4459_v1 = vld [vmem:[%s6627_s6 + $0xe8] ss:$16 sps:$4 sm:$0xff]  }
  0x3e   :  { %7046 = vst [vmem:[#allocation25_spill] sm:$0xff] %v4459_v1 }
  0x3f   :  { %714 = vmatpush1.bf16.msra.mxu0 %v4257_v4  ;;  %755 = vmatpush1.bf16.msra.mxu1 %v4262_v5 }
  0x40   :  { %1217 = vmatprep.subr.bf16.mxu0 %v4276_v8  ;;  %1258 = vmatprep.subr.bf16.mxu1 %v4281_v9 }
  0x42   :  { %732 = vmatmul.mubr.bf16.vlgmr.msra.gmra.mrb[16].mxu0 %v506_v7  ;;  %773 = vmatmul.mubr.bf16.vlgmr.msra.gmra.mrb[16].mxu1 %v506_v7  ;;  %v4454_v7 = vld [vmem:[%s6627_s6 + $0xe0] ss:$16 sps:$4 sm:$0xff]  }
  0x43   :  { %1218 = vmatpush1.bf16.msra.mxu0 %v4287_v10  ;;  %1259 = vmatpush1.bf16.msra.mxu1 %v4292_v11  ;;  %7045 = vst [vmem:[#allocation24_spill] sm:$0xff] %v4454_v7 }
  0x44   :  { %1219 = vmatprep.subr.bf16.mxu0 %v4300_v12  ;;  %1260 = vmatprep.subr.bf16.mxu1 %v4305_v13 }
  0x47   :  { %1220 = vmatpush1.bf16.msra.mxu0 %v4310_v14  ;;  %1261 = vmatpush1.bf16.msra.mxu1 %v4315_v15 }
  0x48   :  { %1221 = vmatprep.subr.bf16.mxu0 %v4324_v16  ;;  %1262 = vmatprep.subr.bf16.mxu1 %v4329_v17 }
  0x4b   :  { %1222 = vmatpush1.bf16.msra.mxu0 %v4334_v18  ;;  %1263 = vmatpush1.bf16.msra.mxu1 %v4339_v19 }
  0x4c   :  { %1223 = vmatprep.subr.bf16.mxu0 %v4348_v20  ;;  %1264 = vmatprep.subr.bf16.mxu1 %v4353_v21 }
  0x4f   :  { %1224 = vmatpush1.bf16.msra.mxu0 %v4358_v22  ;;  %1265 = vmatpush1.bf16.msra.mxu1 %v4363_v23 }
  0x50   :  { %1225 = vmatprep.subr.bf16.mxu0 %v4372_v24  ;;  %1266 = vmatprep.subr.bf16.mxu1 %v4377_v25 }
  0x53   :  { %1226 = vmatpush1.bf16.msra.mxu0 %v4382_v26  ;;  %1267 = vmatpush1.bf16.msra.mxu1 %v4387_v27 }
  0x54   :  { %1227 = vmatprep.subr.bf16.mxu0 %v4396_v28  ;;  %1268 = vmatprep.subr.bf16.mxu1 %v4401_v29 }
  0x57   :  { %1228 = vmatpush1.bf16.msra.mxu0 %v4406_v30  ;;  %1269 = vmatpush1.bf16.msra.mxu1 %v4411_v31 }
  0x58   :  { %1229 = vmatprep.subr.bf16.mxu0 %v4420_v32  ;;  %1270 = vmatprep.subr.bf16.mxu1 %v4425_v35  ;;  %v4622_v35 = vld [vmem:[%s6627_s6 + $0x1c0] ss:$16 sps:$4 sm:$0xff]   ;;  %v4627_v32 = vld [vmem:[%s6627_s6 + $0x1c8] ss:$16 sps:$4 sm:$0xff]  }
  0x59   :  { %7073 = vst [vmem:[#allocation52_spill] sm:$0xff] %v4622_v35  ;;  %7074 = vst [vmem:[#allocation53_spill] sm:$0xff] %v4627_v32 }
  0x5b   :  { %1230 = vmatpush1.bf16.msra.mxu0 %v4430_v44  ;;  %1271 = vmatpush1.bf16.msra.mxu1 %v4435_v53  ;;  %v4468_v53 = vld [vmem:[%s6627_s6 + $0x104] ss:$16 sps:$4 sm:$0xff]   ;;  %v4473_v44 = vld [vmem:[%s6627_s6 + $0x10c] ss:$16 sps:$4 sm:$0xff]  }
  0x5c   :  { %1231 = vmatprep.subr.bf16.mxu0 %v4444_v62  ;;  %1272 = vmatprep.subr.bf16.mxu1 %v4449_v6  ;;  %7047 = vst [vmem:[#allocation26_spill] sm:$0xff] %v4468_v53  ;;  %7048 = vst [vmem:[#allocation27_spill] sm:$0xff] %v4473_v44  ;;  %v4478_v62 = vld [vmem:[%s6627_s6 + $0x100] ss:$16 sps:$4 sm:$0xff]   ;;  %v4497_v6 = vld [vmem:[%s6627_s6 + $0x12c] ss:$16 sps:$4 sm:$0xff]  }
  0x5d   :  { %7049 = vst [vmem:[#allocation28_spill] sm:$0xff] %v4478_v62  ;;  %7052 = vst [vmem:[#allocation31_spill] sm:$0xff] %v4497_v6 }
  0x5f   :  { %1232 = vmatpush1.bf16.msra.mxu0 %v4454_v7  ;;  %1273 = vmatpush1.bf16.msra.mxu1 %v4459_v1  ;;  %v4483_v7 = vld [vmem:[%s6627_s6 + $0x108] ss:$16 sps:$4 sm:$0xff]   ;;  %v4492_v1 = vld [vmem:[%s6627_s6 + $0x124] ss:$16 sps:$4 sm:$0xff]  }
  0x60   :  { %7050 = vst [vmem:[#allocation29_spill] sm:$0xff] %v4483_v7  ;;  %1233 = vmatprep.subr.bf16.mxu0 %v4468_v53  ;;  %1274 = vmatprep.subr.bf16.mxu1 %v4473_v44  ;;  %7051 = vst [vmem:[#allocation30_spill] sm:$0xff] %v4492_v1  ;;  %v4502_v53 = vld [vmem:[%s6627_s6 + $0x120] ss:$16 sps:$4 sm:$0xff]   ;;  %v4521_v44 = vld [vmem:[%s6627_s6 + $0x14c] ss:$16 sps:$4 sm:$0xff]  }
  0x61   :  { %7053 = vst [vmem:[#allocation32_spill] sm:$0xff] %v4502_v53  ;;  %7056 = vst [vmem:[#allocation35_spill] sm:$0xff] %v4521_v44 }
  0x63   :  { %1234 = vmatpush1.bf16.msra.mxu0 %v4478_v62  ;;  %1275 = vmatpush1.bf16.msra.mxu1 %v4483_v7  ;;  %v4507_v62 = vld [vmem:[%s6627_s6 + $0x128] ss:$16 sps:$4 sm:$0xff]   ;;  %v4516_v7 = vld [vmem:[%s6627_s6 + $0x144] ss:$16 sps:$4 sm:$0xff]  }
  0x64   :  { %7054 = vst [vmem:[#allocation33_spill] sm:$0xff] %v4507_v62  ;;  %1235 = vmatprep.subr.bf16.mxu0 %v4492_v1  ;;  %1276 = vmatprep.subr.bf16.mxu1 %v4497_v6  ;;  %7055 = vst [vmem:[#allocation34_spill] sm:$0xff] %v4516_v7  ;;  %v4526_v1 = vld [vmem:[%s6627_s6 + $0x140] ss:$16 sps:$4 sm:$0xff]   ;;  %v4545_v6 = vld [vmem:[%s6627_s6 + $0x16c] ss:$16 sps:$4 sm:$0xff]  }
  0x65   :  { %7057 = vst [vmem:[#allocation36_spill] sm:$0xff] %v4526_v1  ;;  %7060 = vst [vmem:[#allocation39_spill] sm:$0xff] %v4545_v6 }
  0x67   :  { %1236 = vmatpush1.bf16.msra.mxu0 %v4502_v53  ;;  %1277 = vmatpush1.bf16.msra.mxu1 %v4507_v62  ;;  %v4531_v53 = vld [vmem:[%s6627_s6 + $0x148] ss:$16 sps:$4 sm:$0xff]   ;;  %v4540_v62 = vld [vmem:[%s6627_s6 + $0x164] ss:$16 sps:$4 sm:$0xff]  }
  0x68   :  { %7058 = vst [vmem:[#allocation37_spill] sm:$0xff] %v4531_v53  ;;  %1237 = vmatprep.subr.bf16.mxu0 %v4516_v7  ;;  %1278 = vmatprep.subr.bf16.mxu1 %v4521_v44  ;;  %7059 = vst [vmem:[#allocation38_spill] sm:$0xff] %v4540_v62  ;;  %v4550_v7 = vld [vmem:[%s6627_s6 + $0x160] ss:$16 sps:$4 sm:$0xff]   ;;  %v4569_v44 = vld [vmem:[%s6627_s6 + $0x18c] ss:$16 sps:$4 sm:$0xff]  }
  0x69   :  { %7061 = vst [vmem:[#allocation40_spill] sm:$0xff] %v4550_v7  ;;  %7064 = vst [vmem:[#allocation43_spill] sm:$0xff] %v4569_v44 }
  0x6b   :  { %1238 = vmatpush1.bf16.msra.mxu0 %v4526_v1  ;;  %1279 = vmatpush1.bf16.msra.mxu1 %v4531_v53  ;;  %v4555_v1 = vld [vmem:[%s6627_s6 + $0x168] ss:$16 sps:$4 sm:$0xff]   ;;  %v4564_v53 = vld [vmem:[%s6627_s6 + $0x184] ss:$16 sps:$4 sm:$0xff]  }
  0x6c   :  { %7062 = vst [vmem:[#allocation41_spill] sm:$0xff] %v4555_v1  ;;  %1239 = vmatprep.subr.bf16.mxu0 %v4540_v62  ;;  %1280 = vmatprep.subr.bf16.mxu1 %v4545_v6  ;;  %7063 = vst [vmem:[#allocation42_spill] sm:$0xff] %v4564_v53  ;;  %v4574_v62 = vld [vmem:[%s6627_s6 + $0x180] ss:$16 sps:$4 sm:$0xff]   ;;  %v4593_v6 = vld [vmem:[%s6627_s6 + $0x1ac] ss:$16 sps:$4 sm:$0xff]  }
  0x6d   :  { %7065 = vst [vmem:[#allocation44_spill] sm:$0xff] %v4574_v62  ;;  %7068 = vst [vmem:[#allocation47_spill] sm:$0xff] %v4593_v6 }
  0x6f   :  { %1240 = vmatpush1.bf16.msra.mxu0 %v4550_v7  ;;  %1281 = vmatpush1.bf16.msra.mxu1 %v4555_v1  ;;  %v4579_v7 = vld [vmem:[%s6627_s6 + $0x188] ss:$16 sps:$4 sm:$0xff]   ;;  %v4588_v1 = vld [vmem:[%s6627_s6 + $0x1a4] ss:$16 sps:$4 sm:$0xff]  }
  0x70   :  { %7066 = vst [vmem:[#allocation45_spill] sm:$0xff] %v4579_v7  ;;  %1241 = vmatprep.subr.bf16.mxu0 %v4564_v53  ;;  %1282 = vmatprep.subr.bf16.mxu1 %v4569_v44  ;;  %7067 = vst [vmem:[#allocation46_spill] sm:$0xff] %v4588_v1  ;;  %v4598_v53 = vld [vmem:[%s6627_s6 + $0x1a0] ss:$16 sps:$4 sm:$0xff]   ;;  %v4613_v44 = vld [vmem:[%s6627_s6 + $0x1cc] ss:$16 sps:$4 sm:$0xff]  }
  0x71   :  { %7069 = vst [vmem:[#allocation48_spill] sm:$0xff] %v4598_v53  ;;  %7072 = vst [vmem:[#allocation51_spill] sm:$0xff] %v4613_v44 }
  0x73   :  { %1242 = vmatpush1.bf16.msra.mxu0 %v4574_v62  ;;  %1283 = vmatpush1.bf16.msra.mxu1 %v4579_v7  ;;  %v4603_v62 = vld [vmem:[%s6627_s6 + $0x1a8] ss:$16 sps:$4 sm:$0xff]   ;;  %v4608_v7 = vld [vmem:[%s6627_s6 + $0x1c4] ss:$16 sps:$4 sm:$0xff]  }
  0x74   :  { %7070 = vst [vmem:[#allocation49_spill] sm:$0xff] %v4603_v62  ;;  %7071 = vst [vmem:[#allocation50_spill] sm:$0xff] %v4608_v7  ;;  %1243 = vmatprep.subr.bf16.mxu0 %v4588_v1  ;;  %1284 = vmatprep.subr.bf16.mxu1 %v4593_v6  ;;  %v500_v6 = vld [vmem:[%s6628_s8] sm:$0xff] }
  0x75   :  { %v810_v1 = vpack.c.bf16 %v500_v6, %v500_v6  ;;  %v414_v6 = vlaneseq }
  0x77   :  { %1244 = vmatpush1.bf16.msra.mxu0 %v4598_v53  ;;  %1285 = vmatpush1.bf16.msra.mxu1 %v4603_v62  ;;  %v4634_v53 = vld [vmem:[%s6627_s6 + $0x1e4] ss:$16 sps:$4 sm:$0xff]   ;;  %v4639_v62 = vld [vmem:[%s6627_s6 + $0x1ec] ss:$16 sps:$4 sm:$0xff]  }
  0x78   :  { %1245 = vmatprep.subr.bf16.mxu0 %v4608_v7  ;;  %1286 = vmatprep.subr.bf16.mxu1 %v4613_v44  ;;  %7075 = vst [vmem:[#allocation54_spill] sm:$0xff] %v4634_v53  ;;  %7076 = vst [vmem:[#allocation55_spill] sm:$0xff] %v4639_v62  ;;  %v4649_v44 = vld [vmem:[%s6627_s6 + $0x1e0] ss:$16 sps:$4 sm:$0xff]   ;;  %v4654_v7 = vld [vmem:[%s6627_s6 + $0x1e8] ss:$16 sps:$4 sm:$0xff]  }
  0x79   :  { %7077 = vst [vmem:[#allocation56_spill] sm:$0xff] %v4649_v44  ;;  %7078 = vst [vmem:[#allocation57_spill] sm:$0xff] %v4654_v7  ;;  %1249 = vmatprep.mubr.bf16.mxu0 %v810_v1  ;;  %1290 = vmatprep.mubr.bf16.mxu1 %v810_v1  ;;  %v412_v1 = vld [vmem:[%s6629_s3] sm:$0xf] }
  0x7b   :  { %1246 = vmatpush1.bf16.msra.mxu0 %v4622_v35  ;;  %1287 = vmatpush1.bf16.msra.mxu1 %v4627_v32  ;;  %v4662_v32 = vshrl.u32 %v414_v6, 7 }
  0x7c   :  { %1247 = vmatprep.subr.bf16.mxu0 %v4634_v53  ;;  %1288 = vmatprep.subr.bf16.mxu1 %v4639_v62 }
  0x7d   :  { %7079 = vst [vmem:[#allocation58_spill] sm:$0xff] %v4662_v32  ;;  %v6730_v35 = vsub.s32 2, %v4662_v32  ;;  %v6739_v31 = vsub.s32 3, %v4662_v32  ;;  %v6740_v53 = vsub.s32 0, %v4662_v32 }
  0x7f   :  { %1248 = vmatpush1.bf16.msra.mxu0 %v4649_v44  ;;  %1289 = vmatpush1.bf16.msra.mxu1 %v4654_v7  ;;  %v6747_v44 = vsub.s32 1, %v4662_v32  ;;  %v4681_v7 = vrot.slane %v412_v1, %v6739_v31  ;;  %v417_v62 = vrot.slane %v412_v1, %v6740_v53 }
  0x80   :  { %1328 = vmatprep.subr.bf16.mxu0 %v4061_v33  ;;  %1369 = vmatprep.subr.bf16.mxu1 %v4066_v34  ;;  %v4673_v33 = vrot.slane %v412_v1, %v6730_v35 }
  0x81   :  { %v421_v28 = vrot.slane %v412_v1, %v6747_v44 }
  0xf5   :  { %v4675_v34 = vpop.f32.mrb[0].mxu0  ;;  %v4677_v6 = vpop.f32.mrb[0].mxu1 }
  0xf6   :  { %v302_v30 = vpop.f32.mrb[1].mxu0  ;;  %v375_v29 = vpop.f32.mrb[1].mxu1 }
  0xf7   :  { %v304_v27 = vpop.f32.mrb[2].mxu0  ;;  %v377_v26 = vpop.f32.mrb[2].mxu1 }
  0xf8   :  { %v4687_v35 = vadd.f32 %v417_v62, %v304_v27  ;;  %v306_v25 = vpop.f32.mrb[3].mxu0  ;;  %v4690_v24 = vadd.f32 %v4673_v33, %v377_v26  ;;  %v379_v23 = vpop.f32.mrb[3].mxu1 }
  0xf9   :  { %v4692_v22 = vadd.f32 %v421_v28, %v306_v25  ;;  %v4695_v31 = vadd.f32 %v4681_v7, %v379_v23 }
  0xfa   :  { %7080 = vst [vmem:[#allocation59_spill] sm:$0xff] %v4687_v35  ;;  %7081 = vst [vmem:[#allocation60_spill] sm:$0xff] %v4690_v24 }
  0xfb   :  { %7082 = vst [vmem:[#allocation61_spill] sm:$0xff] %v4692_v22  ;;  %7083 = vst [vmem:[#allocation62_spill] sm:$0xff] %v4695_v31 }
  0xfd   :  { %v310_v53 = vpop.f32.mrb[4].mxu0  ;;  %v383_v21 = vpop.f32.mrb[4].mxu1 }
  0xfe   :  { %v4697_v20 = vadd.f32 %v417_v62, %v310_v53  ;;  %v312_v32 = vpop.f32.mrb[5].mxu0  ;;  %v4700_v1 = vadd.f32 %v4673_v33, %v383_v21  ;;  %v385_v27 = vpop.f32.mrb[5].mxu1 }
  0xff   :  { %v4702_v44 = vadd.f32 %v421_v28, %v312_v32  ;;  %v314_v35 = vpop.f32.mrb[6].mxu0  ;;  %v4705_v26 = vadd.f32 %v4681_v7, %v385_v27  ;;  %v387_v25 = vpop.f32.mrb[6].mxu1 }
 0x100   :  { %7084 = vst [vmem:[#allocation63_spill] sm:$0xff] %v4697_v20  ;;  %7085 = vst [vmem:[#allocation64_spill] sm:$0xff] %v4700_v1  ;;  %v4707_v22 = vadd.f32 %v417_v62, %v314_v35  ;;  %v316_v23 = vpop.f32.mrb[7].mxu0  ;;  %v4710_v31 = vadd.f32 %v4673_v33, %v387_v25  ;;  %v389_v53 = vpop.f32.mrb[7].mxu1 }
 0x101   :  { %7086 = vst [vmem:[#allocation65_spill] sm:$0xff] %v4702_v44  ;;  %7087 = vst [vmem:[#allocation66_spill] sm:$0xff] %v4705_v26  ;;  %v4712_v20 = vadd.f32 %v421_v28, %v316_v23  ;;  %v4715_v21 = vadd.f32 %v4681_v7, %v389_v53 }
 0x102   :  { %7088 = vst [vmem:[#allocation67_spill] sm:$0xff] %v4707_v22  ;;  %7089 = vst [vmem:[#allocation68_spill] sm:$0xff] %v4710_v31 }
 0x103   :  { %7090 = vst [vmem:[#allocation69_spill] sm:$0xff] %v4712_v20  ;;  %7091 = vst [vmem:[#allocation70_spill] sm:$0xff] %v4715_v21 }
 0x105   :  { %v320_v1 = vpop.f32.mrb[8].mxu0  ;;  %v393_v32 = vpop.f32.mrb[8].mxu1 }
 0x106   :  { %v4717_v44 = vadd.f32 %v417_v62, %v320_v1  ;;  %v322_v24 = vpop.f32.mrb[9].mxu0  ;;  %v4720_v27 = vadd.f32 %v4673_v33, %v393_v32  ;;  %v395_v35 = vpop.f32.mrb[9].mxu1 }
 0x107   :  { %v4722_v22 = vadd.f32 %v421_v28, %v322_v24  ;;  %v324_v26 = vpop.f32.mrb[10].mxu0  ;;  %v4725_v25 = vadd.f32 %v4681_v7, %v395_v35  ;;  %v397_v23 = vpop.f32.mrb[10].mxu1 }
 0x108   :  { %7092 = vst [vmem:[#allocation71_spill] sm:$0xff] %v4717_v44  ;;  %7093 = vst [vmem:[#allocation72_spill] sm:$0xff] %v4720_v27  ;;  %v4727_v20 = vadd.f32 %v417_v62, %v324_v26  ;;  %v326_v53 = vpop.f32.mrb[11].mxu0  ;;  %v4730_v21 = vadd.f32 %v4673_v33, %v397_v23  ;;  %v399_v1 = vpop.f32.mrb[11].mxu1 }
 0x109   :  { %7094 = vst [vmem:[#allocation73_spill] sm:$0xff] %v4722_v22  ;;  %7095 = vst [vmem:[#allocation74_spill] sm:$0xff] %v4725_v25  ;;  %v4732_v44 = vadd.f32 %v421_v28, %v326_v53  ;;  %v4735_v32 = vadd.f32 %v4681_v7, %v399_v1 }
 0x10a   :  { %7096 = vst [vmem:[#allocation75_spill] sm:$0xff] %v4727_v20  ;;  %7097 = vst [vmem:[#allocation76_spill] sm:$0xff] %v4730_v21 }
 0x10b   :  { %7098 = vst [vmem:[#allocation77_spill] sm:$0xff] %v4732_v44  ;;  %7099 = vst [vmem:[#allocation78_spill] sm:$0xff] %v4735_v32 }
 0x10d   :  { %v330_v27 = vpop.f32.mrb[12].mxu0  ;;  %v403_v24 = vpop.f32.mrb[12].mxu1 }
 0x10e   :  { %v4737_v22 = vadd.f32 %v417_v62, %v330_v27  ;;  %v332_v31 = vpop.f32.mrb[13].mxu0  ;;  %v4740_v35 = vadd.f32 %v4673_v33, %v403_v24  ;;  %v405_v26 = vpop.f32.mrb[13].mxu1 }
 0x10f   :  { %v4742_v20 = vadd.f32 %v421_v28, %v332_v31  ;;  %v334_v25 = vpop.f32.mrb[14].mxu0  ;;  %v4745_v23 = vadd.f32 %v4681_v7, %v405_v26  ;;  %v407_v53 = vpop.f32.mrb[14].mxu1  ;;  %v434_v31 = vadd.f32 %v417_v62, %v4675_v34  ;;  %v435_v26 = vadd.f32 %v421_v28, %v302_v30 }
 0x110   :  { %7100 = vst [vmem:[#allocation79_spill] sm:$0xff] %v4737_v22  ;;  %7101 = vst [vmem:[#allocation80_spill] sm:$0xff] %v4740_v35  ;;  %v4747_v44 = vadd.f32 %v417_v62, %v334_v25  ;;  %v336_v1 = vpop.f32.mrb[15].mxu0  ;;  %v4750_v32 = vadd.f32 %v4673_v33, %v407_v53  ;;  %v409_v27 = vpop.f32.mrb[15].mxu1 }
 0x111   :  { %7102 = vst [vmem:[#allocation81_spill] sm:$0xff] %v4742_v20  ;;  %7103 = vst [vmem:[#allocation82_spill] sm:$0xff] %v4745_v23  ;;  %v4752_v22 = vadd.f32 %v421_v28, %v336_v1  ;;  %v4755_v24 = vadd.f32 %v4681_v7, %v409_v27  ;;  %v436_v20 = vadd.f32 %v4673_v33, %v4677_v6 }
 0x112   :  { %7104 = vst [vmem:[#allocation83_spill] sm:$0xff] %v4747_v44  ;;  %7105 = vst [vmem:[#allocation84_spill] sm:$0xff] %v4750_v32  ;;  %v437_v23 = vadd.f32 %v4681_v7, %v375_v29 }
 0x113   :  { %7106 = vst [vmem:[#allocation85_spill] sm:$0xff] %v4752_v22  ;;  %7107 = vst [vmem:[#allocation86_spill] sm:$0xff] %v4755_v24 }
 0x115   :  { %v733_v25 = vpop.f32.mrb[16].mxu0  ;;  %v774_v44 = vpop.f32.mrb[16].mxu1 }
 0x116   :  { %v781_v35 = vadd.f32 %v733_v25, %v434_v31  ;;  %v783_v21 = vadd.f32 %v774_v44, %v436_v20  ;;  %v735_v53 = vpop.f32.mrb[17].mxu0  ;;  %v776_v32 = vpop.f32.mrb[17].mxu1  ;;  %v7108_v31 = vmov 0   ;;  %v7149_v25 = vld [vmem:[#allocation43_spill] sm:$0xff] }
 0x117   :  { %v782_v19 = vadd.f32 %v735_v53, %v435_v26  ;;  %v784_v1 = vadd.f32 %v776_v32, %v437_v23  ;;  %v737_v22 = vpop.f32.mrb[18].mxu0  ;;  %v778_v18 = vpop.f32.mrb[18].mxu1  ;;  %v7148_v26 = vld [vmem:[#allocation42_spill] sm:$0xff]  ;;  %v7150_v53 = vld [vmem:[#allocation44_spill] sm:$0xff] }
 0x118   :  { %v3082_v27 = vmul.f32 -1.442695, %v781_v35  ;;  %v738_v24 = vpop.f32.mrb[19].mxu0  ;;  %v779_v17 = vpop.f32.mrb[19].mxu1  ;;  %v3084_v33 = vmul.f32 -1.442695, %v783_v21 }
 0x119   :  { %v3083_v62 = vmul.f32 -1.442695, %v782_v19  ;;  %v499_v18 = vld [vmem:[%s6630_s5] sm:$0xff] }
 0x11a   :  { %3440 = vpow2.f32 %v3082_v27  ;;  %v7152_v27 = vld [vmem:[#allocation46_spill] sm:$0xff] }
 0x11b   :  { %3442 = vpow2.f32 %v3083_v62  ;;  %v7153_v62 = vld [vmem:[#allocation47_spill] sm:$0xff] }
 0x11c   :  { %3444 = vtanh.f32 %v784_v1  ;;  %v7151_v1 = vld [vmem:[#allocation45_spill] sm:$0xff] }
 0x11d   :  { %3446 = vpow2.f32 %v3084_v33  ;;  %v7154_v33 = vld [vmem:[#allocation48_spill] sm:$0xff] }
 0x124   :  { %v3441_v28 = vpop.eup %3440 }
 0x125   :  { %v794_v30 = vadd.f32 1.0, %v3441_v28  ;;  %v3443_v29 = vpop.eup %3442  ;;  %v7155_v28 = vld [vmem:[#allocation49_spill] sm:$0xff] }
 0x126   :  { %v795_v20 = vadd.f32 1.0, %v3443_v29  ;;  %v3445_v44 = vpop.eup %3444  ;;  %v7157_v29 = vld [vmem:[#allocation51_spill] sm:$0xff] }
 0x127   :  { %3448 = vrcp.f32 %v794_v30  ;;  %v3447_v7 = vpop.eup %3446  ;;  %v7156_v30 = vld [vmem:[#allocation50_spill] sm:$0xff] }
 0x128   :  { %3450 = vrcp.f32 %v795_v20  ;;  %v796_v22 = vadd.f32 1.0, %v3447_v7  ;;  %v7158_v20 = vld [vmem:[#allocation52_spill] sm:$0xff]  ;;  %v7160_v7 = vld [vmem:[#allocation54_spill] sm:$0xff] }
 0x12a   :  { %3452 = vrcp.f32 %v796_v22  ;;  %v4872_v22 = vld [vmem:[%s6625_s2 + $0xc] ss:$16 sps:$4 sm:$0xff]  }
 0x131   :  { %v3449_v34 = vpop.eup %3448 }
 0x132   :  { %v805_v17 = vmul.f32 %v3449_v34, %v3445_v44  ;;  %v3451_v19 = vpop.eup %3450  ;;  %v7159_v44 = vld [vmem:[#allocation53_spill] sm:$0xff]  ;;  %v7161_v34 = vld [vmem:[#allocation55_spill] sm:$0xff] }
 0x133   :  { %v804_v6 = vmul.f32 %v3451_v19, %v499_v18  ;;  %v7162_v18 = vld [vmem:[#allocation56_spill] sm:$0xff]  ;;  %v4866_v19 = vld [vmem:[%s6625_s2 + $0x4] ss:$16 sps:$4 sm:$0xff]  }
 0x134   :  { %v3453_v32 = vpop.eup %3452 }
 0x135   :  { %v4764_v21 = vadd.f32 %v805_v17, %v804_v6  ;;  %v7163_v17 = vld [vmem:[#allocation57_spill] sm:$0xff]  ;;  %v875_v6 = vld [vmem:[%s6631_s7] sm:$0xf] }
 0x137   :  { %3454 = vtanh.f32 %v4764_v21 }
 0x141   :  { %v3455_v35 = vpop.eup %3454 }
 0x142   :  { %v808_v23 = vmul.f32 %v3455_v35, %v3453_v32  ;;  %v7166_v32 = vld [vmem:[#allocation58_spill] sm:$0xff] }
 0x143   :  { %v7167_v35 = vsub.s32 0, %v7166_v32 }
 0x144   :  { %v809_v24 = vpack.c.bf16 %v808_v23, %v808_v23 }
 0x145   :  { %v4880_v23 = vrot.slane %v875_v6, %v7167_v35  ;;  %v7171_v35 = vsub.s32 2, %v7166_v32 }
 0x146   :  { %1250 = vmatmul.mubr.bf16.vlgmr.msra.gmra.mrb[20].mxu0 %v809_v24  ;;  %1291 = vmatmul.mubr.bf16.vlgmr.msra.gmra.mrb[20].mxu1 %v809_v24 }
 0x147   :  { %1329 = vmatpush1.bf16.msra.mxu0 %v4074_v36  ;;  %1370 = vmatpush1.bf16.msra.mxu1 %v4079_v37  ;;  %v7109_v36 = vld [vmem:[#allocation3_spill] sm:$0xff]  ;;  %v7110_v37 = vld [vmem:[#allocation4_spill] sm:$0xff] }
 0x148   :  { %1330 = vmatprep.subr.bf16.mxu0 %v4086_v38  ;;  %1371 = vmatprep.subr.bf16.mxu1 %v4091_v39  ;;  %v7111_v38 = vld [vmem:[#allocation5_spill] sm:$0xff]  ;;  %v7112_v39 = vld [vmem:[#allocation6_spill] sm:$0xff]  ;;  %7164 = vst [vmem:[#allocation3_spill] sm:$0xff] %v4866_v19  ;;  %7165 = vst [vmem:[#allocation4_spill] sm:$0xff] %v4872_v22 }
 0x149   :  { %1360 = vmatprep.mubr.bf16.mxu0 %v7108_v31  ;;  %1401 = vmatprep.mubr.bf16.mxu1 %v7108_v31  ;;  %7168 = vst [vmem:[#allocation5_spill] sm:$0xff] %v4880_v23 }
 0x14b   :  { %1331 = vmatpush1.bf16.msra.mxu0 %v4096_v40  ;;  %1372 = vmatpush1.bf16.msra.mxu1 %v4103_v41  ;;  %v7113_v40 = vld [vmem:[#allocation7_spill] sm:$0xff]  ;;  %v7114_v41 = vld [vmem:[#allocation8_spill] sm:$0xff] }
 0x14c   :  { %1332 = vmatprep.subr.bf16.mxu0 %v4110_v42  ;;  %1373 = vmatprep.subr.bf16.mxu1 %v4115_v43  ;;  %v7115_v42 = vld [vmem:[#allocation9_spill] sm:$0xff]  ;;  %v7116_v43 = vld [vmem:[#allocation10_spill] sm:$0xff] }
 0x14f   :  { %1333 = vmatpush1.bf16.msra.mxu0 %v4125_v45  ;;  %1374 = vmatpush1.bf16.msra.mxu1 %v4130_v46  ;;  %v7117_v45 = vld [vmem:[#allocation11_spill] sm:$0xff]  ;;  %v7118_v46 = vld [vmem:[#allocation12_spill] sm:$0xff] }
 0x150   :  { %1334 = vmatprep.subr.bf16.mxu0 %v4137_v47  ;;  %1375 = vmatprep.subr.bf16.mxu1 %v4144_v48  ;;  %v7119_v47 = vld [vmem:[#allocation13_spill] sm:$0xff]  ;;  %v7120_v48 = vld [vmem:[#allocation14_spill] sm:$0xff] }
 0x153   :  { %1335 = vmatpush1.bf16.msra.mxu0 %v4149_v49  ;;  %1376 = vmatpush1.bf16.msra.mxu1 %v4154_v50  ;;  %v7121_v49 = vld [vmem:[#allocation15_spill] sm:$0xff]  ;;  %v7122_v50 = vld [vmem:[#allocation16_spill] sm:$0xff] }
 0x154   :  { %1336 = vmatprep.subr.bf16.mxu0 %v4161_v51  ;;  %1377 = vmatprep.subr.bf16.mxu1 %v4168_v52  ;;  %v7123_v51 = vld [vmem:[#allocation17_spill] sm:$0xff]  ;;  %v7124_v52 = vld [vmem:[#allocation18_spill] sm:$0xff] }
 0x157   :  { %1337 = vmatpush1.bf16.msra.mxu0 %v4180_v54  ;;  %1378 = vmatpush1.bf16.msra.mxu1 %v4185_v55  ;;  %v7125_v54 = vld [vmem:[#allocation19_spill] sm:$0xff]  ;;  %v7126_v55 = vld [vmem:[#allocation20_spill] sm:$0xff] }
 0x158   :  { %1338 = vmatprep.subr.bf16.mxu0 %v4192_v56  ;;  %1379 = vmatprep.subr.bf16.mxu1 %v4197_v57  ;;  %v7127_v56 = vld [vmem:[#allocation21_spill] sm:$0xff]  ;;  %v7128_v57 = vld [vmem:[#allocation22_spill] sm:$0xff] }
 0x15b   :  { %1339 = vmatpush1.bf16.msra.mxu0 %v4204_v58  ;;  %1380 = vmatpush1.bf16.msra.mxu1 %v4209_v59  ;;  %v7129_v58 = vld [vmem:[#allocation23_spill] sm:$0xff]  ;;  %v7130_v59 = vld [vmem:[#allocation24_spill] sm:$0xff] }
 0x15c   :  { %1340 = vmatprep.subr.bf16.mxu0 %v4216_v60  ;;  %1381 = vmatprep.subr.bf16.mxu1 %v4221_v61  ;;  %v7131_v60 = vld [vmem:[#allocation25_spill] sm:$0xff]  ;;  %v7132_v61 = vld [vmem:[#allocation26_spill] sm:$0xff] }
 0x15f   :  { %1341 = vmatpush1.bf16.msra.mxu0 %v4233_v63  ;;  %1382 = vmatpush1.bf16.msra.mxu1 %v4238_v0  ;;  %v7133_v63 = vld [vmem:[#allocation27_spill] sm:$0xff]  ;;  %v7134_v0 = vld [vmem:[#allocation28_spill] sm:$0xff] }
 0x160   :  { %1342 = vmatprep.subr.bf16.mxu0 %v4245_v2  ;;  %1383 = vmatprep.subr.bf16.mxu1 %v4250_v3  ;;  %v7135_v2 = vld [vmem:[#allocation29_spill] sm:$0xff]  ;;  %v7136_v3 = vld [vmem:[#allocation30_spill] sm:$0xff] }
 0x163   :  { %1343 = vmatpush1.bf16.msra.mxu0 %v4257_v4  ;;  %1384 = vmatpush1.bf16.msra.mxu1 %v4262_v5  ;;  %v7137_v4 = vld [vmem:[#allocation31_spill] sm:$0xff]  ;;  %v7138_v5 = vld [vmem:[#allocation32_spill] sm:$0xff] }
 0x164   :  { %1440 = vmatprep.subr.bf16.mxu0 %v4276_v8  ;;  %1481 = vmatprep.subr.bf16.mxu1 %v4281_v9  ;;  %v7139_v8 = vld [vmem:[#allocation33_spill] sm:$0xff]  ;;  %v7140_v9 = vld [vmem:[#allocation34_spill] sm:$0xff] }
 0x166   :  { %1361 = vmatmul.mubr.bf16.vlgmr.msra.gmra.mrb[24].mxu0 %v809_v24  ;;  %1402 = vmatmul.mubr.bf16.vlgmr.msra.gmra.mrb[24].mxu1 %v809_v24  ;;  %v7169_v24 = vsub.s32 1, %v7166_v32 }
 0x167   :  { %1441 = vmatpush1.bf16.msra.mxu0 %v4287_v10  ;;  %1482 = vmatpush1.bf16.msra.mxu1 %v4292_v11  ;;  %v7141_v10 = vld [vmem:[#allocation35_spill] sm:$0xff]  ;;  %v7142_v11 = vld [vmem:[#allocation36_spill] sm:$0xff] }
 0x168   :  { %1442 = vmatprep.subr.bf16.mxu0 %v4300_v12  ;;  %1483 = vmatprep.subr.bf16.mxu1 %v4305_v13  ;;  %v7143_v12 = vld [vmem:[#allocation37_spill] sm:$0xff]  ;;  %v7144_v13 = vld [vmem:[#allocation38_spill] sm:$0xff] }
 0x16b   :  { %1443 = vmatpush1.bf16.msra.mxu0 %v4310_v14  ;;  %1484 = vmatpush1.bf16.msra.mxu1 %v4315_v15  ;;  %v7145_v14 = vld [vmem:[#allocation39_spill] sm:$0xff]  ;;  %v7146_v15 = vld [vmem:[#allocation40_spill] sm:$0xff] }
 0x16c   :  { %1444 = vmatprep.subr.bf16.mxu0 %v4324_v16  ;;  %1485 = vmatprep.subr.bf16.mxu1 %v7109_v36  ;;  %v7147_v16 = vld [vmem:[#allocation41_spill] sm:$0xff]  ;;  %v4884_v36 = vrot.slane %v875_v6, %v7169_v24  ;;  %v7173_v24 = vsub.s32 3, %v7166_v32 }
 0x16e   :  { %7170 = vst [vmem:[#allocation6_spill] sm:$0xff] %v4884_v36 }
 0x16f   :  { %1445 = vmatpush1.bf16.msra.mxu0 %v7110_v37  ;;  %1486 = vmatpush1.bf16.msra.mxu1 %v7111_v38 }
 0x170   :  { %1446 = vmatprep.subr.bf16.mxu0 %v7112_v39  ;;  %1487 = vmatprep.subr.bf16.mxu1 %v7113_v40 }
 0x173   :  { %1447 = vmatpush1.bf16.msra.mxu0 %v7114_v41  ;;  %1488 = vmatpush1.bf16.msra.mxu1 %v7115_v42 }
 0x174   :  { %1448 = vmatprep.subr.bf16.mxu0 %v7116_v43  ;;  %1489 = vmatprep.subr.bf16.mxu1 %v7117_v45 }
 0x177   :  { %1449 = vmatpush1.bf16.msra.mxu0 %v7118_v46  ;;  %1490 = vmatpush1.bf16.msra.mxu1 %v7119_v47 }
 0x178   :  { %1450 = vmatprep.subr.bf16.mxu0 %v7120_v48  ;;  %1491 = vmatprep.subr.bf16.mxu1 %v7121_v49 }
 0x17b   :  { %1451 = vmatpush1.bf16.msra.mxu0 %v7122_v50  ;;  %1492 = vmatpush1.bf16.msra.mxu1 %v7123_v51 }
 0x17c   :  { %1452 = vmatprep.subr.bf16.mxu0 %v7124_v52  ;;  %1493 = vmatprep.subr.bf16.mxu1 %v7125_v54 }
 0x17f   :  { %1453 = vmatpush1.bf16.msra.mxu0 %v7126_v55  ;;  %1494 = vmatpush1.bf16.msra.mxu1 %v7127_v56 }
 0x180   :  { %1454 = vmatprep.subr.bf16.mxu0 %v7128_v57  ;;  %1495 = vmatprep.subr.bf16.mxu1 %v7129_v58 }
 0x183   :  { %1455 = vmatpush1.bf16.msra.mxu0 %v7130_v59  ;;  %1496 = vmatpush1.bf16.msra.mxu1 %v7131_v60 }
 0x184   :  { %1456 = vmatprep.subr.bf16.mxu0 %v7132_v61  ;;  %1497 = vmatprep.subr.bf16.mxu1 %v7133_v63 }
 0x187   :  { %1457 = vmatpush1.bf16.msra.mxu0 %v7134_v0  ;;  %1498 = vmatpush1.bf16.msra.mxu1 %v7135_v2 }
 0x188   :  { %1458 = vmatprep.subr.bf16.mxu0 %v7136_v3  ;;  %1499 = vmatprep.subr.bf16.mxu1 %v7137_v4 }
 0x18b   :  { %1459 = vmatpush1.bf16.msra.mxu0 %v7138_v5  ;;  %1500 = vmatpush1.bf16.msra.mxu1 %v7139_v8 }
 0x18c   :  { %1460 = vmatprep.subr.bf16.mxu0 %v7140_v9  ;;  %1501 = vmatprep.subr.bf16.mxu1 %v7141_v10 }
 0x18f   :  { %1461 = vmatpush1.bf16.msra.mxu0 %v7142_v11  ;;  %1502 = vmatpush1.bf16.msra.mxu1 %v7143_v12 }
 0x190   :  { %1462 = vmatprep.subr.bf16.mxu0 %v7144_v13  ;;  %1503 = vmatprep.subr.bf16.mxu1 %v7145_v14 }
 0x193   :  { %1463 = vmatpush1.bf16.msra.mxu0 %v7146_v15  ;;  %1504 = vmatpush1.bf16.msra.mxu1 %v7147_v16 }
 0x194   :  { %1464 = vmatprep.subr.bf16.mxu0 %v7148_v26  ;;  %1505 = vmatprep.subr.bf16.mxu1 %v7149_v25 }
 0x197   :  { %1465 = vmatpush1.bf16.msra.mxu0 %v7150_v53  ;;  %1506 = vmatpush1.bf16.msra.mxu1 %v7151_v1 }
 0x198   :  { %1466 = vmatprep.subr.bf16.mxu0 %v7152_v27  ;;  %1507 = vmatprep.subr.bf16.mxu1 %v7153_v62 }
 0x19b   :  { %1467 = vmatpush1.bf16.msra.mxu0 %v7154_v33  ;;  %1508 = vmatpush1.bf16.msra.mxu1 %v7155_v28  ;;  %v4890_v28 = vrot.slane %v875_v6, %v7171_v35  ;;  %v4894_v33 = vrot.slane %v875_v6, %v7173_v24  ;;  %v501_v6 = vld [vmem:[%s6632_s9] sm:$0xff] }
 0x19c   :  { %1468 = vmatprep.subr.bf16.mxu0 %v7156_v30  ;;  %1509 = vmatprep.subr.bf16.mxu1 %v7157_v29 }
 0x19d   :  { %7172 = vst [vmem:[#allocation7_spill] sm:$0xff] %v4890_v28  ;;  %7174 = vst [vmem:[#allocation8_spill] sm:$0xff] %v4894_v33 }
 0x19f   :  { %1469 = vmatpush1.bf16.msra.mxu0 %v7158_v20  ;;  %1510 = vmatpush1.bf16.msra.mxu1 %v7159_v44 }
 0x1a0   :  { %1470 = vmatprep.subr.bf16.mxu0 %v7160_v7  ;;  %1511 = vmatprep.subr.bf16.mxu1 %v7161_v34 }
 0x1a3   :  { %1471 = vmatpush1.bf16.msra.mxu0 %v7162_v18  ;;  %1512 = vmatpush1.bf16.msra.mxu1 %v7163_v17 }
 0x1a4   :  { %1552 = vmatprep.subr.bf16.mxu0 %v4866_v19  ;;  %1593 = vmatprep.subr.bf16.mxu1 %v4872_v22 }
 0x219   :  { %v1251_v37 = vpop.f32.mrb[20].mxu0  ;;  %v1292_v38 = vpop.f32.mrb[20].mxu1 }
 0x21a   :  { %v1252_v19 = vadd.f32 %v1251_v37, %v4880_v23  ;;  %v1253_v17 = vpop.f32.mrb[21].mxu0  ;;  %v1294_v18 = vpop.f32.mrb[21].mxu1  ;;  %v1293_v37 = vadd.f32 %v1292_v38, %v4890_v28  ;;  %v7177_v28 = vld [vmem:[#allocation61_spill] sm:$0xff]  ;;  %v7178_v23 = vld [vmem:[#allocation62_spill] sm:$0xff] }
 0x21b   :  { %v1254_v22 = vadd.f32 %v1253_v17, %v4884_v36  ;;  %v1255_v34 = vpop.f32.mrb[22].mxu0  ;;  %v1296_v7 = vpop.f32.mrb[22].mxu1  ;;  %v1295_v17 = vadd.f32 %v1294_v18, %v4894_v33 }
 0x21c   :  { %v3149_v44 = vmul.f32 -1.442695, %v1252_v19  ;;  %v1256_v20 = vpop.f32.mrb[23].mxu0  ;;  %v1297_v29 = vpop.f32.mrb[23].mxu1  ;;  %v3151_v34 = vmul.f32 -1.442695, %v1293_v37 }
 0x21d   :  { %v3150_v30 = vmul.f32 -1.442695, %v1254_v22 }
 0x21e   :  { %3456 = vpow2.f32 %v3149_v44 }
 0x21f   :  { %3458 = vpow2.f32 %v3150_v30 }
 0x220   :  { %3460 = vtanh.f32 %v1295_v17  ;;  %v7175_v17 = vld [vmem:[#allocation59_spill] sm:$0xff] }
 0x221   :  { %3462 = vpow2.f32 %v3151_v34 }
 0x228   :  { %v3457_v7 = vpop.eup %3456 }
 0x229   :  { %v1308_v19 = vadd.f32 1.0, %v3457_v7  ;;  %v3459_v29 = vpop.eup %3458 }
 0x22a   :  { %v1309_v20 = vadd.f32 1.0, %v3459_v29  ;;  %v3461_v44 = vpop.eup %3460 }
 0x22b   :  { %3464 = vrcp.f32 %v1308_v19  ;;  %v3463_v22 = vpop.eup %3462  ;;  %v7176_v19 = vld [vmem:[#allocation60_spill] sm:$0xff] }
 0x22c   :  { %3466 = vrcp.f32 %v1309_v20  ;;  %v1310_v35 = vadd.f32 1.0, %v3463_v22 }
 0x22e   :  { %3468 = vrcp.f32 %v1310_v35 }
 0x235   :  { %v3465_v30 = vpop.eup %3464 }
 0x236   :  { %v1319_v32 = vmul.f32 %v3465_v30, %v3461_v44  ;;  %v3467_v38 = vpop.eup %3466 }
 0x237   :  { %v1318_v18 = vmul.f32 %v3467_v38, %v501_v6 }
 0x238   :  { %v3469_v38 = vpop.eup %3468 }
 0x239   :  { %v1362_v24 = vpop.f32.mrb[24].mxu0  ;;  %v1403_v37 = vpop.f32.mrb[24].mxu1  ;;  %v4901_v7 = vadd.f32 %v1319_v32, %v1318_v18 }
 0x23a   :  { %v1410_v34 = vadd.f32 %v1362_v24, %v7175_v17  ;;  %v1412_v29 = vadd.f32 %v1403_v37, %v7176_v19  ;;  %v1364_v20 = vpop.f32.mrb[25].mxu0  ;;  %v1405_v33 = vpop.f32.mrb[25].mxu1 }
 0x23b   :  { %v1411_v36 = vadd.f32 %v1364_v20, %v7177_v28  ;;  %v1413_v62 = vadd.f32 %v1405_v33, %v7178_v23  ;;  %v1366_v27 = vpop.f32.mrb[26].mxu0  ;;  %v1407_v44 = vpop.f32.mrb[26].mxu1  ;;  %3470 = vtanh.f32 %v4901_v7 }
 0x23c   :  { %v3152_v22 = vmul.f32 -1.442695, %v1410_v34  ;;  %v1367_v30 = vpop.f32.mrb[27].mxu0  ;;  %v1408_v6 = vpop.f32.mrb[27].mxu1  ;;  %v3154_v24 = vmul.f32 -1.442695, %v1412_v29 }
 0x23d   :  { %v3153_v32 = vmul.f32 -1.442695, %v1411_v36 }
 0x23e   :  { %3472 = vpow2.f32 %v3152_v22 }
 0x23f   :  { %3474 = vpow2.f32 %v3153_v32 }
 0x240   :  { %3476 = vtanh.f32 %v1413_v62 }
 0x241   :  { %3478 = vpow2.f32 %v3154_v24  ;;  %v4941_v24 = vld [vmem:[%s6625_s2 + $0x2c] ss:$16 sps:$4 sm:$0xff]  }
 0x245   :  { %v3471_v18 = vpop.eup %3470 }
 0x246   :  { %v4908_v37 = vmul.f32 %v3471_v18, %v3469_v38  ;;  %v4923_v38 = vld [vmem:[%s6625_s2] ss:$16 sps:$4 sm:$0xff]   ;;  %v4935_v18 = vld [vmem:[%s6625_s2 + $0x24] ss:$16 sps:$4 sm:$0xff]  }
 0x248   :  { %7179 = vst [vmem:[#allocation9_spill] sm:$0xff] %v4908_v37  ;;  %v3473_v35 = vpop.eup %3472  ;;  %v1439_v27 = vpack.c.bf16 %v4908_v37, %v4908_v37  ;;  %v5039_v37 = vld [vmem:[%s6625_s2 + $0xac] ss:$16 sps:$4 sm:$0xff]  }
 0x249   :  { %v1423_v17 = vadd.f32 1.0, %v3473_v35  ;;  %v3475_v33 = vpop.eup %3474  ;;  %v4949_v35 = vld [vmem:[%s6625_s2 + $0x20] ss:$16 sps:$4 sm:$0xff]   ;;  %7183 = vst [vmem:[#allocation13_spill] sm:$0xff] %v5039_v37 }
 0x24a   :  { %v1424_v28 = vadd.f32 1.0, %v3475_v33  ;;  %1472 = vmatprep.mubr.bf16.mxu0 %v1439_v27  ;;  %1513 = vmatprep.mubr.bf16.mxu1 %v1439_v27  ;;  %v3477_v23 = vpop.eup %3476  ;;  %v4961_v27 = vld [vmem:[%s6625_s2 + $0x44] ss:$16 sps:$4 sm:$0xff]   ;;  %v4967_v33 = vld [vmem:[%s6625_s2 + $0x4c] ss:$16 sps:$4 sm:$0xff]  }
 0x24b   :  { %3480 = vrcp.f32 %v1423_v17  ;;  %v3479_v36 = vpop.eup %3478  ;;  %v4955_v17 = vld [vmem:[%s6625_s2 + $0x28] ss:$16 sps:$4 sm:$0xff]  }
 0x24c   :  { %3482 = vrcp.f32 %v1424_v28  ;;  %v1425_v20 = vadd.f32 1.0, %v3479_v36  ;;  %v4973_v28 = vld [vmem:[%s6625_s2 + $0x40] ss:$16 sps:$4 sm:$0xff]   ;;  %v4985_v36 = vld [vmem:[%s6625_s2 + $0x64] ss:$16 sps:$4 sm:$0xff]  }
 0x24e   :  { %3484 = vrcp.f32 %v1425_v20  ;;  %v5009_v20 = vld [vmem:[%s6625_s2 + $0x84] ss:$16 sps:$4 sm:$0xff]  }
 0x255   :  { %v3481_v34 = vpop.eup %3480 }
 0x256   :  { %v1434_v19 = vmul.f32 %v3481_v34, %v3477_v23  ;;  %v3483_v29 = vpop.eup %3482  ;;  %v4979_v23 = vld [vmem:[%s6625_s2 + $0x48] ss:$16 sps:$4 sm:$0xff]   ;;  %v4991_v34 = vld [vmem:[%s6625_s2 + $0x6c] ss:$16 sps:$4 sm:$0xff]  }
 0x257   :  { %v1433_v44 = vmul.f32 %v3483_v29, %v4764_v21  ;;  %v4929_v21 = vld [vmem:[%s6625_s2 + $0x8] ss:$16 sps:$4 sm:$0xff]  }
 0x258   :  { %v3485_v62 = vpop.eup %3484  ;;  %v5003_v29 = vld [vmem:[%s6625_s2 + $0x68] ss:$16 sps:$4 sm:$0xff]  }
 0x259   :  { %v4913_v22 = vadd.f32 %v1434_v19, %v1433_v44  ;;  %v4997_v19 = vld [vmem:[%s6625_s2 + $0x60] ss:$16 sps:$4 sm:$0xff]   ;;  %v5015_v44 = vld [vmem:[%s6625_s2 + $0x8c] ss:$16 sps:$4 sm:$0xff]  }
 0x25b   :  { %3486 = vtanh.f32 %v4913_v22 }
 0x265   :  { %v3487_v30 = vpop.eup %3486 }
 0x266   :  { %v1437_v6 = vmul.f32 %v3487_v30, %v3485_v62  ;;  %v5021_v62 = vld [vmem:[%s6625_s2 + $0x80] ss:$16 sps:$4 sm:$0xff]   ;;  %v5027_v30 = vld [vmem:[%s6625_s2 + $0x88] ss:$16 sps:$4 sm:$0xff]  }
 0x267   :  { %7180 = vst [vmem:[#allocation10_spill] sm:$0xff] %v5021_v62  ;;  %7181 = vst [vmem:[#allocation11_spill] sm:$0xff] %v5027_v30 }
 0x268   :  { %v4916_v32 = vpack.c.bf16 %v1437_v6, %v1437_v6  ;;  %v5033_v6 = vld [vmem:[%s6625_s2 + $0xa4] ss:$16 sps:$4 sm:$0xff]  }
 0x269   :  { %7182 = vst [vmem:[#allocation12_spill] sm:$0xff] %v5033_v6 }
 0x26a   :  { %1473 = vmatmul.mubr.bf16.vlgmr.msra.gmra.mrb[28].mxu0 %v4916_v32  ;;  %1514 = vmatmul.mubr.bf16.vlgmr.msra.gmra.mrb[28].mxu1 %v4916_v32 }
 0x26b   :  { %1553 = vmatpush1.bf16.msra.mxu0 %v4923_v38  ;;  %1594 = vmatpush1.bf16.msra.mxu1 %v4929_v21 }
 0x26c   :  { %1554 = vmatprep.subr.bf16.mxu0 %v4935_v18  ;;  %1595 = vmatprep.subr.bf16.mxu1 %v4941_v24 }
 0x26d   :  { %1584 = vmatprep.mubr.bf16.mxu0 %v7108_v31  ;;  %1625 = vmatprep.mubr.bf16.mxu1 %v7108_v31 }
 0x26f   :  { %1555 = vmatpush1.bf16.msra.mxu0 %v4949_v35  ;;  %1596 = vmatpush1.bf16.msra.mxu1 %v4955_v17 }
 0x270   :  { %1556 = vmatprep.subr.bf16.mxu0 %v4961_v27  ;;  %1597 = vmatprep.subr.bf16.mxu1 %v4967_v33 }
 0x273   :  { %1557 = vmatpush1.bf16.msra.mxu0 %v4973_v28  ;;  %1598 = vmatpush1.bf16.msra.mxu1 %v4979_v23 }
 0x274   :  { %1558 = vmatprep.subr.bf16.mxu0 %v4985_v36  ;;  %1599 = vmatprep.subr.bf16.mxu1 %v4991_v34 }
 0x277   :  { %1559 = vmatpush1.bf16.msra.mxu0 %v4997_v19  ;;  %1600 = vmatpush1.bf16.msra.mxu1 %v5003_v29 }
 0x278   :  { %1560 = vmatprep.subr.bf16.mxu0 %v5009_v20  ;;  %1601 = vmatprep.subr.bf16.mxu1 %v5015_v44 }
 0x27b   :  { %1561 = vmatpush1.bf16.msra.mxu0 %v5021_v62  ;;  %1602 = vmatpush1.bf16.msra.mxu1 %v5027_v30  ;;  %v5045_v62 = vld [vmem:[%s6625_s2 + $0xa0] ss:$16 sps:$4 sm:$0xff]   ;;  %v5051_v30 = vld [vmem:[%s6625_s2 + $0xa8] ss:$16 sps:$4 sm:$0xff]  }
 0x27c   :  { %1562 = vmatprep.subr.bf16.mxu0 %v5033_v6  ;;  %1603 = vmatprep.subr.bf16.mxu1 %v5039_v37  ;;  %7184 = vst [vmem:[#allocation14_spill] sm:$0xff] %v5045_v62  ;;  %7185 = vst [vmem:[#allocation15_spill] sm:$0xff] %v5051_v30  ;;  %v5057_v6 = vld [vmem:[%s6625_s2 + $0xc4] ss:$16 sps:$4 sm:$0xff]   ;;  %v5063_v37 = vld [vmem:[%s6625_s2 + $0xcc] ss:$16 sps:$4 sm:$0xff]  }
 0x27d   :  { %7186 = vst [vmem:[#allocation16_spill] sm:$0xff] %v5057_v6  ;;  %7187 = vst [vmem:[#allocation17_spill] sm:$0xff] %v5063_v37 }
 0x27f   :  { %1563 = vmatpush1.bf16.msra.mxu0 %v5045_v62  ;;  %1604 = vmatpush1.bf16.msra.mxu1 %v5051_v30  ;;  %v5069_v62 = vld [vmem:[%s6625_s2 + $0xc0] ss:$16 sps:$4 sm:$0xff]   ;;  %v5075_v30 = vld [vmem:[%s6625_s2 + $0xc8] ss:$16 sps:$4 sm:$0xff]  }
 0x280   :  { %1564 = vmatprep.subr.bf16.mxu0 %v5057_v6  ;;  %1605 = vmatprep.subr.bf16.mxu1 %v5063_v37  ;;  %7188 = vst [vmem:[#allocation18_spill] sm:$0xff] %v5069_v62  ;;  %7189 = vst [vmem:[#allocation19_spill] sm:$0xff] %v5075_v30  ;;  %v5081_v6 = vld [vmem:[%s6625_s2 + $0xe4] ss:$16 sps:$4 sm:$0xff]   ;;  %v5087_v37 = vld [vmem:[%s6625_s2 + $0xec] ss:$16 sps:$4 sm:$0xff]  }
 0x281   :  { %7190 = vst [vmem:[#allocation20_spill] sm:$0xff] %v5081_v6  ;;  %7191 = vst [vmem:[#allocation21_spill] sm:$0xff] %v5087_v37 }
 0x283   :  { %1565 = vmatpush1.bf16.msra.mxu0 %v5069_v62  ;;  %1606 = vmatpush1.bf16.msra.mxu1 %v5075_v30  ;;  %v5093_v62 = vld [vmem:[%s6625_s2 + $0xe0] ss:$16 sps:$4 sm:$0xff]   ;;  %v5099_v30 = vld [vmem:[%s6625_s2 + $0xe8] ss:$16 sps:$4 sm:$0xff]  }
 0x284   :  { %1566 = vmatprep.subr.bf16.mxu0 %v5081_v6  ;;  %1607 = vmatprep.subr.bf16.mxu1 %v5087_v37  ;;  %7192 = vst [vmem:[#allocation22_spill] sm:$0xff] %v5099_v30  ;;  %v5105_v6 = vld [vmem:[%s6627_s6 + $0x4] ss:$16 sps:$4 sm:$0xff]   ;;  %v5111_v37 = vld [vmem:[%s6627_s6 + $0xc] ss:$16 sps:$4 sm:$0xff]  }
 0x285   :  { %7193 = vst [vmem:[#allocation23_spill] sm:$0xff] %v5105_v6  ;;  %7194 = vst [vmem:[#allocation24_spill] sm:$0xff] %v5111_v37 }
 0x287   :  { %1567 = vmatpush1.bf16.msra.mxu0 %v5093_v62  ;;  %1608 = vmatpush1.bf16.msra.mxu1 %v5099_v30  ;;  %v5119_v30 = vld [vmem:[%s6627_s6] ss:$16 sps:$4 sm:$0xff]  }
 0x288   :  { %1664 = vmatprep.subr.bf16.mxu0 %v5105_v6  ;;  %1705 = vmatprep.subr.bf16.mxu1 %v5111_v37  ;;  %7195 = vst [vmem:[#allocation25_spill] sm:$0xff] %v5119_v30  ;;  %v5125_v6 = vld [vmem:[%s6627_s6 + $0x8] ss:$16 sps:$4 sm:$0xff]   ;;  %v5131_v37 = vld [vmem:[%s6627_s6 + $0x24] ss:$16 sps:$4 sm:$0xff]  }
 0x289   :  { %7196 = vst [vmem:[#allocation26_spill] sm:$0xff] %v5125_v6  ;;  %7197 = vst [vmem:[#allocation27_spill] sm:$0xff] %v5131_v37 }
 0x28a   :  { %1585 = vmatmul.mubr.bf16.vlgmr.msra.gmra.mrb[32].mxu0 %v4916_v32  ;;  %1626 = vmatmul.mubr.bf16.vlgmr.msra.gmra.mrb[32].mxu1 %v4916_v32  ;;  %v5137_v32 = vld [vmem:[%s6627_s6 + $0x2c] ss:$16 sps:$4 sm:$0xff]  }
 0x28b   :  { %1665 = vmatpush1.bf16.msra.mxu0 %v5119_v30  ;;  %1706 = vmatpush1.bf16.msra.mxu1 %v5125_v6  ;;  %7198 = vst [vmem:[#allocation28_spill] sm:$0xff] %v5137_v32  ;;  %v5143_v30 = vld [vmem:[%s6627_s6 + $0x20] ss:$16 sps:$4 sm:$0xff]   ;;  %v5149_v6 = vld [vmem:[%s6627_s6 + $0x28] ss:$16 sps:$4 sm:$0xff]  }
 0x28c   :  { %1666 = vmatprep.subr.bf16.mxu0 %v5131_v37  ;;  %1707 = vmatprep.subr.bf16.mxu1 %v5137_v32  ;;  %7199 = vst [vmem:[#allocation29_spill] sm:$0xff] %v5143_v30  ;;  %7200 = vst [vmem:[#allocation30_spill] sm:$0xff] %v5149_v6  ;;  %v5155_v37 = vld [vmem:[%s6627_s6 + $0x44] ss:$16 sps:$4 sm:$0xff]   ;;  %v5161_v32 = vld [vmem:[%s6627_s6 + $0x4c] ss:$16 sps:$4 sm:$0xff]  }
 0x28d   :  { %7201 = vst [vmem:[#allocation31_spill] sm:$0xff] %v5161_v32 }
 0x28f   :  { %1667 = vmatpush1.bf16.msra.mxu0 %v5143_v30  ;;  %1708 = vmatpush1.bf16.msra.mxu1 %v5149_v6  ;;  %v5167_v30 = vld [vmem:[%s6627_s6 + $0x40] ss:$16 sps:$4 sm:$0xff]   ;;  %v5173_v6 = vld [vmem:[%s6627_s6 + $0x48] ss:$16 sps:$4 sm:$0xff]  }
 0x290   :  { %1668 = vmatprep.subr.bf16.mxu0 %v5155_v37  ;;  %1709 = vmatprep.subr.bf16.mxu1 %v5161_v32  ;;  %7202 = vst [vmem:[#allocation32_spill] sm:$0xff] %v5167_v30  ;;  %7203 = vst [vmem:[#allocation33_spill] sm:$0xff] %v5173_v6 }
 0x293   :  { %1669 = vmatpush1.bf16.msra.mxu0 %v5167_v30  ;;  %1710 = vmatpush1.bf16.msra.mxu1 %v5173_v6 }
 0x294   :  { %1670 = vmatprep.subr.bf16.mxu0 %v7112_v39  ;;  %1711 = vmatprep.subr.bf16.mxu1 %v7113_v40  ;;  %v7204_v39 = vld [vmem:[#allocation46_spill] sm:$0xff]  ;;  %v7205_v40 = vld [vmem:[#allocation47_spill] sm:$0xff] }
 0x297   :  { %1671 = vmatpush1.bf16.msra.mxu0 %v7114_v41  ;;  %1712 = vmatpush1.bf16.msra.mxu1 %v7115_v42  ;;  %v7206_v41 = vld [vmem:[#allocation48_spill] sm:$0xff]  ;;  %v7207_v42 = vld [vmem:[#allocation49_spill] sm:$0xff] }
 0x298   :  { %1672 = vmatprep.subr.bf16.mxu0 %v7116_v43  ;;  %1713 = vmatprep.subr.bf16.mxu1 %v7117_v45  ;;  %v7208_v43 = vld [vmem:[#allocation50_spill] sm:$0xff]  ;;  %v7209_v45 = vld [vmem:[#allocation51_spill] sm:$0xff] }
 0x29b   :  { %1673 = vmatpush1.bf16.msra.mxu0 %v7118_v46  ;;  %1714 = vmatpush1.bf16.msra.mxu1 %v7119_v47  ;;  %v7210_v46 = vld [vmem:[#allocation52_spill] sm:$0xff]  ;;  %v7211_v47 = vld [vmem:[#allocation53_spill] sm:$0xff] }
 0x29c   :  { %1674 = vmatprep.subr.bf16.mxu0 %v7120_v48  ;;  %1715 = vmatprep.subr.bf16.mxu1 %v7121_v49  ;;  %v7212_v48 = vld [vmem:[#allocation54_spill] sm:$0xff]  ;;  %v7213_v49 = vld [vmem:[#allocation55_spill] sm:$0xff] }
 0x29f   :  { %1675 = vmatpush1.bf16.msra.mxu0 %v7122_v50  ;;  %1716 = vmatpush1.bf16.msra.mxu1 %v7123_v51  ;;  %v7214_v50 = vld [vmem:[#allocation56_spill] sm:$0xff]  ;;  %v7215_v51 = vld [vmem:[#allocation57_spill] sm:$0xff] }
 0x2a0   :  { %1676 = vmatprep.subr.bf16.mxu0 %v7124_v52  ;;  %1717 = vmatprep.subr.bf16.mxu1 %v7125_v54  ;;  %v7216_v52 = vld [vmem:[#allocation3_spill] sm:$0xff]  ;;  %v7217_v54 = vld [vmem:[#allocation4_spill] sm:$0xff] }
 0x2a3   :  { %1677 = vmatpush1.bf16.msra.mxu0 %v7126_v55  ;;  %1718 = vmatpush1.bf16.msra.mxu1 %v7127_v56 }
 0x2a4   :  { %1678 = vmatprep.subr.bf16.mxu0 %v7128_v57  ;;  %1719 = vmatprep.subr.bf16.mxu1 %v7129_v58  ;;  %v7218_v57 = vld [vmem:[#allocation5_spill] sm:$0xff] }
 0x2a7   :  { %1679 = vmatpush1.bf16.msra.mxu0 %v7130_v59  ;;  %1720 = vmatpush1.bf16.msra.mxu1 %v7131_v60 }
 0x2a8   :  { %1680 = vmatprep.subr.bf16.mxu0 %v7132_v61  ;;  %1721 = vmatprep.subr.bf16.mxu1 %v7133_v63  ;;  %v7219_v61 = vld [vmem:[#allocation6_spill] sm:$0xff] }
 0x2ab   :  { %1681 = vmatpush1.bf16.msra.mxu0 %v7134_v0  ;;  %1722 = vmatpush1.bf16.msra.mxu1 %v7135_v2 }
 0x2ac   :  { %1682 = vmatprep.subr.bf16.mxu0 %v7136_v3  ;;  %1723 = vmatprep.subr.bf16.mxu1 %v7137_v4 }
 0x2af   :  { %1683 = vmatpush1.bf16.msra.mxu0 %v7138_v5  ;;  %1724 = vmatpush1.bf16.msra.mxu1 %v7139_v8 }
 0x2b0   :  { %1684 = vmatprep.subr.bf16.mxu0 %v7140_v9  ;;  %1725 = vmatprep.subr.bf16.mxu1 %v7141_v10  ;;  %v7220_v9 = vld [vmem:[#allocation7_spill] sm:$0xff] }
 0x2b3   :  { %1685 = vmatpush1.bf16.msra.mxu0 %v7142_v11  ;;  %1726 = vmatpush1.bf16.msra.mxu1 %v7143_v12  ;;  %v7221_v11 = vld [vmem:[#allocation8_spill] sm:$0xff] }
 0x2b4   :  { %1686 = vmatprep.subr.bf16.mxu0 %v7144_v13  ;;  %1727 = vmatprep.subr.bf16.mxu1 %v7145_v14 }
 0x2b7   :  { %1687 = vmatpush1.bf16.msra.mxu0 %v7146_v15  ;;  %1728 = vmatpush1.bf16.msra.mxu1 %v7147_v16 }
 0x2b8   :  { %1688 = vmatprep.subr.bf16.mxu0 %v7148_v26  ;;  %1729 = vmatprep.subr.bf16.mxu1 %v7149_v25 }
 0x2bb   :  { %1689 = vmatpush1.bf16.msra.mxu0 %v7150_v53  ;;  %1730 = vmatpush1.bf16.msra.mxu1 %v7151_v1 }
 0x2bc   :  { %1690 = vmatprep.subr.bf16.mxu0 %v7204_v39  ;;  %1731 = vmatprep.subr.bf16.mxu1 %v7205_v40 }
 0x2bf   :  { %1691 = vmatpush1.bf16.msra.mxu0 %v7206_v41  ;;  %1732 = vmatpush1.bf16.msra.mxu1 %v7207_v42 }
 0x2c0   :  { %1692 = vmatprep.subr.bf16.mxu0 %v7208_v43  ;;  %1733 = vmatprep.subr.bf16.mxu1 %v7209_v45 }
 0x2c3   :  { %1693 = vmatpush1.bf16.msra.mxu0 %v7210_v46  ;;  %1734 = vmatpush1.bf16.msra.mxu1 %v7211_v47  ;;  %v7222_v47 = vld [vmem:[#allocation63_spill] sm:$0xff] }
 0x2c4   :  { %1694 = vmatprep.subr.bf16.mxu0 %v7212_v48  ;;  %1735 = vmatprep.subr.bf16.mxu1 %v7213_v49  ;;  %v7223_v49 = vld [vmem:[#allocation64_spill] sm:$0xff] }
 0x2c7   :  { %1695 = vmatpush1.bf16.msra.mxu0 %v7214_v50  ;;  %1736 = vmatpush1.bf16.msra.mxu1 %v7215_v51 }
 0x2c8   :  { %1776 = vmatprep.subr.bf16.mxu0 %v7216_v52  ;;  %1817 = vmatprep.subr.bf16.mxu1 %v7217_v54 }
 0x33d   :  { %v1474_v55 = vpop.f32.mrb[28].mxu0  ;;  %v1515_v56 = vpop.f32.mrb[28].mxu1 }
 0x33e   :  { %v1475_v58 = vadd.f32 %v1474_v55, %v7218_v57  ;;  %v1476_v59 = vpop.f32.mrb[29].mxu0  ;;  %v1517_v60 = vpop.f32.mrb[29].mxu1  ;;  %v1516_v10 = vadd.f32 %v1515_v56, %v7220_v9  ;;  %v7224_v56 = vld [vmem:[#allocation65_spill] sm:$0xff] }
 0x33f   :  { %v1477_v63 = vadd.f32 %v1476_v59, %v7219_v61  ;;  %v1478_v0 = vpop.f32.mrb[30].mxu0  ;;  %v1519_v2 = vpop.f32.mrb[30].mxu1  ;;  %v1518_v12 = vadd.f32 %v1517_v60, %v7221_v11  ;;  %v7225_v59 = vld [vmem:[#allocation66_spill] sm:$0xff] }
 0x340   :  { %v3155_v3 = vmul.f32 -1.442695, %v1475_v58  ;;  %v1479_v4 = vpop.f32.mrb[31].mxu0  ;;  %v1520_v5 = vpop.f32.mrb[31].mxu1  ;;  %v3157_v13 = vmul.f32 -1.442695, %v1516_v10 }
 0x341   :  { %v3156_v8 = vmul.f32 -1.442695, %v1477_v63 }
 0x342   :  { %3488 = vpow2.f32 %v3155_v3 }
 0x343   :  { %3490 = vpow2.f32 %v3156_v8 }
 0x344   :  { %3492 = vtanh.f32 %v1518_v12 }
 0x345   :  { %3494 = vpow2.f32 %v3157_v13 }
 0x34c   :  { %v3489_v14 = vpop.eup %3488 }
 0x34d   :  { %v1531_v15 = vadd.f32 1.0, %v3489_v14  ;;  %v3491_v16 = vpop.eup %3490 }
 0x34e   :  { %v1532_v26 = vadd.f32 1.0, %v3491_v16  ;;  %v3493_v25 = vpop.eup %3492 }
 0x34f   :  { %3496 = vrcp.f32 %v1531_v15  ;;  %v3495_v53 = vpop.eup %3494 }
 0x350   :  { %3498 = vrcp.f32 %v1532_v26  ;;  %v1533_v41 = vadd.f32 1.0, %v3495_v53 }
 0x352   :  { %3500 = vrcp.f32 %v1533_v41 }
 0x359   :  { %v3497_v1 = vpop.eup %3496 }
 0x35a   :  { %v1542_v39 = vmul.f32 %v3497_v1, %v3493_v25  ;;  %v3499_v40 = vpop.eup %3498 }
 0x35b   :  { %v1541_v42 = vmul.f32 %v3499_v40, %v4901_v7 }
 0x35c   :  { %v3501_v5 = vpop.eup %3500 }
 0x35d   :  { %v1586_v43 = vpop.f32.mrb[32].mxu0  ;;  %v1627_v45 = vpop.f32.mrb[32].mxu1  ;;  %v5235_v46 = vadd.f32 %v1542_v39, %v1541_v42 }
 0x35e   :  { %v1634_v48 = vadd.f32 %v1586_v43, %v7222_v47  ;;  %v1636_v50 = vadd.f32 %v1627_v45, %v7223_v49  ;;  %v1588_v51 = vpop.f32.mrb[33].mxu0  ;;  %v1629_v55 = vpop.f32.mrb[33].mxu1 }
 0x35f   :  { %v1635_v58 = vadd.f32 %v1588_v51, %v7224_v56  ;;  %v1637_v60 = vadd.f32 %v1629_v55, %v7225_v59  ;;  %v1590_v63 = vpop.f32.mrb[34].mxu0  ;;  %v1631_v0 = vpop.f32.mrb[34].mxu1  ;;  %3502 = vtanh.f32 %v5235_v46  ;;  %v7228_v51 = vld [vmem:[#allocation12_spill] sm:$0xff]  ;;  %v7229_v55 = vld [vmem:[#allocation13_spill] sm:$0xff]  ;;  %v7230_v56 = vld [vmem:[#allocation14_spill] sm:$0xff] }
 0x360   :  { %v3158_v7 = vmul.f32 -1.442695, %v1634_v48  ;;  %v1591_v2 = vpop.f32.mrb[35].mxu0  ;;  %v1632_v3 = vpop.f32.mrb[35].mxu1  ;;  %v3160_v10 = vmul.f32 -1.442695, %v1636_v50 }
 0x361   :  { %v3159_v4 = vmul.f32 -1.442695, %v1635_v58  ;;  %v7227_v50 = vld [vmem:[#allocation11_spill] sm:$0xff]  ;;  %v7232_v59 = vld [vmem:[#allocation16_spill] sm:$0xff]  ;;  %v7234_v63 = vld [vmem:[#allocation18_spill] sm:$0xff] }
 0x362   :  { %3504 = vpow2.f32 %v3158_v7  ;;  %v7231_v58 = vld [vmem:[#allocation15_spill] sm:$0xff]  ;;  %v7236_v7 = vld [vmem:[#allocation20_spill] sm:$0xff]  ;;  %v7237_v2 = vld [vmem:[#allocation21_spill] sm:$0xff] }
 0x363   :  { %3506 = vpow2.f32 %v3159_v4  ;;  %v7235_v0 = vld [vmem:[#allocation19_spill] sm:$0xff]  ;;  %v7238_v3 = vld [vmem:[#allocation22_spill] sm:$0xff] }
 0x364   :  { %3508 = vtanh.f32 %v1637_v60  ;;  %v7233_v60 = vld [vmem:[#allocation17_spill] sm:$0xff]  ;;  %v7239_v4 = vld [vmem:[#allocation23_spill] sm:$0xff] }
 0x365   :  { %3510 = vpow2.f32 %v3160_v10  ;;  %v7242_v10 = vld [vmem:[#allocation26_spill] sm:$0xff] }
 0x369   :  { %v3503_v8 = vpop.eup %3502 }
 0x36a   :  { %v5242_v12 = vmul.f32 %v3503_v8, %v3501_v5  ;;  %v7240_v5 = vld [vmem:[#allocation24_spill] sm:$0xff]  ;;  %v7241_v8 = vld [vmem:[#allocation25_spill] sm:$0xff] }
 0x36c   :  { %v3505_v13 = vpop.eup %3504  ;;  %v1663_v15 = vpack.c.bf16 %v5242_v12, %v5242_v12 }
 0x36d   :  { %v1647_v14 = vadd.f32 1.0, %v3505_v13  ;;  %v3507_v16 = vpop.eup %3506  ;;  %v7243_v13 = vld [vmem:[#allocation27_spill] sm:$0xff] }
 0x36e   :  { %v1648_v26 = vadd.f32 1.0, %v3507_v16  ;;  %1696 = vmatprep.mubr.bf16.mxu0 %v1663_v15  ;;  %1737 = vmatprep.mubr.bf16.mxu1 %v1663_v15  ;;  %v3509_v25 = vpop.eup %3508  ;;  %v7245_v15 = vld [vmem:[#allocation29_spill] sm:$0xff]  ;;  %v7246_v16 = vld [vmem:[#allocation30_spill] sm:$0xff] }
 0x36f   :  { %3512 = vrcp.f32 %v1647_v14  ;;  %v3511_v53 = vpop.eup %3510  ;;  %v7244_v14 = vld [vmem:[#allocation28_spill] sm:$0xff] }
 0x370   :  { %3514 = vrcp.f32 %v1648_v26  ;;  %v1649_v41 = vadd.f32 1.0, %v3511_v53  ;;  %v5297_v26 = vld [vmem:[%s6627_s6 + $0x64] ss:$16 sps:$4 sm:$0xff]   ;;  %v5309_v53 = vld [vmem:[%s6627_s6 + $0x60] ss:$16 sps:$4 sm:$0xff]  }
 0x371   :  { %7247 = vst [vmem:[#allocation34_spill] sm:$0xff] %v5297_v26  ;;  %7249 = vst [vmem:[#allocation36_spill] sm:$0xff] %v5309_v53 }
 0x372   :  { %3516 = vrcp.f32 %v1649_v41  ;;  %v5333_v41 = vld [vmem:[%s6627_s6 + $0x80] ss:$16 sps:$4 sm:$0xff]  }
 0x373   :  { %7253 = vst [vmem:[#allocation40_spill] sm:$0xff] %v5333_v41 }
 0x379   :  { %v3513_v1 = vpop.eup %3512 }
 0x37a   :  { %v1658_v39 = vmul.f32 %v3513_v1, %v3509_v25  ;;  %v3515_v40 = vpop.eup %3514  ;;  %v5303_v25 = vld [vmem:[%s6627_s6 + $0x6c] ss:$16 sps:$4 sm:$0xff]   ;;  %v5315_v1 = vld [vmem:[%s6627_s6 + $0x68] ss:$16 sps:$4 sm:$0xff]  }
 0x37b   :  { %v1657_v42 = vmul.f32 %v3515_v40, %v4913_v22  ;;  %v7226_v22 = vld [vmem:[#allocation10_spill] sm:$0xff]  ;;  %7248 = vst [vmem:[#allocation35_spill] sm:$0xff] %v5303_v25  ;;  %7250 = vst [vmem:[#allocation37_spill] sm:$0xff] %v5315_v1 }
 0x37c   :  { %v3517_v45 = vpop.eup %3516  ;;  %v5327_v40 = vld [vmem:[%s6627_s6 + $0x8c] ss:$16 sps:$4 sm:$0xff]  }
 0x37d   :  { %v5247_v43 = vadd.f32 %v1658_v39, %v1657_v42  ;;  %v5321_v39 = vld [vmem:[%s6627_s6 + $0x84] ss:$16 sps:$4 sm:$0xff]   ;;  %7252 = vst [vmem:[#allocation39_spill] sm:$0xff] %v5327_v40  ;;  %v5339_v42 = vld [vmem:[%s6627_s6 + $0x88] ss:$16 sps:$4 sm:$0xff]  }
 0x37e   :  { %7251 = vst [vmem:[#allocation38_spill] sm:$0xff] %v5321_v39  ;;  %7254 = vst [vmem:[#allocation41_spill] sm:$0xff] %v5339_v42 }
 0x37f   :  { %3518 = vtanh.f32 %v5247_v43 }
 0x389   :  { %v3519_v47 = vpop.eup %3518 }
 0x38a   :  { %v1661_v48 = vmul.f32 %v3519_v47, %v3517_v45  ;;  %v5345_v45 = vld [vmem:[%s6627_s6 + $0xa4] ss:$16 sps:$4 sm:$0xff]   ;;  %v5351_v47 = vld [vmem:[%s6627_s6 + $0xac] ss:$16 sps:$4 sm:$0xff]  }
 0x38b   :  { %7255 = vst [vmem:[#allocation42_spill] sm:$0xff] %v5345_v45  ;;  %7256 = vst [vmem:[#allocation43_spill] sm:$0xff] %v5351_v47 }
 0x38c   :  { %v1662_v49 = vpack.c.bf16 %v1661_v48, %v1661_v48  ;;  %v5357_v48 = vld [vmem:[%s6627_s6 + $0xa0] ss:$16 sps:$4 sm:$0xff]  }
 0x38d   :  { %7257 = vst [vmem:[#allocation44_spill] sm:$0xff] %v5357_v48 }
 0x38e   :  { %1697 = vmatmul.mubr.bf16.vlgmr.msra.gmra.mrb[36].mxu0 %v1662_v49  ;;  %1738 = vmatmul.mubr.bf16.vlgmr.msra.gmra.mrb[36].mxu1 %v1662_v49 }
 0x38f   :  { %1777 = vmatpush1.bf16.msra.mxu0 %v4923_v38  ;;  %1818 = vmatpush1.bf16.msra.mxu1 %v4929_v21 }
 0x390   :  { %1778 = vmatprep.subr.bf16.mxu0 %v4935_v18  ;;  %1819 = vmatprep.subr.bf16.mxu1 %v4941_v24 }
 0x391   :  { %1808 = vmatprep.mubr.bf16.mxu0 %v7108_v31  ;;  %1849 = vmatprep.mubr.bf16.mxu1 %v7108_v31 }
 0x393   :  { %1779 = vmatpush1.bf16.msra.mxu0 %v4949_v35  ;;  %1820 = vmatpush1.bf16.msra.mxu1 %v4955_v17 }
 0x394   :  { %1780 = vmatprep.subr.bf16.mxu0 %v4961_v27  ;;  %1821 = vmatprep.subr.bf16.mxu1 %v4967_v33 }
 0x397   :  { %1781 = vmatpush1.bf16.msra.mxu0 %v4973_v28  ;;  %1822 = vmatpush1.bf16.msra.mxu1 %v4979_v23 }
 0x398   :  { %1782 = vmatprep.subr.bf16.mxu0 %v4985_v36  ;;  %1823 = vmatprep.subr.bf16.mxu1 %v4991_v34 }
 0x39b   :  { %1783 = vmatpush1.bf16.msra.mxu0 %v4997_v19  ;;  %1824 = vmatpush1.bf16.msra.mxu1 %v5003_v29 }
 0x39c   :  { %1784 = vmatprep.subr.bf16.mxu0 %v5009_v20  ;;  %1825 = vmatprep.subr.bf16.mxu1 %v5015_v44 }
 0x39f   :  { %1785 = vmatpush1.bf16.msra.mxu0 %v7226_v22  ;;  %1826 = vmatpush1.bf16.msra.mxu1 %v7227_v50 }
 0x3a0   :  { %1786 = vmatprep.subr.bf16.mxu0 %v7228_v51  ;;  %1827 = vmatprep.subr.bf16.mxu1 %v7229_v55 }
 0x3a3   :  { %1787 = vmatpush1.bf16.msra.mxu0 %v7230_v56  ;;  %1828 = vmatpush1.bf16.msra.mxu1 %v7231_v58 }
 0x3a4   :  { %1788 = vmatprep.subr.bf16.mxu0 %v7232_v59  ;;  %1829 = vmatprep.subr.bf16.mxu1 %v7233_v60 }
 0x3a7   :  { %1789 = vmatpush1.bf16.msra.mxu0 %v7234_v63  ;;  %1830 = vmatpush1.bf16.msra.mxu1 %v7235_v0 }
 0x3a8   :  { %1790 = vmatprep.subr.bf16.mxu0 %v7236_v7  ;;  %1831 = vmatprep.subr.bf16.mxu1 %v7237_v2 }
 0x3ab   :  { %1791 = vmatpush1.bf16.msra.mxu0 %v5093_v62  ;;  %1832 = vmatpush1.bf16.msra.mxu1 %v7238_v3 }
 0x3ac   :  { %1888 = vmatprep.subr.bf16.mxu0 %v7239_v4  ;;  %1929 = vmatprep.subr.bf16.mxu1 %v7240_v5 }
 0x3ae   :  { %1809 = vmatmul.mubr.bf16.vlgmr.msra.gmra.mrb[40].mxu0 %v1662_v49  ;;  %1850 = vmatmul.mubr.bf16.vlgmr.msra.gmra.mrb[40].mxu1 %v1662_v49  ;;  %v5363_v49 = vld [vmem:[%s6627_s6 + $0xa8] ss:$16 sps:$4 sm:$0xff]  }
 0x3af   :  { %1889 = vmatpush1.bf16.msra.mxu0 %v7241_v8  ;;  %1930 = vmatpush1.bf16.msra.mxu1 %v7242_v10  ;;  %7258 = vst [vmem:[#allocation45_spill] sm:$0xff] %v5363_v49 }
 0x3b0   :  { %1890 = vmatprep.subr.bf16.mxu0 %v7243_v13  ;;  %1931 = vmatprep.subr.bf16.mxu1 %v7244_v14 }
 0x3b3   :  { %1891 = vmatpush1.bf16.msra.mxu0 %v7245_v15  ;;  %1932 = vmatpush1.bf16.msra.mxu1 %v7246_v16 }
 0x3b4   :  { %1892 = vmatprep.subr.bf16.mxu0 %v5155_v37  ;;  %1933 = vmatprep.subr.bf16.mxu1 %v5161_v32 }
 0x3b7   :  { %1893 = vmatpush1.bf16.msra.mxu0 %v5167_v30  ;;  %1934 = vmatpush1.bf16.msra.mxu1 %v5173_v6 }
 0x3b8   :  { %1894 = vmatprep.subr.bf16.mxu0 %v5297_v26  ;;  %1935 = vmatprep.subr.bf16.mxu1 %v5303_v25 }
 0x3bb   :  { %1895 = vmatpush1.bf16.msra.mxu0 %v5309_v53  ;;  %1936 = vmatpush1.bf16.msra.mxu1 %v5315_v1 }
 0x3bc   :  { %1896 = vmatprep.subr.bf16.mxu0 %v5321_v39  ;;  %1937 = vmatprep.subr.bf16.mxu1 %v5327_v40 }
 0x3bf   :  { %1897 = vmatpush1.bf16.msra.mxu0 %v5333_v41  ;;  %1938 = vmatpush1.bf16.msra.mxu1 %v5339_v42 }
 0x3c0   :  { %1898 = vmatprep.subr.bf16.mxu0 %v5345_v45  ;;  %1939 = vmatprep.subr.bf16.mxu1 %v5351_v47  ;;  %v5369_v45 = vld [vmem:[%s6627_s6 + $0xc4] ss:$16 sps:$4 sm:$0xff]   ;;  %v5375_v47 = vld [vmem:[%s6627_s6 + $0xcc] ss:$16 sps:$4 sm:$0xff]  }
 0x3c1   :  { %7259 = vst [vmem:[#allocation58_spill] sm:$0xff] %v5369_v45  ;;  %7260 = vst [vmem:[#allocation59_spill] sm:$0xff] %v5375_v47 }
 0x3c3   :  { %1899 = vmatpush1.bf16.msra.mxu0 %v5357_v48  ;;  %1940 = vmatpush1.bf16.msra.mxu1 %v5363_v49  ;;  %v5381_v48 = vld [vmem:[%s6627_s6 + $0xc0] ss:$16 sps:$4 sm:$0xff]   ;;  %v5387_v49 = vld [vmem:[%s6627_s6 + $0xc8] ss:$16 sps:$4 sm:$0xff]  }
 0x3c4   :  { %1900 = vmatprep.subr.bf16.mxu0 %v5369_v45  ;;  %1941 = vmatprep.subr.bf16.mxu1 %v5375_v47  ;;  %7261 = vst [vmem:[#allocation60_spill] sm:$0xff] %v5381_v48  ;;  %7262 = vst [vmem:[#allocation61_spill] sm:$0xff] %v5387_v49  ;;  %v5393_v45 = vld [vmem:[%s6627_s6 + $0xe4] ss:$16 sps:$4 sm:$0xff]   ;;  %v5399_v47 = vld [vmem:[%s6627_s6 + $0xec] ss:$16 sps:$4 sm:$0xff]  }
 0x3c5   :  { %7263 = vst [vmem:[#allocation62_spill] sm:$0xff] %v5393_v45  ;;  %7264 = vst [vmem:[#allocation46_spill] sm:$0xff] %v5399_v47 }
 0x3c7   :  { %1901 = vmatpush1.bf16.msra.mxu0 %v5381_v48  ;;  %1942 = vmatpush1.bf16.msra.mxu1 %v5387_v49  ;;  %v5405_v48 = vld [vmem:[%s6627_s6 + $0xe0] ss:$16 sps:$4 sm:$0xff]   ;;  %v5411_v49 = vld [vmem:[%s6627_s6 + $0xe8] ss:$16 sps:$4 sm:$0xff]  }
 0x3c8   :  { %1902 = vmatprep.subr.bf16.mxu0 %v5393_v45  ;;  %1943 = vmatprep.subr.bf16.mxu1 %v5399_v47  ;;  %7265 = vst [vmem:[#allocation47_spill] sm:$0xff] %v5405_v48  ;;  %7266 = vst [vmem:[#allocation48_spill] sm:$0xff] %v5411_v49  ;;  %v5417_v45 = vld [vmem:[%s6627_s6 + $0x104] ss:$16 sps:$4 sm:$0xff]   ;;  %v5423_v47 = vld [vmem:[%s6627_s6 + $0x10c] ss:$16 sps:$4 sm:$0xff]  }
 0x3c9   :  { %7267 = vst [vmem:[#allocation49_spill] sm:$0xff] %v5417_v45  ;;  %7268 = vst [vmem:[#allocation50_spill] sm:$0xff] %v5423_v47 }
 0x3cb   :  { %1903 = vmatpush1.bf16.msra.mxu0 %v5405_v48  ;;  %1944 = vmatpush1.bf16.msra.mxu1 %v5411_v49  ;;  %v5429_v48 = vld [vmem:[%s6627_s6 + $0x100] ss:$16 sps:$4 sm:$0xff]   ;;  %v5435_v49 = vld [vmem:[%s6627_s6 + $0x108] ss:$16 sps:$4 sm:$0xff]  }
 0x3cc   :  { %1904 = vmatprep.subr.bf16.mxu0 %v5417_v45  ;;  %1945 = vmatprep.subr.bf16.mxu1 %v5423_v47  ;;  %7269 = vst [vmem:[#allocation51_spill] sm:$0xff] %v5429_v48  ;;  %7270 = vst [vmem:[#allocation52_spill] sm:$0xff] %v5435_v49  ;;  %v5441_v45 = vld [vmem:[%s6627_s6 + $0x124] ss:$16 sps:$4 sm:$0xff]   ;;  %v5447_v47 = vld [vmem:[%s6627_s6 + $0x12c] ss:$16 sps:$4 sm:$0xff]  }
 0x3cd   :  { %7271 = vst [vmem:[#allocation53_spill] sm:$0xff] %v5441_v45  ;;  %7272 = vst [vmem:[#allocation54_spill] sm:$0xff] %v5447_v47 }
 0x3cf   :  { %1905 = vmatpush1.bf16.msra.mxu0 %v5429_v48  ;;  %1946 = vmatpush1.bf16.msra.mxu1 %v5435_v49  ;;  %v5453_v48 = vld [vmem:[%s6627_s6 + $0x120] ss:$16 sps:$4 sm:$0xff]   ;;  %v5459_v49 = vld [vmem:[%s6627_s6 + $0x128] ss:$16 sps:$4 sm:$0xff]  }
 0x3d0   :  { %1906 = vmatprep.subr.bf16.mxu0 %v5441_v45  ;;  %1947 = vmatprep.subr.bf16.mxu1 %v5447_v47  ;;  %7273 = vst [vmem:[#allocation55_spill] sm:$0xff] %v5453_v48  ;;  %7274 = vst [vmem:[#allocation56_spill] sm:$0xff] %v5459_v49  ;;  %v5465_v45 = vld [vmem:[%s6627_s6 + $0x144] ss:$16 sps:$4 sm:$0xff]   ;;  %v5471_v47 = vld [vmem:[%s6627_s6 + $0x14c] ss:$16 sps:$4 sm:$0xff]  }
 0x3d1   :  { %7275 = vst [vmem:[#allocation57_spill] sm:$0xff] %v5465_v45  ;;  %7276 = vst [vmem:[#allocation3_spill] sm:$0xff] %v5471_v47 }
 0x3d3   :  { %1907 = vmatpush1.bf16.msra.mxu0 %v5453_v48  ;;  %1948 = vmatpush1.bf16.msra.mxu1 %v5459_v49  ;;  %v5477_v48 = vld [vmem:[%s6627_s6 + $0x140] ss:$16 sps:$4 sm:$0xff]   ;;  %v5483_v49 = vld [vmem:[%s6627_s6 + $0x148] ss:$16 sps:$4 sm:$0xff]  }
 0x3d4   :  { %1908 = vmatprep.subr.bf16.mxu0 %v5465_v45  ;;  %1949 = vmatprep.subr.bf16.mxu1 %v5471_v47  ;;  %7277 = vst [vmem:[#allocation4_spill] sm:$0xff] %v5477_v48  ;;  %7278 = vst [vmem:[#allocation5_spill] sm:$0xff] %v5483_v49  ;;  %v5489_v45 = vld [vmem:[%s6627_s6 + $0x164] ss:$16 sps:$4 sm:$0xff]   ;;  %v5495_v47 = vld [vmem:[%s6627_s6 + $0x16c] ss:$16 sps:$4 sm:$0xff]  }
 0x3d5   :  { %7279 = vst [vmem:[#allocation63_spill] sm:$0xff] %v5489_v45  ;;  %7280 = vst [vmem:[#allocation64_spill] sm:$0xff] %v5495_v47 }
 0x3d7   :  { %1909 = vmatpush1.bf16.msra.mxu0 %v5477_v48  ;;  %1950 = vmatpush1.bf16.msra.mxu1 %v5483_v49  ;;  %v5501_v48 = vld [vmem:[%s6627_s6 + $0x160] ss:$16 sps:$4 sm:$0xff]   ;;  %v5507_v49 = vld [vmem:[%s6627_s6 + $0x168] ss:$16 sps:$4 sm:$0xff]  }
 0x3d8   :  { %1910 = vmatprep.subr.bf16.mxu0 %v5489_v45  ;;  %1951 = vmatprep.subr.bf16.mxu1 %v5495_v47  ;;  %7281 = vst [vmem:[#allocation65_spill] sm:$0xff] %v5501_v48  ;;  %7282 = vst [vmem:[#allocation66_spill] sm:$0xff] %v5507_v49  ;;  %v5513_v45 = vld [vmem:[%s6627_s6 + $0x184] ss:$16 sps:$4 sm:$0xff]   ;;  %v5519_v47 = vld [vmem:[%s6627_s6 + $0x18c] ss:$16 sps:$4 sm:$0xff]  }
 0x3d9   :  { %7283 = vst [vmem:[#allocation10_spill] sm:$0xff] %v5513_v45  ;;  %7284 = vst [vmem:[#allocation11_spill] sm:$0xff] %v5519_v47 }
 0x3db   :  { %1911 = vmatpush1.bf16.msra.mxu0 %v5501_v48  ;;  %1952 = vmatpush1.bf16.msra.mxu1 %v5507_v49  ;;  %v5525_v48 = vld [vmem:[%s6627_s6 + $0x180] ss:$16 sps:$4 sm:$0xff]   ;;  %v5531_v49 = vld [vmem:[%s6627_s6 + $0x188] ss:$16 sps:$4 sm:$0xff]  }
 0x3dc   :  { %1912 = vmatprep.subr.bf16.mxu0 %v5513_v45  ;;  %1953 = vmatprep.subr.bf16.mxu1 %v5519_v47  ;;  %7285 = vst [vmem:[#allocation12_spill] sm:$0xff] %v5525_v48  ;;  %7286 = vst [vmem:[#allocation13_spill] sm:$0xff] %v5531_v49  ;;  %v5537_v45 = vld [vmem:[%s6627_s6 + $0x1a4] ss:$16 sps:$4 sm:$0xff]   ;;  %v5543_v47 = vld [vmem:[%s6627_s6 + $0x1ac] ss:$16 sps:$4 sm:$0xff]  }
 0x3dd   :  { %7287 = vst [vmem:[#allocation14_spill] sm:$0xff] %v5537_v45  ;;  %7288 = vst [vmem:[#allocation15_spill] sm:$0xff] %v5543_v47 }
 0x3df   :  { %1913 = vmatpush1.bf16.msra.mxu0 %v5525_v48  ;;  %1954 = vmatpush1.bf16.msra.mxu1 %v5531_v49  ;;  %v5549_v48 = vld [vmem:[%s6627_s6 + $0x1a0] ss:$16 sps:$4 sm:$0xff]   ;;  %v5555_v49 = vld [vmem:[%s6627_s6 + $0x1a8] ss:$16 sps:$4 sm:$0xff]  }
 0x3e0   :  { %1914 = vmatprep.subr.bf16.mxu0 %v5537_v45  ;;  %1955 = vmatprep.subr.bf16.mxu1 %v5543_v47  ;;  %7289 = vst [vmem:[#allocation16_spill] sm:$0xff] %v5549_v48  ;;  %7290 = vst [vmem:[#allocation17_spill] sm:$0xff] %v5555_v49  ;;  %v5561_v45 = vld [vmem:[%s6627_s6 + $0x1c4] ss:$16 sps:$4 sm:$0xff]   ;;  %v5567_v47 = vld [vmem:[%s6627_s6 + $0x1cc] ss:$16 sps:$4 sm:$0xff]  }
 0x3e1   :  { %7291 = vst [vmem:[#allocation18_spill] sm:$0xff] %v5561_v45  ;;  %7292 = vst [vmem:[#allocation19_spill] sm:$0xff] %v5567_v47 }
 0x3e3   :  { %1915 = vmatpush1.bf16.msra.mxu0 %v5549_v48  ;;  %1956 = vmatpush1.bf16.msra.mxu1 %v5555_v49  ;;  %v5573_v48 = vld [vmem:[%s6627_s6 + $0x1c0] ss:$16 sps:$4 sm:$0xff]   ;;  %v5579_v49 = vld [vmem:[%s6627_s6 + $0x1c8] ss:$16 sps:$4 sm:$0xff]  }
 0x3e4   :  { %1916 = vmatprep.subr.bf16.mxu0 %v5561_v45  ;;  %1957 = vmatprep.subr.bf16.mxu1 %v5567_v47  ;;  %7293 = vst [vmem:[#allocation20_spill] sm:$0xff] %v5573_v48  ;;  %7294 = vst [vmem:[#allocation21_spill] sm:$0xff] %v5579_v49  ;;  %v5585_v45 = vld [vmem:[%s6627_s6 + $0x1e4] ss:$16 sps:$4 sm:$0xff]   ;;  %v5591_v47 = vld [vmem:[%s6627_s6 + $0x1ec] ss:$16 sps:$4 sm:$0xff]  }
 0x3e5   :  { %7295 = vst [vmem:[#allocation22_spill] sm:$0xff] %v5585_v45  ;;  %7296 = vst [vmem:[#allocation23_spill] sm:$0xff] %v5591_v47 }
 0x3e7   :  { %1917 = vmatpush1.bf16.msra.mxu0 %v5573_v48  ;;  %1958 = vmatpush1.bf16.msra.mxu1 %v5579_v49  ;;  %v5597_v48 = vld [vmem:[%s6627_s6 + $0x1e0] ss:$16 sps:$4 sm:$0xff]   ;;  %v5603_v49 = vld [vmem:[%s6627_s6 + $0x1e8] ss:$16 sps:$4 sm:$0xff]  }
 0x3e8   :  { %1918 = vmatprep.subr.bf16.mxu0 %v5585_v45  ;;  %1959 = vmatprep.subr.bf16.mxu1 %v5591_v47  ;;  %7297 = vst [vmem:[#allocation24_spill] sm:$0xff] %v5597_v48  ;;  %7298 = vst [vmem:[#allocation25_spill] sm:$0xff] %v5603_v49 }
 0x3eb   :  { %1919 = vmatpush1.bf16.msra.mxu0 %v5597_v48  ;;  %1960 = vmatpush1.bf16.msra.mxu1 %v5603_v49 }
 0x3ec   :  { %2000 = vmatprep.subr.bf16.mxu0 %v7216_v52  ;;  %2041 = vmatprep.subr.bf16.mxu1 %v7217_v54 }
 0x461   :  { %v1698_v45 = vpop.f32.mrb[36].mxu0  ;;  %v1739_v47 = vpop.f32.mrb[36].mxu1 }
 0x462   :  { %v1699_v42 = vadd.f32 %v1698_v45, %v7218_v57  ;;  %v1700_v41 = vpop.f32.mrb[37].mxu0  ;;  %v1741_v40 = vpop.f32.mrb[37].mxu1  ;;  %v1740_v52 = vadd.f32 %v1739_v47, %v7220_v9  ;;  %v7302_v9 = vld [vmem:[#allocation70_spill] sm:$0xff] }
 0x463   :  { %v1701_v39 = vadd.f32 %v1700_v41, %v7219_v61  ;;  %v1702_v48 = vpop.f32.mrb[38].mxu0  ;;  %v1743_v1 = vpop.f32.mrb[38].mxu1  ;;  %v1742_v54 = vadd.f32 %v1741_v40, %v7221_v11 }
 0x464   :  { %v3161_v53 = vmul.f32 -1.442695, %v1699_v42  ;;  %v1703_v25 = vpop.f32.mrb[39].mxu0  ;;  %v1744_v26 = vpop.f32.mrb[39].mxu1  ;;  %v3163_v49 = vmul.f32 -1.442695, %v1740_v52 }
 0x465   :  { %v3162_v6 = vmul.f32 -1.442695, %v1701_v39  ;;  %v7299_v52 = vld [vmem:[#allocation67_spill] sm:$0xff] }
 0x466   :  { %3520 = vpow2.f32 %v3161_v53 }
 0x467   :  { %3522 = vpow2.f32 %v3162_v6 }
 0x468   :  { %3524 = vtanh.f32 %v1742_v54  ;;  %v7300_v54 = vld [vmem:[#allocation68_spill] sm:$0xff] }
 0x469   :  { %3526 = vpow2.f32 %v3163_v49 }
 0x470   :  { %v3521_v30 = vpop.eup %3520 }
 0x471   :  { %v1755_v32 = vadd.f32 1.0, %v3521_v30  ;;  %v3523_v45 = vpop.eup %3522 }
 0x472   :  { %v1756_v41 = vadd.f32 1.0, %v3523_v45  ;;  %v3525_v1 = vpop.eup %3524  ;;  %v7301_v45 = vld [vmem:[#allocation69_spill] sm:$0xff] }
 0x473   :  { %3528 = vrcp.f32 %v1755_v32  ;;  %v3527_v42 = vpop.eup %3526 }
 0x474   :  { %3530 = vrcp.f32 %v1756_v41  ;;  %v1757_v53 = vadd.f32 1.0, %v3527_v42 }
 0x476   :  { %3532 = vrcp.f32 %v1757_v53 }
 0x47d   :  { %v3529_v25 = vpop.eup %3528 }
 0x47e   :  { %v1766_v26 = vmul.f32 %v3529_v25, %v3525_v1  ;;  %v3531_v39 = vpop.eup %3530 }
 0x47f   :  { %v1765_v6 = vmul.f32 %v3531_v39, %v5235_v46 }
 0x481   :  { %v1810_v47 = vpop.f32.mrb[40].mxu0  ;;  %v1851_v48 = vpop.f32.mrb[40].mxu1  ;;  %v5613_v40 = vadd.f32 %v1766_v26, %v1765_v6 }
 0x482   :  { %v1858_v30 = vadd.f32 %v1810_v47, %v7299_v52  ;;  %v1860_v11 = vadd.f32 %v1851_v48, %v7300_v54  ;;  %v1812_v49 = vpop.f32.mrb[41].mxu0  ;;  %v1853_v32 = vpop.f32.mrb[41].mxu1  ;;  %v7303_v52 = vld [vmem:[#allocation9_spill] sm:$0xff] }
 0x483   :  { %v1859_v41 = vadd.f32 %v1812_v49, %v7301_v45  ;;  %v1861_v61 = vadd.f32 %v1853_v32, %v7302_v9  ;;  %v1814_v1 = vpop.f32.mrb[42].mxu0  ;;  %v1855_v25 = vpop.f32.mrb[42].mxu1  ;;  %3534 = vtanh.f32 %v5613_v40  ;;  %v1546_v53 = vmax.f32 %v7303_v52, %v5242_v12  ;;  %v7344_v52 = vld [vmem:[#allocation11_spill] sm:$0xff] }
 0x484   :  { %v3164_v46 = vmul.f32 -1.442695, %v1858_v30  ;;  %v1815_v42 = vpop.f32.mrb[43].mxu0  ;;  %v1856_v39 = vpop.f32.mrb[43].mxu1  ;;  %v3166_v48 = vmul.f32 -1.442695, %v1860_v11 }
 0x485   :  { %v3165_v26 = vmul.f32 -1.442695, %v1859_v41  ;;  %v3533_v6 = vpop.eup %3532 }
 0x486   :  { %3536 = vpow2.f32 %v3164_v46 }
 0x487   :  { %3538 = vpow2.f32 %v3165_v26 }
 0x488   :  { %3540 = vtanh.f32 %v1861_v61 }
 0x489   :  { %3542 = vpow2.f32 %v3166_v48 }
 0x48d   :  { %v3535_v47 = vpop.eup %3534 }
 0x48e   :  { %v1769_v54 = vmul.f32 %v3535_v47, %v3533_v6 }
 0x490   :  { %v3537_v49 = vpop.eup %3536  ;;  %v5622_v9 = vmax.f32 %v1546_v53, %v1769_v54  ;;  %v1887_v32 = vpack.c.bf16 %v1769_v54, %v1769_v54  ;;  %v7345_v53 = vld [vmem:[#allocation12_spill] sm:$0xff]  ;;  %v7346_v54 = vld [vmem:[#allocation13_spill] sm:$0xff] }
 0x491   :  { %v1871_v45 = vadd.f32 1.0, %v3537_v49  ;;  %v3539_v1 = vpop.eup %3538  ;;  %v7347_v49 = vld [vmem:[#allocation14_spill] sm:$0xff] }
 0x492   :  { %v1872_v30 = vadd.f32 1.0, %v3539_v1  ;;  %1920 = vmatprep.mubr.bf16.mxu0 %v1887_v32  ;;  %1961 = vmatprep.mubr.bf16.mxu1 %v1887_v32  ;;  %v3541_v41 = vpop.eup %3540  ;;  %v7349_v32 = vld [vmem:[#allocation16_spill] sm:$0xff]  ;;  %v7350_v1 = vld [vmem:[#allocation17_spill] sm:$0xff] }
 0x493   :  { %3544 = vrcp.f32 %v1871_v45  ;;  %v3543_v25 = vpop.eup %3542  ;;  %v7348_v45 = vld [vmem:[#allocation15_spill] sm:$0xff] }
 0x494   :  { %3546 = vrcp.f32 %v1872_v30  ;;  %v1873_v12 = vadd.f32 1.0, %v3543_v25  ;;  %v7351_v30 = vld [vmem:[#allocation18_spill] sm:$0xff]  ;;  %v7353_v25 = vld [vmem:[#allocation20_spill] sm:$0xff] }
 0x496   :  { %3548 = vrcp.f32 %v1873_v12  ;;  %v7357_v12 = vld [vmem:[#allocation24_spill] sm:$0xff] }
 0x49d   :  { %v3545_v11 = vpop.eup %3544 }
 0x49e   :  { %v1882_v46 = vmul.f32 %v3545_v11, %v3541_v41  ;;  %v3547_v42 = vpop.eup %3546  ;;  %v7352_v41 = vld [vmem:[#allocation19_spill] sm:$0xff]  ;;  %v7354_v11 = vld [vmem:[#allocation21_spill] sm:$0xff] }
 0x49f   :  { %v1881_v39 = vmul.f32 %v3547_v42, %v5247_v43  ;;  %v7322_v43 = vld [vmem:[#allocation61_spill] sm:$0xff]  ;;  %v7356_v42 = vld [vmem:[#allocation23_spill] sm:$0xff] }
 0x4a0   :  { %v3549_v61 = vpop.eup %3548 }
 0x4a1   :  { %v5625_v26 = vadd.f32 %v1882_v46, %v1881_v39  ;;  %v7355_v46 = vld [vmem:[#allocation22_spill] sm:$0xff]  ;;  %v7358_v39 = vld [vmem:[#allocation25_spill] sm:$0xff] }
 0x4a3   :  { %3550 = vtanh.f32 %v5625_v26 }
 0x4ad   :  { %v3551_v6 = vpop.eup %3550 }
 0x4ae   :  { %v1885_v47 = vmul.f32 %v3551_v6, %v3549_v61  ;;  %v5727_v61 = vld [vmem:[%s6625_s2 + $0x4] ss:$16 sps:$4 sm:$0xff]   ;;  %v5733_v6 = vld [vmem:[%s6625_s2 + $0xc] ss:$16 sps:$4 sm:$0xff]  }
 0x4af   :  { %7359 = vst [vmem:[#allocation26_spill] sm:$0xff] %v5727_v61  ;;  %7360 = vst [vmem:[#allocation27_spill] sm:$0xff] %v5733_v6 }
 0x4b0   :  { %v1886_v48 = vpack.c.bf16 %v1885_v47, %v1885_v47 }
 0x4b2   :  { %1921 = vmatmul.mubr.bf16.vlgmr.msra.gmra.mrb[44].mxu0 %v1886_v48  ;;  %1962 = vmatmul.mubr.bf16.vlgmr.msra.gmra.mrb[44].mxu1 %v1886_v48 }
 0x4b3   :  { %2001 = vmatpush1.bf16.msra.mxu0 %v4923_v38  ;;  %2042 = vmatpush1.bf16.msra.mxu1 %v4929_v21  ;;  %v7304_v38 = vld [vmem:[#allocation31_spill] sm:$0xff]  ;;  %v7305_v21 = vld [vmem:[#allocation32_spill] sm:$0xff] }
 0x4b4   :  { %2002 = vmatprep.subr.bf16.mxu0 %v4935_v18  ;;  %2043 = vmatprep.subr.bf16.mxu1 %v4941_v24  ;;  %v7306_v18 = vld [vmem:[#allocation33_spill] sm:$0xff]  ;;  %v7307_v24 = vld [vmem:[#allocation34_spill] sm:$0xff] }
 0x4b5   :  { %2032 = vmatprep.mubr.bf16.mxu0 %v7108_v31  ;;  %2073 = vmatprep.mubr.bf16.mxu1 %v7108_v31 }
 0x4b7   :  { %2003 = vmatpush1.bf16.msra.mxu0 %v4949_v35  ;;  %2044 = vmatpush1.bf16.msra.mxu1 %v4955_v17  ;;  %v7308_v35 = vld [vmem:[#allocation35_spill] sm:$0xff]  ;;  %v7309_v17 = vld [vmem:[#allocation36_spill] sm:$0xff] }
 0x4b8   :  { %2004 = vmatprep.subr.bf16.mxu0 %v4961_v27  ;;  %2045 = vmatprep.subr.bf16.mxu1 %v4967_v33  ;;  %v7310_v27 = vld [vmem:[#allocation37_spill] sm:$0xff]  ;;  %v7311_v33 = vld [vmem:[#allocation38_spill] sm:$0xff] }
 0x4bb   :  { %2005 = vmatpush1.bf16.msra.mxu0 %v4973_v28  ;;  %2046 = vmatpush1.bf16.msra.mxu1 %v4979_v23  ;;  %v7312_v28 = vld [vmem:[#allocation39_spill] sm:$0xff]  ;;  %v7313_v23 = vld [vmem:[#allocation40_spill] sm:$0xff] }
 0x4bc   :  { %2006 = vmatprep.subr.bf16.mxu0 %v4985_v36  ;;  %2047 = vmatprep.subr.bf16.mxu1 %v4991_v34  ;;  %v7315_v36 = vld [vmem:[#allocation42_spill] sm:$0xff]  ;;  %v7316_v34 = vld [vmem:[#allocation43_spill] sm:$0xff] }
 0x4bf   :  { %2007 = vmatpush1.bf16.msra.mxu0 %v4997_v19  ;;  %2048 = vmatpush1.bf16.msra.mxu1 %v5003_v29  ;;  %v7317_v19 = vld [vmem:[#allocation44_spill] sm:$0xff]  ;;  %v7318_v29 = vld [vmem:[#allocation45_spill] sm:$0xff] }
 0x4c0   :  { %2008 = vmatprep.subr.bf16.mxu0 %v5009_v20  ;;  %2049 = vmatprep.subr.bf16.mxu1 %v5015_v44  ;;  %v7319_v20 = vld [vmem:[#allocation58_spill] sm:$0xff]  ;;  %v7320_v44 = vld [vmem:[#allocation59_spill] sm:$0xff] }
 0x4c3   :  { %2009 = vmatpush1.bf16.msra.mxu0 %v7226_v22  ;;  %2050 = vmatpush1.bf16.msra.mxu1 %v7227_v50  ;;  %v7323_v22 = vld [vmem:[#allocation62_spill] sm:$0xff] }
 0x4c4   :  { %2010 = vmatprep.subr.bf16.mxu0 %v7228_v51  ;;  %2051 = vmatprep.subr.bf16.mxu1 %v7229_v55  ;;  %v7324_v50 = vld [vmem:[#allocation46_spill] sm:$0xff]  ;;  %v7325_v51 = vld [vmem:[#allocation47_spill] sm:$0xff]  ;;  %v7326_v55 = vld [vmem:[#allocation48_spill] sm:$0xff] }
 0x4c7   :  { %2011 = vmatpush1.bf16.msra.mxu0 %v7230_v56  ;;  %2052 = vmatpush1.bf16.msra.mxu1 %v7231_v58  ;;  %v7327_v56 = vld [vmem:[#allocation49_spill] sm:$0xff]  ;;  %v7328_v58 = vld [vmem:[#allocation50_spill] sm:$0xff] }
 0x4c8   :  { %2012 = vmatprep.subr.bf16.mxu0 %v7232_v59  ;;  %2053 = vmatprep.subr.bf16.mxu1 %v7233_v60  ;;  %v7329_v59 = vld [vmem:[#allocation51_spill] sm:$0xff]  ;;  %v7330_v60 = vld [vmem:[#allocation52_spill] sm:$0xff] }
 0x4cb   :  { %2013 = vmatpush1.bf16.msra.mxu0 %v7234_v63  ;;  %2054 = vmatpush1.bf16.msra.mxu1 %v7235_v0  ;;  %v7331_v63 = vld [vmem:[#allocation53_spill] sm:$0xff]  ;;  %v7332_v0 = vld [vmem:[#allocation54_spill] sm:$0xff] }
 0x4cc   :  { %2014 = vmatprep.subr.bf16.mxu0 %v7236_v7  ;;  %2055 = vmatprep.subr.bf16.mxu1 %v7237_v2  ;;  %v7333_v7 = vld [vmem:[#allocation55_spill] sm:$0xff]  ;;  %v7334_v2 = vld [vmem:[#allocation56_spill] sm:$0xff] }
 0x4cf   :  { %2015 = vmatpush1.bf16.msra.mxu0 %v5093_v62  ;;  %2056 = vmatpush1.bf16.msra.mxu1 %v7238_v3  ;;  %v7321_v62 = vld [vmem:[#allocation60_spill] sm:$0xff]  ;;  %v7335_v3 = vld [vmem:[#allocation57_spill] sm:$0xff] }
 0x4d0   :  { %2112 = vmatprep.subr.bf16.mxu0 %v7239_v4  ;;  %2153 = vmatprep.subr.bf16.mxu1 %v7240_v5  ;;  %v7336_v4 = vld [vmem:[#allocation3_spill] sm:$0xff]  ;;  %v7337_v5 = vld [vmem:[#allocation4_spill] sm:$0xff] }
 0x4d2   :  { %2033 = vmatmul.mubr.bf16.vlgmr.msra.gmra.mrb[48].mxu0 %v1886_v48  ;;  %2074 = vmatmul.mubr.bf16.vlgmr.msra.gmra.mrb[48].mxu1 %v1886_v48 }
 0x4d3   :  { %2113 = vmatpush1.bf16.msra.mxu0 %v7241_v8  ;;  %2154 = vmatpush1.bf16.msra.mxu1 %v7242_v10  ;;  %v7338_v8 = vld [vmem:[#allocation5_spill] sm:$0xff]  ;;  %v7339_v10 = vld [vmem:[#allocation63_spill] sm:$0xff] }
 0x4d4   :  { %2114 = vmatprep.subr.bf16.mxu0 %v7243_v13  ;;  %2155 = vmatprep.subr.bf16.mxu1 %v7244_v14  ;;  %v7340_v13 = vld [vmem:[#allocation64_spill] sm:$0xff]  ;;  %v7341_v14 = vld [vmem:[#allocation65_spill] sm:$0xff] }
 0x4d7   :  { %2115 = vmatpush1.bf16.msra.mxu0 %v7245_v15  ;;  %2156 = vmatpush1.bf16.msra.mxu1 %v7246_v16  ;;  %v7342_v15 = vld [vmem:[#allocation66_spill] sm:$0xff] }
 0x4d8   :  { %2116 = vmatprep.subr.bf16.mxu0 %v5155_v37  ;;  %2157 = vmatprep.subr.bf16.mxu1 %v7304_v38  ;;  %v7314_v37 = vld [vmem:[#allocation41_spill] sm:$0xff]  ;;  %v7343_v16 = vld [vmem:[#allocation10_spill] sm:$0xff] }
 0x4db   :  { %2117 = vmatpush1.bf16.msra.mxu0 %v7305_v21  ;;  %2158 = vmatpush1.bf16.msra.mxu1 %v7306_v18 }
 0x4dc   :  { %2118 = vmatprep.subr.bf16.mxu0 %v7307_v24  ;;  %2159 = vmatprep.subr.bf16.mxu1 %v7308_v35 }
 0x4df   :  { %2119 = vmatpush1.bf16.msra.mxu0 %v7309_v17  ;;  %2160 = vmatpush1.bf16.msra.mxu1 %v7310_v27 }
 0x4e0   :  { %2120 = vmatprep.subr.bf16.mxu0 %v7311_v33  ;;  %2161 = vmatprep.subr.bf16.mxu1 %v7312_v28 }
 0x4e3   :  { %2121 = vmatpush1.bf16.msra.mxu0 %v7313_v23  ;;  %2162 = vmatpush1.bf16.msra.mxu1 %v7314_v37 }
 0x4e4   :  { %2122 = vmatprep.subr.bf16.mxu0 %v7315_v36  ;;  %2163 = vmatprep.subr.bf16.mxu1 %v7316_v34 }
 0x4e7   :  { %2123 = vmatpush1.bf16.msra.mxu0 %v7317_v19  ;;  %2164 = vmatpush1.bf16.msra.mxu1 %v7318_v29 }
 0x4e8   :  { %2124 = vmatprep.subr.bf16.mxu0 %v7319_v20  ;;  %2165 = vmatprep.subr.bf16.mxu1 %v7320_v44 }
 0x4eb   :  { %2125 = vmatpush1.bf16.msra.mxu0 %v7321_v62  ;;  %2166 = vmatpush1.bf16.msra.mxu1 %v7322_v43 }
 0x4ec   :  { %2126 = vmatprep.subr.bf16.mxu0 %v7323_v22  ;;  %2167 = vmatprep.subr.bf16.mxu1 %v7324_v50 }
 0x4ef   :  { %2127 = vmatpush1.bf16.msra.mxu0 %v7325_v51  ;;  %2168 = vmatpush1.bf16.msra.mxu1 %v7326_v55 }
 0x4f0   :  { %2128 = vmatprep.subr.bf16.mxu0 %v7327_v56  ;;  %2169 = vmatprep.subr.bf16.mxu1 %v7328_v58 }
 0x4f3   :  { %2129 = vmatpush1.bf16.msra.mxu0 %v7329_v59  ;;  %2170 = vmatpush1.bf16.msra.mxu1 %v7330_v60 }
 0x4f4   :  { %2130 = vmatprep.subr.bf16.mxu0 %v7331_v63  ;;  %2171 = vmatprep.subr.bf16.mxu1 %v7332_v0 }
 0x4f7   :  { %2131 = vmatpush1.bf16.msra.mxu0 %v7333_v7  ;;  %2172 = vmatpush1.bf16.msra.mxu1 %v7334_v2 }
 0x4f8   :  { %2132 = vmatprep.subr.bf16.mxu0 %v7335_v3  ;;  %2173 = vmatprep.subr.bf16.mxu1 %v7336_v4 }
 0x4fb   :  { %2133 = vmatpush1.bf16.msra.mxu0 %v7337_v5  ;;  %2174 = vmatpush1.bf16.msra.mxu1 %v7338_v8 }
 0x4fc   :  { %2134 = vmatprep.subr.bf16.mxu0 %v7339_v10  ;;  %2175 = vmatprep.subr.bf16.mxu1 %v7340_v13 }
 0x4ff   :  { %2135 = vmatpush1.bf16.msra.mxu0 %v7341_v14  ;;  %2176 = vmatpush1.bf16.msra.mxu1 %v7342_v15 }
 0x500   :  { %2136 = vmatprep.subr.bf16.mxu0 %v7343_v16  ;;  %2177 = vmatprep.subr.bf16.mxu1 %v7344_v52 }
 0x503   :  { %2137 = vmatpush1.bf16.msra.mxu0 %v7345_v53  ;;  %2178 = vmatpush1.bf16.msra.mxu1 %v7346_v54 }
 0x504   :  { %2138 = vmatprep.subr.bf16.mxu0 %v7347_v49  ;;  %2179 = vmatprep.subr.bf16.mxu1 %v7348_v45 }
 0x507   :  { %2139 = vmatpush1.bf16.msra.mxu0 %v7349_v32  ;;  %2180 = vmatpush1.bf16.msra.mxu1 %v7350_v1  ;;  %v7363_v32 = vld [vmem:[#allocation8_spill] sm:$0xff] }
 0x508   :  { %2140 = vmatprep.subr.bf16.mxu0 %v7351_v30  ;;  %2181 = vmatprep.subr.bf16.mxu1 %v7352_v41  ;;  %v7362_v30 = vld [vmem:[#allocation7_spill] sm:$0xff] }
 0x50b   :  { %2141 = vmatpush1.bf16.msra.mxu0 %v7353_v25  ;;  %2182 = vmatpush1.bf16.msra.mxu1 %v7354_v11 }
 0x50c   :  { %2142 = vmatprep.subr.bf16.mxu0 %v7355_v46  ;;  %2183 = vmatprep.subr.bf16.mxu1 %v7356_v42 }
 0x50f   :  { %2143 = vmatpush1.bf16.msra.mxu0 %v7357_v12  ;;  %2184 = vmatpush1.bf16.msra.mxu1 %v7358_v39  ;;  %v7361_v39 = vld [vmem:[#allocation6_spill] sm:$0xff] }
 0x510   :  { %2224 = vmatprep.subr.bf16.mxu0 %v5727_v61  ;;  %2265 = vmatprep.subr.bf16.mxu1 %v5733_v6 }
 0x585   :  { %v1922_v47 = vpop.f32.mrb[44].mxu0  ;;  %v1963_v48 = vpop.f32.mrb[44].mxu1 }
 0x586   :  { %v1923_v38 = vadd.f32 %v1922_v47, %v7218_v57  ;;  %v1924_v21 = vpop.f32.mrb[45].mxu0  ;;  %v1965_v18 = vpop.f32.mrb[45].mxu1  ;;  %v1964_v1 = vadd.f32 %v1963_v48, %v7362_v30  ;;  %v7367_v30 = vld [vmem:[#allocation74_spill] sm:$0xff] }
 0x587   :  { %v1925_v12 = vadd.f32 %v1924_v21, %v7361_v39  ;;  %v1926_v42 = vpop.f32.mrb[46].mxu0  ;;  %v1967_v46 = vpop.f32.mrb[46].mxu1  ;;  %v1966_v6 = vadd.f32 %v1965_v18, %v7363_v32 }
 0x588   :  { %v3167_v11 = vmul.f32 -1.442695, %v1923_v38  ;;  %v1927_v25 = vpop.f32.mrb[47].mxu0  ;;  %v1968_v61 = vpop.f32.mrb[47].mxu1  ;;  %v3169_v45 = vmul.f32 -1.442695, %v1964_v1 }
 0x589   :  { %v3168_v41 = vmul.f32 -1.442695, %v1925_v12  ;;  %v7364_v1 = vld [vmem:[#allocation71_spill] sm:$0xff] }
 0x58a   :  { %3552 = vpow2.f32 %v3167_v11 }
 0x58b   :  { %3554 = vpow2.f32 %v3168_v41 }
 0x58c   :  { %3556 = vtanh.f32 %v1966_v6  ;;  %v7365_v6 = vld [vmem:[#allocation72_spill] sm:$0xff] }
 0x58d   :  { %3558 = vpow2.f32 %v3169_v45 }
 0x594   :  { %v3553_v49 = vpop.eup %3552 }
 0x595   :  { %v1979_v54 = vadd.f32 1.0, %v3553_v49  ;;  %v3555_v47 = vpop.eup %3554 }
 0x596   :  { %v1980_v21 = vadd.f32 1.0, %v3555_v47  ;;  %v3557_v46 = vpop.eup %3556  ;;  %v7366_v47 = vld [vmem:[#allocation73_spill] sm:$0xff] }
 0x597   :  { %3560 = vrcp.f32 %v1979_v54  ;;  %v3559_v42 = vpop.eup %3558 }
 0x598   :  { %3562 = vrcp.f32 %v1980_v21  ;;  %v1981_v11 = vadd.f32 1.0, %v3559_v42 }
 0x59a   :  { %3564 = vrcp.f32 %v1981_v11 }
 0x5a1   :  { %v3561_v25 = vpop.eup %3560 }
 0x5a2   :  { %v1990_v61 = vmul.f32 %v3561_v25, %v3557_v46  ;;  %v3563_v12 = vpop.eup %3562 }
 0x5a3   :  { %v1989_v41 = vmul.f32 %v3563_v12, %v5613_v40 }
 0x5a5   :  { %v2034_v48 = vpop.f32.mrb[48].mxu0  ;;  %v2075_v38 = vpop.f32.mrb[48].mxu1  ;;  %v5741_v18 = vadd.f32 %v1990_v61, %v1989_v41 }
 0x5a6   :  { %v2082_v49 = vadd.f32 %v2034_v48, %v7364_v1  ;;  %v2084_v32 = vadd.f32 %v2075_v38, %v7365_v6  ;;  %v2036_v45 = vpop.f32.mrb[49].mxu0  ;;  %v2077_v54 = vpop.f32.mrb[49].mxu1 }
 0x5a7   :  { %v2083_v21 = vadd.f32 %v2036_v45, %v7366_v47  ;;  %v2085_v39 = vadd.f32 %v2077_v54, %v7367_v30  ;;  %v2038_v46 = vpop.f32.mrb[50].mxu0  ;;  %v2079_v25 = vpop.f32.mrb[50].mxu1  ;;  %3566 = vtanh.f32 %v5741_v18  ;;  %v5869_v30 = vld [vmem:[%s6625_s2 + $0x88] ss:$16 sps:$4 sm:$0xff]  }
 0x5a8   :  { %v3170_v40 = vmul.f32 -1.442695, %v2082_v49  ;;  %v2039_v42 = vpop.f32.mrb[51].mxu0  ;;  %v2080_v12 = vpop.f32.mrb[51].mxu1  ;;  %v3172_v38 = vmul.f32 -1.442695, %v2084_v32 }
 0x5a9   :  { %v3171_v61 = vmul.f32 -1.442695, %v2083_v21  ;;  %v3565_v41 = vpop.eup %3564  ;;  %7371 = vst [vmem:[#allocation67_spill] sm:$0xff] %v5869_v30 }
 0x5aa   :  { %3568 = vpow2.f32 %v3170_v40 }
 0x5ab   :  { %3570 = vpow2.f32 %v3171_v61 }
 0x5ac   :  { %3572 = vtanh.f32 %v2085_v39 }
 0x5ad   :  { %3574 = vpow2.f32 %v3172_v38  ;;  %v5765_v38 = vld [vmem:[%s6625_s2] ss:$16 sps:$4 sm:$0xff]  }
 0x5b1   :  { %v3567_v48 = vpop.eup %3566 }
 0x5b2   :  { %v5748_v1 = vmul.f32 %v3567_v48, %v3565_v41 }
 0x5b4   :  { %v3569_v11 = vpop.eup %3568  ;;  %v2111_v45 = vpack.c.bf16 %v5748_v1, %v5748_v1 }
 0x5b5   :  { %v2095_v6 = vadd.f32 1.0, %v3569_v11  ;;  %v3571_v49 = vpop.eup %3570  ;;  %v5777_v11 = vld [vmem:[%s6625_s2 + $0x24] ss:$16 sps:$4 sm:$0xff]  }
 0x5b6   :  { %v2096_v54 = vadd.f32 1.0, %v3571_v49  ;;  %2144 = vmatprep.mubr.bf16.mxu0 %v2111_v45  ;;  %2185 = vmatprep.mubr.bf16.mxu1 %v2111_v45  ;;  %v3573_v47 = vpop.eup %3572  ;;  %v5791_v45 = vld [vmem:[%s6625_s2 + $0x20] ss:$16 sps:$4 sm:$0xff]   ;;  %v5797_v49 = vld [vmem:[%s6625_s2 + $0x28] ss:$16 sps:$4 sm:$0xff]  }
 0x5b7   :  { %3576 = vrcp.f32 %v2095_v6  ;;  %v3575_v32 = vpop.eup %3574  ;;  %v5783_v6 = vld [vmem:[%s6625_s2 + $0x2c] ss:$16 sps:$4 sm:$0xff]  }
 0x5b8   :  { %3578 = vrcp.f32 %v2096_v54  ;;  %v2097_v40 = vadd.f32 1.0, %v3575_v32  ;;  %v5803_v54 = vld [vmem:[%s6625_s2 + $0x44] ss:$16 sps:$4 sm:$0xff]   ;;  %v5815_v32 = vld [vmem:[%s6625_s2 + $0x40] ss:$16 sps:$4 sm:$0xff]  }
 0x5ba   :  { %3580 = vrcp.f32 %v2097_v40  ;;  %v5839_v40 = vld [vmem:[%s6625_s2 + $0x60] ss:$16 sps:$4 sm:$0xff]  }
 0x5c1   :  { %v3577_v21 = vpop.eup %3576 }
 0x5c2   :  { %v2106_v46 = vmul.f32 %v3577_v21, %v3573_v47  ;;  %v3579_v25 = vpop.eup %3578  ;;  %v5809_v47 = vld [vmem:[%s6625_s2 + $0x4c] ss:$16 sps:$4 sm:$0xff]   ;;  %v5821_v21 = vld [vmem:[%s6625_s2 + $0x48] ss:$16 sps:$4 sm:$0xff]  }
 0x5c3   :  { %v2105_v39 = vmul.f32 %v3579_v25, %v5625_v26  ;;  %v5771_v26 = vld [vmem:[%s6625_s2 + $0x8] ss:$16 sps:$4 sm:$0xff]   ;;  %v5833_v25 = vld [vmem:[%s6625_s2 + $0x6c] ss:$16 sps:$4 sm:$0xff]  }
 0x5c4   :  { %v3581_v12 = vpop.eup %3580 }
 0x5c5   :  { %v5755_v42 = vadd.f32 %v2106_v46, %v2105_v39  ;;  %v5827_v46 = vld [vmem:[%s6625_s2 + $0x64] ss:$16 sps:$4 sm:$0xff]   ;;  %v5845_v39 = vld [vmem:[%s6625_s2 + $0x68] ss:$16 sps:$4 sm:$0xff]  }
 0x5c7   :  { %3582 = vtanh.f32 %v5755_v42 }
 0x5d1   :  { %v3583_v61 = vpop.eup %3582 }
 0x5d2   :  { %v2109_v41 = vmul.f32 %v3583_v61, %v3581_v12  ;;  %v5851_v12 = vld [vmem:[%s6625_s2 + $0x84] ss:$16 sps:$4 sm:$0xff]   ;;  %v5857_v61 = vld [vmem:[%s6625_s2 + $0x8c] ss:$16 sps:$4 sm:$0xff]  }
 0x5d3   :  { %7368 = vst [vmem:[#allocation28_spill] sm:$0xff] %v5851_v12  ;;  %7369 = vst [vmem:[#allocation29_spill] sm:$0xff] %v5857_v61 }
 0x5d4   :  { %v5758_v48 = vpack.c.bf16 %v2109_v41, %v2109_v41  ;;  %v5863_v41 = vld [vmem:[%s6625_s2 + $0x80] ss:$16 sps:$4 sm:$0xff]  }
 0x5d5   :  { %7370 = vst [vmem:[#allocation30_spill] sm:$0xff] %v5863_v41 }
 0x5d6   :  { %2145 = vmatmul.mubr.bf16.vlgmr.msra.gmra.mrb[52].mxu0 %v5758_v48  ;;  %2186 = vmatmul.mubr.bf16.vlgmr.msra.gmra.mrb[52].mxu1 %v5758_v48 }
 0x5d7   :  { %2225 = vmatpush1.bf16.msra.mxu0 %v5765_v38  ;;  %2266 = vmatpush1.bf16.msra.mxu1 %v5771_v26 }
 0x5d8   :  { %2226 = vmatprep.subr.bf16.mxu0 %v5777_v11  ;;  %2267 = vmatprep.subr.bf16.mxu1 %v5783_v6 }
 0x5d9   :  { %2256 = vmatprep.mubr.bf16.mxu0 %v7108_v31  ;;  %2297 = vmatprep.mubr.bf16.mxu1 %v7108_v31 }
 0x5db   :  { %2227 = vmatpush1.bf16.msra.mxu0 %v5791_v45  ;;  %2268 = vmatpush1.bf16.msra.mxu1 %v5797_v49 }
 0x5dc   :  { %2228 = vmatprep.subr.bf16.mxu0 %v5803_v54  ;;  %2269 = vmatprep.subr.bf16.mxu1 %v5809_v47 }
 0x5df   :  { %2229 = vmatpush1.bf16.msra.mxu0 %v5815_v32  ;;  %2270 = vmatpush1.bf16.msra.mxu1 %v5821_v21 }
 0x5e0   :  { %2230 = vmatprep.subr.bf16.mxu0 %v5827_v46  ;;  %2271 = vmatprep.subr.bf16.mxu1 %v5833_v25 }
 0x5e3   :  { %2231 = vmatpush1.bf16.msra.mxu0 %v5839_v40  ;;  %2272 = vmatpush1.bf16.msra.mxu1 %v5845_v39 }
 0x5e4   :  { %2232 = vmatprep.subr.bf16.mxu0 %v5851_v12  ;;  %2273 = vmatprep.subr.bf16.mxu1 %v5857_v61  ;;  %v5875_v12 = vld [vmem:[%s6625_s2 + $0xa4] ss:$16 sps:$4 sm:$0xff]   ;;  %v5881_v61 = vld [vmem:[%s6625_s2 + $0xac] ss:$16 sps:$4 sm:$0xff]  }
 0x5e5   :  { %7372 = vst [vmem:[#allocation68_spill] sm:$0xff] %v5875_v12  ;;  %7373 = vst [vmem:[#allocation69_spill] sm:$0xff] %v5881_v61 }
 0x5e7   :  { %2233 = vmatpush1.bf16.msra.mxu0 %v5863_v41  ;;  %2274 = vmatpush1.bf16.msra.mxu1 %v5869_v30  ;;  %v5887_v41 = vld [vmem:[%s6625_s2 + $0xa0] ss:$16 sps:$4 sm:$0xff]   ;;  %v5893_v30 = vld [vmem:[%s6625_s2 + $0xa8] ss:$16 sps:$4 sm:$0xff]  }
 0x5e8   :  { %2234 = vmatprep.subr.bf16.mxu0 %v5875_v12  ;;  %2275 = vmatprep.subr.bf16.mxu1 %v5881_v61  ;;  %7374 = vst [vmem:[#allocation70_spill] sm:$0xff] %v5887_v41  ;;  %7375 = vst [vmem:[#allocation9_spill] sm:$0xff] %v5893_v30  ;;  %v5899_v12 = vld [vmem:[%s6625_s2 + $0xc4] ss:$16 sps:$4 sm:$0xff]   ;;  %v5905_v61 = vld [vmem:[%s6625_s2 + $0xcc] ss:$16 sps:$4 sm:$0xff]  }
 0x5e9   :  { %7376 = vst [vmem:[#allocation31_spill] sm:$0xff] %v5899_v12  ;;  %7377 = vst [vmem:[#allocation32_spill] sm:$0xff] %v5905_v61 }
 0x5eb   :  { %2235 = vmatpush1.bf16.msra.mxu0 %v5887_v41  ;;  %2276 = vmatpush1.bf16.msra.mxu1 %v5893_v30  ;;  %v5911_v41 = vld [vmem:[%s6625_s2 + $0xc0] ss:$16 sps:$4 sm:$0xff]   ;;  %v5917_v30 = vld [vmem:[%s6625_s2 + $0xc8] ss:$16 sps:$4 sm:$0xff]  }
 0x5ec   :  { %2236 = vmatprep.subr.bf16.mxu0 %v5899_v12  ;;  %2277 = vmatprep.subr.bf16.mxu1 %v5905_v61  ;;  %7378 = vst [vmem:[#allocation33_spill] sm:$0xff] %v5911_v41  ;;  %7379 = vst [vmem:[#allocation34_spill] sm:$0xff] %v5917_v30  ;;  %v5923_v12 = vld [vmem:[%s6625_s2 + $0xe4] ss:$16 sps:$4 sm:$0xff]   ;;  %v5929_v61 = vld [vmem:[%s6625_s2 + $0xec] ss:$16 sps:$4 sm:$0xff]  }
 0x5ed   :  { %7380 = vst [vmem:[#allocation35_spill] sm:$0xff] %v5923_v12  ;;  %7381 = vst [vmem:[#allocation36_spill] sm:$0xff] %v5929_v61 }
 0x5ef   :  { %2237 = vmatpush1.bf16.msra.mxu0 %v5911_v41  ;;  %2278 = vmatpush1.bf16.msra.mxu1 %v5917_v30  ;;  %v5935_v41 = vld [vmem:[%s6625_s2 + $0xe0] ss:$16 sps:$4 sm:$0xff]   ;;  %v5941_v30 = vld [vmem:[%s6625_s2 + $0xe8] ss:$16 sps:$4 sm:$0xff]  }
 0x5f0   :  { %2238 = vmatprep.subr.bf16.mxu0 %v5923_v12  ;;  %2279 = vmatprep.subr.bf16.mxu1 %v5929_v61  ;;  %7382 = vst [vmem:[#allocation37_spill] sm:$0xff] %v5941_v30  ;;  %v5947_v12 = vld [vmem:[%s6627_s6 + $0x4] ss:$16 sps:$4 sm:$0xff]   ;;  %v5953_v61 = vld [vmem:[%s6627_s6 + $0xc] ss:$16 sps:$4 sm:$0xff]  }
 0x5f1   :  { %7383 = vst [vmem:[#allocation38_spill] sm:$0xff] %v5947_v12  ;;  %7384 = vst [vmem:[#allocation39_spill] sm:$0xff] %v5953_v61 }
 0x5f3   :  { %2239 = vmatpush1.bf16.msra.mxu0 %v5935_v41  ;;  %2280 = vmatpush1.bf16.msra.mxu1 %v5941_v30  ;;  %v5961_v30 = vld [vmem:[%s6627_s6] ss:$16 sps:$4 sm:$0xff]  }
 0x5f4   :  { %2336 = vmatprep.subr.bf16.mxu0 %v5947_v12  ;;  %2377 = vmatprep.subr.bf16.mxu1 %v5953_v61  ;;  %7385 = vst [vmem:[#allocation40_spill] sm:$0xff] %v5961_v30  ;;  %v5967_v12 = vld [vmem:[%s6627_s6 + $0x8] ss:$16 sps:$4 sm:$0xff]   ;;  %v5973_v61 = vld [vmem:[%s6627_s6 + $0x24] ss:$16 sps:$4 sm:$0xff]  }
 0x5f5   :  { %7386 = vst [vmem:[#allocation41_spill] sm:$0xff] %v5967_v12  ;;  %7387 = vst [vmem:[#allocation42_spill] sm:$0xff] %v5973_v61 }
 0x5f6   :  { %2257 = vmatmul.mubr.bf16.vlgmr.msra.gmra.mrb[56].mxu0 %v5758_v48  ;;  %2298 = vmatmul.mubr.bf16.vlgmr.msra.gmra.mrb[56].mxu1 %v5758_v48  ;;  %v5979_v48 = vld [vmem:[%s6627_s6 + $0x2c] ss:$16 sps:$4 sm:$0xff]  }
 0x5f7   :  { %2337 = vmatpush1.bf16.msra.mxu0 %v5961_v30  ;;  %2378 = vmatpush1.bf16.msra.mxu1 %v5967_v12  ;;  %7388 = vst [vmem:[#allocation43_spill] sm:$0xff] %v5979_v48  ;;  %v5985_v30 = vld [vmem:[%s6627_s6 + $0x20] ss:$16 sps:$4 sm:$0xff]   ;;  %v5991_v12 = vld [vmem:[%s6627_s6 + $0x28] ss:$16 sps:$4 sm:$0xff]  }
 0x5f8   :  { %2338 = vmatprep.subr.bf16.mxu0 %v5973_v61  ;;  %2379 = vmatprep.subr.bf16.mxu1 %v5979_v48  ;;  %7389 = vst [vmem:[#allocation44_spill] sm:$0xff] %v5985_v30  ;;  %7390 = vst [vmem:[#allocation45_spill] sm:$0xff] %v5991_v12  ;;  %v5997_v61 = vld [vmem:[%s6627_s6 + $0x44] ss:$16 sps:$4 sm:$0xff]   ;;  %v6003_v48 = vld [vmem:[%s6627_s6 + $0x4c] ss:$16 sps:$4 sm:$0xff]  }
 0x5f9   :  { %7391 = vst [vmem:[#allocation58_spill] sm:$0xff] %v6003_v48 }
 0x5fb   :  { %2339 = vmatpush1.bf16.msra.mxu0 %v5985_v30  ;;  %2380 = vmatpush1.bf16.msra.mxu1 %v5991_v12  ;;  %v6009_v30 = vld [vmem:[%s6627_s6 + $0x40] ss:$16 sps:$4 sm:$0xff]   ;;  %v6015_v12 = vld [vmem:[%s6627_s6 + $0x48] ss:$16 sps:$4 sm:$0xff]  }
 0x5fc   :  { %2340 = vmatprep.subr.bf16.mxu0 %v5997_v61  ;;  %2381 = vmatprep.subr.bf16.mxu1 %v6003_v48  ;;  %7392 = vst [vmem:[#allocation59_spill] sm:$0xff] %v6009_v30  ;;  %7393 = vst [vmem:[#allocation60_spill] sm:$0xff] %v6015_v12 }
 0x5ff   :  { %2341 = vmatpush1.bf16.msra.mxu0 %v6009_v30  ;;  %2382 = vmatpush1.bf16.msra.mxu1 %v6015_v12 }
 0x600   :  { %2342 = vmatprep.subr.bf16.mxu0 %v7307_v24  ;;  %2383 = vmatprep.subr.bf16.mxu1 %v7308_v35  ;;  %v7394_v24 = vld [vmem:[#allocation13_spill] sm:$0xff]  ;;  %v7395_v35 = vld [vmem:[#allocation14_spill] sm:$0xff] }
 0x603   :  { %2343 = vmatpush1.bf16.msra.mxu0 %v7309_v17  ;;  %2384 = vmatpush1.bf16.msra.mxu1 %v7310_v27  ;;  %v7396_v17 = vld [vmem:[#allocation15_spill] sm:$0xff]  ;;  %v7397_v27 = vld [vmem:[#allocation16_spill] sm:$0xff] }
 0x604   :  { %2344 = vmatprep.subr.bf16.mxu0 %v7311_v33  ;;  %2385 = vmatprep.subr.bf16.mxu1 %v7312_v28  ;;  %v7398_v33 = vld [vmem:[#allocation17_spill] sm:$0xff]  ;;  %v7399_v28 = vld [vmem:[#allocation18_spill] sm:$0xff] }
 0x607   :  { %2345 = vmatpush1.bf16.msra.mxu0 %v7313_v23  ;;  %2386 = vmatpush1.bf16.msra.mxu1 %v7314_v37  ;;  %v7400_v23 = vld [vmem:[#allocation19_spill] sm:$0xff]  ;;  %v7401_v37 = vld [vmem:[#allocation20_spill] sm:$0xff] }
 0x608   :  { %2346 = vmatprep.subr.bf16.mxu0 %v7315_v36  ;;  %2387 = vmatprep.subr.bf16.mxu1 %v7316_v34  ;;  %v7402_v36 = vld [vmem:[#allocation21_spill] sm:$0xff]  ;;  %v7403_v34 = vld [vmem:[#allocation22_spill] sm:$0xff] }
 0x60b   :  { %2347 = vmatpush1.bf16.msra.mxu0 %v7317_v19  ;;  %2388 = vmatpush1.bf16.msra.mxu1 %v7318_v29  ;;  %v7404_v19 = vld [vmem:[#allocation23_spill] sm:$0xff]  ;;  %v7405_v29 = vld [vmem:[#allocation24_spill] sm:$0xff] }
 0x60c   :  { %2348 = vmatprep.subr.bf16.mxu0 %v7319_v20  ;;  %2389 = vmatprep.subr.bf16.mxu1 %v7320_v44  ;;  %v7406_v20 = vld [vmem:[#allocation25_spill] sm:$0xff]  ;;  %v7407_v44 = vld [vmem:[#allocation26_spill] sm:$0xff] }
 0x60f   :  { %2349 = vmatpush1.bf16.msra.mxu0 %v7321_v62  ;;  %2390 = vmatpush1.bf16.msra.mxu1 %v7322_v43  ;;  %v7408_v62 = vld [vmem:[#allocation27_spill] sm:$0xff] }
 0x610   :  { %2350 = vmatprep.subr.bf16.mxu0 %v7323_v22  ;;  %2391 = vmatprep.subr.bf16.mxu1 %v7324_v50 }
 0x613   :  { %2351 = vmatpush1.bf16.msra.mxu0 %v7325_v51  ;;  %2392 = vmatpush1.bf16.msra.mxu1 %v7326_v55 }
 0x614   :  { %2352 = vmatprep.subr.bf16.mxu0 %v7327_v56  ;;  %2393 = vmatprep.subr.bf16.mxu1 %v7328_v58  ;;  %v7409_v56 = vld [vmem:[#allocation6_spill] sm:$0xff] }
 0x617   :  { %2353 = vmatpush1.bf16.msra.mxu0 %v7329_v59  ;;  %2394 = vmatpush1.bf16.msra.mxu1 %v7330_v60 }
 0x618   :  { %2354 = vmatprep.subr.bf16.mxu0 %v7331_v63  ;;  %2395 = vmatprep.subr.bf16.mxu1 %v7332_v0 }
 0x61b   :  { %2355 = vmatpush1.bf16.msra.mxu0 %v7333_v7  ;;  %2396 = vmatpush1.bf16.msra.mxu1 %v7334_v2 }
 0x61c   :  { %2356 = vmatprep.subr.bf16.mxu0 %v7335_v3  ;;  %2397 = vmatprep.subr.bf16.mxu1 %v7336_v4  ;;  %v7410_v3 = vld [vmem:[#allocation7_spill] sm:$0xff] }
 0x61f   :  { %2357 = vmatpush1.bf16.msra.mxu0 %v7337_v5  ;;  %2398 = vmatpush1.bf16.msra.mxu1 %v7338_v8  ;;  %v7411_v5 = vld [vmem:[#allocation8_spill] sm:$0xff] }
 0x620   :  { %2358 = vmatprep.subr.bf16.mxu0 %v7339_v10  ;;  %2399 = vmatprep.subr.bf16.mxu1 %v7340_v13 }
 0x623   :  { %2359 = vmatpush1.bf16.msra.mxu0 %v7341_v14  ;;  %2400 = vmatpush1.bf16.msra.mxu1 %v7342_v15 }
 0x624   :  { %2360 = vmatprep.subr.bf16.mxu0 %v7343_v16  ;;  %2401 = vmatprep.subr.bf16.mxu1 %v7344_v52 }
 0x627   :  { %2361 = vmatpush1.bf16.msra.mxu0 %v7345_v53  ;;  %2402 = vmatpush1.bf16.msra.mxu1 %v7394_v24 }
 0x628   :  { %2362 = vmatprep.subr.bf16.mxu0 %v7395_v35  ;;  %2403 = vmatprep.subr.bf16.mxu1 %v7396_v17 }
 0x62b   :  { %2363 = vmatpush1.bf16.msra.mxu0 %v7397_v27  ;;  %2404 = vmatpush1.bf16.msra.mxu1 %v7398_v33 }
 0x62c   :  { %2364 = vmatprep.subr.bf16.mxu0 %v7399_v28  ;;  %2405 = vmatprep.subr.bf16.mxu1 %v7400_v23 }
 0x62f   :  { %2365 = vmatpush1.bf16.msra.mxu0 %v7401_v37  ;;  %2406 = vmatpush1.bf16.msra.mxu1 %v7402_v36  ;;  %v7412_v36 = vld [vmem:[#allocation75_spill] sm:$0xff] }
 0x630   :  { %2366 = vmatprep.subr.bf16.mxu0 %v7403_v34  ;;  %2407 = vmatprep.subr.bf16.mxu1 %v7404_v19  ;;  %v7413_v19 = vld [vmem:[#allocation76_spill] sm:$0xff] }
 0x633   :  { %2367 = vmatpush1.bf16.msra.mxu0 %v7405_v29  ;;  %2408 = vmatpush1.bf16.msra.mxu1 %v7406_v20 }
 0x634   :  { %2448 = vmatprep.subr.bf16.mxu0 %v7407_v44  ;;  %2489 = vmatprep.subr.bf16.mxu1 %v7408_v62 }
 0x6a9   :  { %v2146_v43 = vpop.f32.mrb[52].mxu0  ;;  %v2187_v22 = vpop.f32.mrb[52].mxu1 }
 0x6aa   :  { %v2147_v50 = vadd.f32 %v2146_v43, %v7218_v57  ;;  %v2148_v51 = vpop.f32.mrb[53].mxu0  ;;  %v2189_v55 = vpop.f32.mrb[53].mxu1  ;;  %v2188_v4 = vadd.f32 %v2187_v22, %v7410_v3  ;;  %v7414_v22 = vld [vmem:[#allocation77_spill] sm:$0xff] }
 0x6ab   :  { %v2149_v58 = vadd.f32 %v2148_v51, %v7409_v56  ;;  %v2150_v59 = vpop.f32.mrb[54].mxu0  ;;  %v2191_v60 = vpop.f32.mrb[54].mxu1  ;;  %v2190_v8 = vadd.f32 %v2189_v55, %v7411_v5  ;;  %v7415_v51 = vld [vmem:[#allocation78_spill] sm:$0xff] }
 0x6ac   :  { %v3173_v63 = vmul.f32 -1.442695, %v2147_v50  ;;  %v2151_v0 = vpop.f32.mrb[55].mxu0  ;;  %v2192_v7 = vpop.f32.mrb[55].mxu1  ;;  %v3175_v10 = vmul.f32 -1.442695, %v2188_v4 }
 0x6ad   :  { %v3174_v2 = vmul.f32 -1.442695, %v2149_v58 }
 0x6ae   :  { %3584 = vpow2.f32 %v3173_v63 }
 0x6af   :  { %3586 = vpow2.f32 %v3174_v2 }
 0x6b0   :  { %3588 = vtanh.f32 %v2190_v8 }
 0x6b1   :  { %3590 = vpow2.f32 %v3175_v10 }
 0x6b8   :  { %v3585_v13 = vpop.eup %3584 }
 0x6b9   :  { %v2203_v14 = vadd.f32 1.0, %v3585_v13  ;;  %v3587_v15 = vpop.eup %3586 }
 0x6ba   :  { %v2204_v16 = vadd.f32 1.0, %v3587_v15  ;;  %v3589_v52 = vpop.eup %3588 }
 0x6bb   :  { %3592 = vrcp.f32 %v2203_v14  ;;  %v3591_v53 = vpop.eup %3590  ;;  %v7416_v14 = vmax.f32 %v5622_v9, %v5748_v1 }
 0x6bc   :  { %3594 = vrcp.f32 %v2204_v16  ;;  %v2205_v27 = vadd.f32 1.0, %v3591_v53 }
 0x6be   :  { %3596 = vrcp.f32 %v2205_v27 }
 0x6c5   :  { %v3593_v24 = vpop.eup %3592 }
 0x6c6   :  { %v2214_v35 = vmul.f32 %v3593_v24, %v3589_v52  ;;  %v3595_v17 = vpop.eup %3594 }
 0x6c7   :  { %v2213_v33 = vmul.f32 %v3595_v17, %v5741_v18 }
 0x6c8   :  { %v3597_v7 = vpop.eup %3596 }
 0x6c9   :  { %v2258_v28 = vpop.f32.mrb[56].mxu0  ;;  %v2299_v23 = vpop.f32.mrb[56].mxu1  ;;  %v6077_v37 = vadd.f32 %v2214_v35, %v2213_v33 }
 0x6ca   :  { %v2306_v34 = vadd.f32 %v2258_v28, %v7412_v36  ;;  %v2308_v29 = vadd.f32 %v2299_v23, %v7413_v19  ;;  %v2260_v20 = vpop.f32.mrb[57].mxu0  ;;  %v2301_v43 = vpop.f32.mrb[57].mxu1 }
 0x6cb   :  { %v2307_v50 = vadd.f32 %v2260_v20, %v7414_v22  ;;  %v2309_v55 = vadd.f32 %v2301_v43, %v7415_v51  ;;  %v2262_v58 = vpop.f32.mrb[58].mxu0  ;;  %v2303_v59 = vpop.f32.mrb[58].mxu1  ;;  %3598 = vtanh.f32 %v6077_v37  ;;  %v7419_v20 = vld [vmem:[#allocation30_spill] sm:$0xff]  ;;  %v7420_v43 = vld [vmem:[#allocation67_spill] sm:$0xff]  ;;  %v7421_v22 = vld [vmem:[#allocation68_spill] sm:$0xff] }
 0x6cc   :  { %v3176_v18 = vmul.f32 -1.442695, %v2306_v34  ;;  %v2263_v60 = vpop.f32.mrb[59].mxu0  ;;  %v2304_v63 = vpop.f32.mrb[59].mxu1  ;;  %v3178_v4 = vmul.f32 -1.442695, %v2308_v29 }
 0x6cd   :  { %v3177_v0 = vmul.f32 -1.442695, %v2307_v50  ;;  %v7418_v29 = vld [vmem:[#allocation29_spill] sm:$0xff]  ;;  %v7423_v51 = vld [vmem:[#allocation70_spill] sm:$0xff]  ;;  %v7425_v58 = vld [vmem:[#allocation31_spill] sm:$0xff] }
 0x6ce   :  { %3600 = vpow2.f32 %v3176_v18  ;;  %v7422_v50 = vld [vmem:[#allocation69_spill] sm:$0xff]  ;;  %v7426_v59 = vld [vmem:[#allocation32_spill] sm:$0xff]  ;;  %v7428_v60 = vld [vmem:[#allocation34_spill] sm:$0xff] }
 0x6cf   :  { %3602 = vpow2.f32 %v3177_v0  ;;  %v7427_v18 = vld [vmem:[#allocation33_spill] sm:$0xff]  ;;  %v7429_v63 = vld [vmem:[#allocation35_spill] sm:$0xff]  ;;  %v7430_v0 = vld [vmem:[#allocation36_spill] sm:$0xff] }
 0x6d0   :  { %3604 = vtanh.f32 %v2309_v55  ;;  %v7424_v55 = vld [vmem:[#allocation9_spill] sm:$0xff] }
 0x6d1   :  { %3606 = vpow2.f32 %v3178_v4  ;;  %v7433_v4 = vld [vmem:[#allocation39_spill] sm:$0xff] }
 0x6d5   :  { %v3599_v2 = vpop.eup %3598 }
 0x6d6   :  { %v2217_v8 = vmul.f32 %v3599_v2, %v3597_v7  ;;  %v7431_v7 = vld [vmem:[#allocation37_spill] sm:$0xff]  ;;  %v7432_v2 = vld [vmem:[#allocation38_spill] sm:$0xff] }
 0x6d8   :  { %v3601_v10 = vpop.eup %3600  ;;  %v6087_v15 = vmax.f32 %v7416_v14, %v2217_v8  ;;  %v2335_v16 = vpack.c.bf16 %v2217_v8, %v2217_v8  ;;  %v7434_v8 = vld [vmem:[#allocation40_spill] sm:$0xff]  ;;  %v7437_v14 = vld [vmem:[#allocation43_spill] sm:$0xff] }
 0x6d9   :  { %v2319_v13 = vadd.f32 1.0, %v3601_v10  ;;  %v3603_v52 = vpop.eup %3602  ;;  %v7435_v10 = vld [vmem:[#allocation41_spill] sm:$0xff] }
 0x6da   :  { %v2320_v53 = vadd.f32 1.0, %v3603_v52  ;;  %2368 = vmatprep.mubr.bf16.mxu0 %v2335_v16  ;;  %2409 = vmatprep.mubr.bf16.mxu1 %v2335_v16  ;;  %v3605_v24 = vpop.eup %3604  ;;  %v7438_v16 = vld [vmem:[#allocation44_spill] sm:$0xff]  ;;  %v7439_v52 = vld [vmem:[#allocation45_spill] sm:$0xff] }
 0x6db   :  { %3608 = vrcp.f32 %v2319_v13  ;;  %v3607_v35 = vpop.eup %3606  ;;  %v7436_v13 = vld [vmem:[#allocation42_spill] sm:$0xff] }
 0x6dc   :  { %3610 = vrcp.f32 %v2320_v53  ;;  %v2321_v28 = vadd.f32 1.0, %v3607_v35  ;;  %v6140_v53 = vld [vmem:[%s6627_s6 + $0x64] ss:$16 sps:$4 sm:$0xff]   ;;  %v6152_v35 = vld [vmem:[%s6627_s6 + $0x60] ss:$16 sps:$4 sm:$0xff]  }
 0x6dd   :  { %7440 = vst [vmem:[#allocation61_spill] sm:$0xff] %v6140_v53  ;;  %7442 = vst [vmem:[#allocation46_spill] sm:$0xff] %v6152_v35 }
 0x6de   :  { %3612 = vrcp.f32 %v2321_v28  ;;  %v6176_v28 = vld [vmem:[%s6627_s6 + $0x80] ss:$16 sps:$4 sm:$0xff]  }
 0x6df   :  { %7446 = vst [vmem:[#allocation50_spill] sm:$0xff] %v6176_v28 }
 0x6e5   :  { %v3609_v17 = vpop.eup %3608 }
 0x6e6   :  { %v2330_v27 = vmul.f32 %v3609_v17, %v3605_v24  ;;  %v3611_v33 = vpop.eup %3610  ;;  %v6146_v24 = vld [vmem:[%s6627_s6 + $0x6c] ss:$16 sps:$4 sm:$0xff]   ;;  %v6158_v17 = vld [vmem:[%s6627_s6 + $0x68] ss:$16 sps:$4 sm:$0xff]  }
 0x6e7   :  { %v2329_v23 = vmul.f32 %v3611_v33, %v5755_v42  ;;  %v7417_v42 = vld [vmem:[#allocation28_spill] sm:$0xff]  ;;  %7441 = vst [vmem:[#allocation62_spill] sm:$0xff] %v6146_v24  ;;  %7443 = vst [vmem:[#allocation47_spill] sm:$0xff] %v6158_v17 }
 0x6e8   :  { %v3613_v9 = vpop.eup %3612  ;;  %v6170_v33 = vld [vmem:[%s6627_s6 + $0x8c] ss:$16 sps:$4 sm:$0xff]  }
 0x6e9   :  { %v6090_v36 = vadd.f32 %v2330_v27, %v2329_v23  ;;  %v6164_v27 = vld [vmem:[%s6627_s6 + $0x84] ss:$16 sps:$4 sm:$0xff]   ;;  %7445 = vst [vmem:[#allocation49_spill] sm:$0xff] %v6170_v33  ;;  %v6182_v23 = vld [vmem:[%s6627_s6 + $0x88] ss:$16 sps:$4 sm:$0xff]  }
 0x6ea   :  { %7444 = vst [vmem:[#allocation48_spill] sm:$0xff] %v6164_v27  ;;  %7447 = vst [vmem:[#allocation51_spill] sm:$0xff] %v6182_v23 }
 0x6eb   :  { %3614 = vtanh.f32 %v6090_v36 }
 0x6f5   :  { %v3615_v1 = vpop.eup %3614 }
 0x6f6   :  { %v2333_v34 = vmul.f32 %v3615_v1, %v3613_v9  ;;  %v6188_v9 = vld [vmem:[%s6627_s6 + $0xa4] ss:$16 sps:$4 sm:$0xff]   ;;  %v6194_v1 = vld [vmem:[%s6627_s6 + $0xac] ss:$16 sps:$4 sm:$0xff]  }
 0x6f7   :  { %7448 = vst [vmem:[#allocation52_spill] sm:$0xff] %v6188_v9  ;;  %7449 = vst [vmem:[#allocation53_spill] sm:$0xff] %v6194_v1 }
 0x6f8   :  { %v2334_v19 = vpack.c.bf16 %v2333_v34, %v2333_v34  ;;  %v6200_v34 = vld [vmem:[%s6627_s6 + $0xa0] ss:$16 sps:$4 sm:$0xff]  }
 0x6f9   :  { %7450 = vst [vmem:[#allocation54_spill] sm:$0xff] %v6200_v34 }
 0x6fa   :  { %2369 = vmatmul.mubr.bf16.vlgmr.msra.gmra.mrb[60].mxu0 %v2334_v19  ;;  %2410 = vmatmul.mubr.bf16.vlgmr.msra.gmra.mrb[60].mxu1 %v2334_v19 }
 0x6fb   :  { %2449 = vmatpush1.bf16.msra.mxu0 %v5765_v38  ;;  %2490 = vmatpush1.bf16.msra.mxu1 %v5771_v26 }
 0x6fc   :  { %2450 = vmatprep.subr.bf16.mxu0 %v5777_v11  ;;  %2491 = vmatprep.subr.bf16.mxu1 %v5783_v6 }
 0x6fd   :  { %2480 = vmatprep.mubr.bf16.mxu0 %v7108_v31  ;;  %2521 = vmatprep.mubr.bf16.mxu1 %v7108_v31 }
 0x6ff   :  { %2451 = vmatpush1.bf16.msra.mxu0 %v5791_v45  ;;  %2492 = vmatpush1.bf16.msra.mxu1 %v5797_v49 }
 0x700   :  { %2452 = vmatprep.subr.bf16.mxu0 %v5803_v54  ;;  %2493 = vmatprep.subr.bf16.mxu1 %v5809_v47 }
 0x703   :  { %2453 = vmatpush1.bf16.msra.mxu0 %v5815_v32  ;;  %2494 = vmatpush1.bf16.msra.mxu1 %v5821_v21 }
 0x704   :  { %2454 = vmatprep.subr.bf16.mxu0 %v5827_v46  ;;  %2495 = vmatprep.subr.bf16.mxu1 %v5833_v25 }
 0x707   :  { %2455 = vmatpush1.bf16.msra.mxu0 %v5839_v40  ;;  %2496 = vmatpush1.bf16.msra.mxu1 %v5845_v39 }
 0x708   :  { %2456 = vmatprep.subr.bf16.mxu0 %v7417_v42  ;;  %2497 = vmatprep.subr.bf16.mxu1 %v7418_v29 }
 0x70b   :  { %2457 = vmatpush1.bf16.msra.mxu0 %v7419_v20  ;;  %2498 = vmatpush1.bf16.msra.mxu1 %v7420_v43 }
 0x70c   :  { %2458 = vmatprep.subr.bf16.mxu0 %v7421_v22  ;;  %2499 = vmatprep.subr.bf16.mxu1 %v7422_v50 }
 0x70f   :  { %2459 = vmatpush1.bf16.msra.mxu0 %v7423_v51  ;;  %2500 = vmatpush1.bf16.msra.mxu1 %v7424_v55 }
 0x710   :  { %2460 = vmatprep.subr.bf16.mxu0 %v7425_v58  ;;  %2501 = vmatprep.subr.bf16.mxu1 %v7426_v59 }
 0x713   :  { %2461 = vmatpush1.bf16.msra.mxu0 %v7427_v18  ;;  %2502 = vmatpush1.bf16.msra.mxu1 %v7428_v60 }
 0x714   :  { %2462 = vmatprep.subr.bf16.mxu0 %v7429_v63  ;;  %2503 = vmatprep.subr.bf16.mxu1 %v7430_v0 }
 0x717   :  { %2463 = vmatpush1.bf16.msra.mxu0 %v5935_v41  ;;  %2504 = vmatpush1.bf16.msra.mxu1 %v7431_v7 }
 0x718   :  { %2560 = vmatprep.subr.bf16.mxu0 %v7432_v2  ;;  %2601 = vmatprep.subr.bf16.mxu1 %v7433_v4 }
 0x71a   :  { %2481 = vmatmul.mubr.bf16.vlgmr.msra.gmra.mrb[64].mxu0 %v2334_v19  ;;  %2522 = vmatmul.mubr.bf16.vlgmr.msra.gmra.mrb[64].mxu1 %v2334_v19  ;;  %v6206_v19 = vld [vmem:[%s6627_s6 + $0xa8] ss:$16 sps:$4 sm:$0xff]  }
 0x71b   :  { %2561 = vmatpush1.bf16.msra.mxu0 %v7434_v8  ;;  %2602 = vmatpush1.bf16.msra.mxu1 %v7435_v10  ;;  %7451 = vst [vmem:[#allocation55_spill] sm:$0xff] %v6206_v19 }
 0x71c   :  { %2562 = vmatprep.subr.bf16.mxu0 %v7436_v13  ;;  %2603 = vmatprep.subr.bf16.mxu1 %v7437_v14 }
 0x71f   :  { %2563 = vmatpush1.bf16.msra.mxu0 %v7438_v16  ;;  %2604 = vmatpush1.bf16.msra.mxu1 %v7439_v52 }
 0x720   :  { %2564 = vmatprep.subr.bf16.mxu0 %v5997_v61  ;;  %2605 = vmatprep.subr.bf16.mxu1 %v6003_v48 }
 0x723   :  { %2565 = vmatpush1.bf16.msra.mxu0 %v6009_v30  ;;  %2606 = vmatpush1.bf16.msra.mxu1 %v6015_v12 }
 0x724   :  { %2566 = vmatprep.subr.bf16.mxu0 %v6140_v53  ;;  %2607 = vmatprep.subr.bf16.mxu1 %v6146_v24 }
 0x727   :  { %2567 = vmatpush1.bf16.msra.mxu0 %v6152_v35  ;;  %2608 = vmatpush1.bf16.msra.mxu1 %v6158_v17 }
 0x728   :  { %2568 = vmatprep.subr.bf16.mxu0 %v6164_v27  ;;  %2609 = vmatprep.subr.bf16.mxu1 %v6170_v33 }
 0x72b   :  { %2569 = vmatpush1.bf16.msra.mxu0 %v6176_v28  ;;  %2610 = vmatpush1.bf16.msra.mxu1 %v6182_v23 }
 0x72c   :  { %2570 = vmatprep.subr.bf16.mxu0 %v6188_v9  ;;  %2611 = vmatprep.subr.bf16.mxu1 %v6194_v1  ;;  %v6212_v9 = vld [vmem:[%s6627_s6 + $0xc4] ss:$16 sps:$4 sm:$0xff]   ;;  %v6218_v1 = vld [vmem:[%s6627_s6 + $0xcc] ss:$16 sps:$4 sm:$0xff]  }
 0x72d   :  { %7452 = vst [vmem:[#allocation56_spill] sm:$0xff] %v6212_v9  ;;  %7453 = vst [vmem:[#allocation57_spill] sm:$0xff] %v6218_v1 }
 0x72f   :  { %2571 = vmatpush1.bf16.msra.mxu0 %v6200_v34  ;;  %2612 = vmatpush1.bf16.msra.mxu1 %v6206_v19  ;;  %v6224_v34 = vld [vmem:[%s6627_s6 + $0xc0] ss:$16 sps:$4 sm:$0xff]   ;;  %v6230_v19 = vld [vmem:[%s6627_s6 + $0xc8] ss:$16 sps:$4 sm:$0xff]  }
 0x730   :  { %2572 = vmatprep.subr.bf16.mxu0 %v6212_v9  ;;  %2613 = vmatprep.subr.bf16.mxu1 %v6218_v1  ;;  %7454 = vst [vmem:[#allocation3_spill] sm:$0xff] %v6224_v34  ;;  %7455 = vst [vmem:[#allocation4_spill] sm:$0xff] %v6230_v19  ;;  %v6236_v9 = vld [vmem:[%s6627_s6 + $0xe4] ss:$16 sps:$4 sm:$0xff]   ;;  %v6242_v1 = vld [vmem:[%s6627_s6 + $0xec] ss:$16 sps:$4 sm:$0xff]  }
 0x731   :  { %7456 = vst [vmem:[#allocation5_spill] sm:$0xff] %v6236_v9  ;;  %7457 = vst [vmem:[#allocation63_spill] sm:$0xff] %v6242_v1 }
 0x733   :  { %2573 = vmatpush1.bf16.msra.mxu0 %v6224_v34  ;;  %2614 = vmatpush1.bf16.msra.mxu1 %v6230_v19  ;;  %v6248_v34 = vld [vmem:[%s6627_s6 + $0xe0] ss:$16 sps:$4 sm:$0xff]   ;;  %v6254_v19 = vld [vmem:[%s6627_s6 + $0xe8] ss:$16 sps:$4 sm:$0xff]  }
 0x734   :  { %2574 = vmatprep.subr.bf16.mxu0 %v6236_v9  ;;  %2615 = vmatprep.subr.bf16.mxu1 %v6242_v1  ;;  %7458 = vst [vmem:[#allocation64_spill] sm:$0xff] %v6248_v34  ;;  %7459 = vst [vmem:[#allocation65_spill] sm:$0xff] %v6254_v19  ;;  %v6260_v9 = vld [vmem:[%s6627_s6 + $0x104] ss:$16 sps:$4 sm:$0xff]   ;;  %v6266_v1 = vld [vmem:[%s6627_s6 + $0x10c] ss:$16 sps:$4 sm:$0xff]  }
 0x735   :  { %7460 = vst [vmem:[#allocation66_spill] sm:$0xff] %v6260_v9  ;;  %7461 = vst [vmem:[#allocation10_spill] sm:$0xff] %v6266_v1 }
 0x737   :  { %2575 = vmatpush1.bf16.msra.mxu0 %v6248_v34  ;;  %2616 = vmatpush1.bf16.msra.mxu1 %v6254_v19  ;;  %v6272_v34 = vld [vmem:[%s6627_s6 + $0x100] ss:$16 sps:$4 sm:$0xff]   ;;  %v6278_v19 = vld [vmem:[%s6627_s6 + $0x108] ss:$16 sps:$4 sm:$0xff]  }
 0x738   :  { %2576 = vmatprep.subr.bf16.mxu0 %v6260_v9  ;;  %2617 = vmatprep.subr.bf16.mxu1 %v6266_v1  ;;  %7462 = vst [vmem:[#allocation11_spill] sm:$0xff] %v6272_v34  ;;  %7463 = vst [vmem:[#allocation12_spill] sm:$0xff] %v6278_v19  ;;  %v6284_v9 = vld [vmem:[%s6627_s6 + $0x124] ss:$16 sps:$4 sm:$0xff]   ;;  %v6290_v1 = vld [vmem:[%s6627_s6 + $0x12c] ss:$16 sps:$4 sm:$0xff]  }
 0x739   :  { %7464 = vst [vmem:[#allocation71_spill] sm:$0xff] %v6284_v9  ;;  %7465 = vst [vmem:[#allocation72_spill] sm:$0xff] %v6290_v1 }
 0x73b   :  { %2577 = vmatpush1.bf16.msra.mxu0 %v6272_v34  ;;  %2618 = vmatpush1.bf16.msra.mxu1 %v6278_v19  ;;  %v6296_v34 = vld [vmem:[%s6627_s6 + $0x120] ss:$16 sps:$4 sm:$0xff]   ;;  %v6302_v19 = vld [vmem:[%s6627_s6 + $0x128] ss:$16 sps:$4 sm:$0xff]  }
 0x73c   :  { %2578 = vmatprep.subr.bf16.mxu0 %v6284_v9  ;;  %2619 = vmatprep.subr.bf16.mxu1 %v6290_v1  ;;  %7466 = vst [vmem:[#allocation73_spill] sm:$0xff] %v6296_v34  ;;  %7467 = vst [vmem:[#allocation74_spill] sm:$0xff] %v6302_v19  ;;  %v6308_v9 = vld [vmem:[%s6627_s6 + $0x144] ss:$16 sps:$4 sm:$0xff]   ;;  %v6314_v1 = vld [vmem:[%s6627_s6 + $0x14c] ss:$16 sps:$4 sm:$0xff]  }
 0x73d   :  { %7468 = vst [vmem:[#allocation13_spill] sm:$0xff] %v6308_v9  ;;  %7469 = vst [vmem:[#allocation14_spill] sm:$0xff] %v6314_v1 }
 0x73f   :  { %2579 = vmatpush1.bf16.msra.mxu0 %v6296_v34  ;;  %2620 = vmatpush1.bf16.msra.mxu1 %v6302_v19  ;;  %v6320_v34 = vld [vmem:[%s6627_s6 + $0x140] ss:$16 sps:$4 sm:$0xff]   ;;  %v6326_v19 = vld [vmem:[%s6627_s6 + $0x148] ss:$16 sps:$4 sm:$0xff]  }
 0x740   :  { %2580 = vmatprep.subr.bf16.mxu0 %v6308_v9  ;;  %2621 = vmatprep.subr.bf16.mxu1 %v6314_v1  ;;  %7470 = vst [vmem:[#allocation15_spill] sm:$0xff] %v6320_v34  ;;  %7471 = vst [vmem:[#allocation16_spill] sm:$0xff] %v6326_v19  ;;  %v6332_v9 = vld [vmem:[%s6627_s6 + $0x164] ss:$16 sps:$4 sm:$0xff]   ;;  %v6338_v1 = vld [vmem:[%s6627_s6 + $0x16c] ss:$16 sps:$4 sm:$0xff]  }
 0x741   :  { %7472 = vst [vmem:[#allocation17_spill] sm:$0xff] %v6332_v9  ;;  %7473 = vst [vmem:[#allocation18_spill] sm:$0xff] %v6338_v1 }
 0x743   :  { %2581 = vmatpush1.bf16.msra.mxu0 %v6320_v34  ;;  %2622 = vmatpush1.bf16.msra.mxu1 %v6326_v19  ;;  %v6344_v34 = vld [vmem:[%s6627_s6 + $0x160] ss:$16 sps:$4 sm:$0xff]   ;;  %v6350_v19 = vld [vmem:[%s6627_s6 + $0x168] ss:$16 sps:$4 sm:$0xff]  }
 0x744   :  { %2582 = vmatprep.subr.bf16.mxu0 %v6332_v9  ;;  %2623 = vmatprep.subr.bf16.mxu1 %v6338_v1  ;;  %7474 = vst [vmem:[#allocation19_spill] sm:$0xff] %v6344_v34  ;;  %7475 = vst [vmem:[#allocation20_spill] sm:$0xff] %v6350_v19  ;;  %v6356_v9 = vld [vmem:[%s6627_s6 + $0x184] ss:$16 sps:$4 sm:$0xff]   ;;  %v6362_v1 = vld [vmem:[%s6627_s6 + $0x18c] ss:$16 sps:$4 sm:$0xff]  }
 0x745   :  { %7476 = vst [vmem:[#allocation21_spill] sm:$0xff] %v6356_v9  ;;  %7477 = vst [vmem:[#allocation22_spill] sm:$0xff] %v6362_v1 }
 0x747   :  { %2583 = vmatpush1.bf16.msra.mxu0 %v6344_v34  ;;  %2624 = vmatpush1.bf16.msra.mxu1 %v6350_v19  ;;  %v6368_v34 = vld [vmem:[%s6627_s6 + $0x180] ss:$16 sps:$4 sm:$0xff]   ;;  %v6374_v19 = vld [vmem:[%s6627_s6 + $0x188] ss:$16 sps:$4 sm:$0xff]  }
 0x748   :  { %2584 = vmatprep.subr.bf16.mxu0 %v6356_v9  ;;  %2625 = vmatprep.subr.bf16.mxu1 %v6362_v1  ;;  %7478 = vst [vmem:[#allocation23_spill] sm:$0xff] %v6368_v34  ;;  %7479 = vst [vmem:[#allocation24_spill] sm:$0xff] %v6374_v19  ;;  %v6380_v9 = vld [vmem:[%s6627_s6 + $0x1a4] ss:$16 sps:$4 sm:$0xff]   ;;  %v6386_v1 = vld [vmem:[%s6627_s6 + $0x1ac] ss:$16 sps:$4 sm:$0xff]  }
 0x749   :  { %7480 = vst [vmem:[#allocation25_spill] sm:$0xff] %v6380_v9  ;;  %7481 = vst [vmem:[#allocation26_spill] sm:$0xff] %v6386_v1 }
 0x74b   :  { %2585 = vmatpush1.bf16.msra.mxu0 %v6368_v34  ;;  %2626 = vmatpush1.bf16.msra.mxu1 %v6374_v19  ;;  %v6392_v34 = vld [vmem:[%s6627_s6 + $0x1a0] ss:$16 sps:$4 sm:$0xff]   ;;  %v6398_v19 = vld [vmem:[%s6627_s6 + $0x1a8] ss:$16 sps:$4 sm:$0xff]  }
 0x74c   :  { %2586 = vmatprep.subr.bf16.mxu0 %v6380_v9  ;;  %2627 = vmatprep.subr.bf16.mxu1 %v6386_v1  ;;  %7482 = vst [vmem:[#allocation27_spill] sm:$0xff] %v6392_v34  ;;  %7483 = vst [vmem:[#allocation75_spill] sm:$0xff] %v6398_v19  ;;  %v6404_v9 = vld [vmem:[%s6627_s6 + $0x1c4] ss:$16 sps:$4 sm:$0xff]   ;;  %v6410_v1 = vld [vmem:[%s6627_s6 + $0x1cc] ss:$16 sps:$4 sm:$0xff]  }
 0x74d   :  { %7484 = vst [vmem:[#allocation76_spill] sm:$0xff] %v6404_v9  ;;  %7485 = vst [vmem:[#allocation77_spill] sm:$0xff] %v6410_v1 }
 0x74f   :  { %2587 = vmatpush1.bf16.msra.mxu0 %v6392_v34  ;;  %2628 = vmatpush1.bf16.msra.mxu1 %v6398_v19  ;;  %v6416_v34 = vld [vmem:[%s6627_s6 + $0x1c0] ss:$16 sps:$4 sm:$0xff]   ;;  %v6422_v19 = vld [vmem:[%s6627_s6 + $0x1c8] ss:$16 sps:$4 sm:$0xff]  }
 0x750   :  { %2588 = vmatprep.subr.bf16.mxu0 %v6404_v9  ;;  %2629 = vmatprep.subr.bf16.mxu1 %v6410_v1  ;;  %7486 = vst [vmem:[#allocation78_spill] sm:$0xff] %v6416_v34  ;;  %7487 = vst [vmem:[#allocation28_spill] sm:$0xff] %v6422_v19  ;;  %v6428_v9 = vld [vmem:[%s6627_s6 + $0x1e4] ss:$16 sps:$4 sm:$0xff]   ;;  %v6434_v1 = vld [vmem:[%s6627_s6 + $0x1ec] ss:$16 sps:$4 sm:$0xff]  }
 0x751   :  { %7488 = vst [vmem:[#allocation29_spill] sm:$0xff] %v6428_v9  ;;  %7489 = vst [vmem:[#allocation30_spill] sm:$0xff] %v6434_v1 }
 0x753   :  { %2589 = vmatpush1.bf16.msra.mxu0 %v6416_v34  ;;  %2630 = vmatpush1.bf16.msra.mxu1 %v6422_v19  ;;  %v6440_v34 = vld [vmem:[%s6627_s6 + $0x1e0] ss:$16 sps:$4 sm:$0xff]   ;;  %v6446_v19 = vld [vmem:[%s6627_s6 + $0x1e8] ss:$16 sps:$4 sm:$0xff]  }
 0x754   :  { %2590 = vmatprep.subr.bf16.mxu0 %v6428_v9  ;;  %2631 = vmatprep.subr.bf16.mxu1 %v6434_v1  ;;  %7490 = vst [vmem:[#allocation67_spill] sm:$0xff] %v6440_v34  ;;  %7491 = vst [vmem:[#allocation68_spill] sm:$0xff] %v6446_v19 }
 0x757   :  { %2591 = vmatpush1.bf16.msra.mxu0 %v6440_v34  ;;  %2632 = vmatpush1.bf16.msra.mxu1 %v6446_v19 }
 0x758   :  { %2672 = vmatprep.subr.bf16.mxu0 %v7407_v44  ;;  %2713 = vmatprep.subr.bf16.mxu1 %v7408_v62 }
 0x7cd   :  { %v2370_v9 = vpop.f32.mrb[60].mxu0  ;;  %v2411_v1 = vpop.f32.mrb[60].mxu1 }
 0x7ce   :  { %v2371_v23 = vadd.f32 %v2370_v9, %v7218_v57  ;;  %v2372_v28 = vpop.f32.mrb[61].mxu0  ;;  %v2413_v33 = vpop.f32.mrb[61].mxu1  ;;  %v2412_v44 = vadd.f32 %v2411_v1, %v7410_v3  ;;  %v7495_v3 = vld [vmem:[#allocation82_spill] sm:$0xff] }
 0x7cf   :  { %v2373_v27 = vadd.f32 %v2372_v28, %v7409_v56  ;;  %v2374_v34 = vpop.f32.mrb[62].mxu0  ;;  %v2415_v17 = vpop.f32.mrb[62].mxu1  ;;  %v2414_v62 = vadd.f32 %v2413_v33, %v7411_v5 }
 0x7d0   :  { %v3179_v35 = vmul.f32 -1.442695, %v2371_v23  ;;  %v2375_v24 = vpop.f32.mrb[63].mxu0  ;;  %v2416_v53 = vpop.f32.mrb[63].mxu1  ;;  %v3181_v19 = vmul.f32 -1.442695, %v2412_v44 }
 0x7d1   :  { %v3180_v12 = vmul.f32 -1.442695, %v2373_v27  ;;  %v7492_v44 = vld [vmem:[#allocation79_spill] sm:$0xff] }
 0x7d2   :  { %3616 = vpow2.f32 %v3179_v35 }
 0x7d3   :  { %3618 = vpow2.f32 %v3180_v12 }
 0x7d4   :  { %3620 = vtanh.f32 %v2414_v62  ;;  %v7493_v62 = vld [vmem:[#allocation80_spill] sm:$0xff] }
 0x7d5   :  { %3622 = vpow2.f32 %v3181_v19 }
 0x7dc   :  { %v3617_v30 = vpop.eup %3616 }
 0x7dd   :  { %v2427_v48 = vadd.f32 1.0, %v3617_v30  ;;  %v3619_v9 = vpop.eup %3618 }
 0x7de   :  { %v2428_v28 = vadd.f32 1.0, %v3619_v9  ;;  %v3621_v17 = vpop.eup %3620  ;;  %v7494_v9 = vld [vmem:[#allocation81_spill] sm:$0xff] }
 0x7df   :  { %3624 = vrcp.f32 %v2427_v48  ;;  %v3623_v23 = vpop.eup %3622 }
 0x7e0   :  { %3626 = vrcp.f32 %v2428_v28  ;;  %v2429_v35 = vadd.f32 1.0, %v3623_v23 }
 0x7e2   :  { %3628 = vrcp.f32 %v2429_v35 }
 0x7e9   :  { %v3625_v24 = vpop.eup %3624 }
 0x7ea   :  { %v2438_v53 = vmul.f32 %v3625_v24, %v3621_v17  ;;  %v3627_v27 = vpop.eup %3626 }
 0x7eb   :  { %v2437_v12 = vmul.f32 %v3627_v27, %v6077_v37 }
 0x7ed   :  { %v2482_v1 = vpop.f32.mrb[64].mxu0  ;;  %v2523_v34 = vpop.f32.mrb[64].mxu1  ;;  %v6456_v33 = vadd.f32 %v2438_v53, %v2437_v12 }
 0x7ee   :  { %v2530_v30 = vadd.f32 %v2482_v1, %v7492_v44  ;;  %v2532_v5 = vadd.f32 %v2523_v34, %v7493_v62  ;;  %v2484_v19 = vpop.f32.mrb[65].mxu0  ;;  %v2525_v48 = vpop.f32.mrb[65].mxu1 }
 0x7ef   :  { %v2531_v28 = vadd.f32 %v2484_v19, %v7494_v9  ;;  %v2533_v56 = vadd.f32 %v2525_v48, %v7495_v3  ;;  %v2486_v17 = vpop.f32.mrb[66].mxu0  ;;  %v2527_v24 = vpop.f32.mrb[66].mxu1  ;;  %3630 = vtanh.f32 %v6456_v33 }
 0x7f0   :  { %v3182_v37 = vmul.f32 -1.442695, %v2530_v30  ;;  %v2487_v23 = vpop.f32.mrb[67].mxu0  ;;  %v2528_v27 = vpop.f32.mrb[67].mxu1  ;;  %v3184_v34 = vmul.f32 -1.442695, %v2532_v5 }
 0x7f1   :  { %v3183_v53 = vmul.f32 -1.442695, %v2531_v28  ;;  %v3629_v12 = vpop.eup %3628 }
 0x7f2   :  { %3632 = vpow2.f32 %v3182_v37 }
 0x7f3   :  { %3634 = vpow2.f32 %v3183_v53 }
 0x7f4   :  { %3636 = vtanh.f32 %v2533_v56 }
 0x7f5   :  { %3638 = vpow2.f32 %v3184_v34  ;;  %v7537_v34 = vld [vmem:[#allocation23_spill] sm:$0xff] }
 0x7f9   :  { %v3631_v1 = vpop.eup %3630 }
 0x7fa   :  { %v6463_v44 = vmul.f32 %v3631_v1, %v3629_v12 }
 0x7fc   :  { %v3633_v35 = vpop.eup %3632  ;;  %v2442_v3 = vmax.f32 %v6087_v15, %v6463_v44  ;;  %v2559_v19 = vpack.c.bf16 %v6463_v44, %v6463_v44 }
 0x7fd   :  { %v2543_v62 = vadd.f32 1.0, %v3633_v35  ;;  %v3635_v30 = vpop.eup %3634  ;;  %v7538_v35 = vld [vmem:[#allocation24_spill] sm:$0xff] }
 0x7fe   :  { %v2544_v48 = vadd.f32 1.0, %v3635_v30  ;;  %2592 = vmatprep.mubr.bf16.mxu0 %v2559_v19  ;;  %2633 = vmatprep.mubr.bf16.mxu1 %v2559_v19  ;;  %v3637_v9 = vpop.eup %3636  ;;  %v7540_v19 = vld [vmem:[#allocation26_spill] sm:$0xff]  ;;  %v7541_v30 = vld [vmem:[#allocation27_spill] sm:$0xff] }
 0x7ff   :  { %3640 = vrcp.f32 %v2543_v62  ;;  %v3639_v5 = vpop.eup %3638  ;;  %v7539_v62 = vld [vmem:[#allocation25_spill] sm:$0xff] }
 0x800   :  { %3642 = vrcp.f32 %v2544_v48  ;;  %v2545_v37 = vadd.f32 1.0, %v3639_v5  ;;  %v7542_v48 = vld [vmem:[#allocation75_spill] sm:$0xff]  ;;  %v7544_v5 = vld [vmem:[#allocation77_spill] sm:$0xff] }
 0x802   :  { %3644 = vrcp.f32 %v2545_v37  ;;  %v7548_v37 = vld [vmem:[#allocation30_spill] sm:$0xff] }
 0x809   :  { %v3641_v28 = vpop.eup %3640 }
 0x80a   :  { %v2554_v17 = vmul.f32 %v3641_v28, %v3637_v9  ;;  %v3643_v24 = vpop.eup %3642  ;;  %v7543_v9 = vld [vmem:[#allocation76_spill] sm:$0xff]  ;;  %v7545_v28 = vld [vmem:[#allocation78_spill] sm:$0xff] }
 0x80b   :  { %v2553_v56 = vmul.f32 %v3643_v24, %v6090_v36  ;;  %v7513_v36 = vld [vmem:[#allocation3_spill] sm:$0xff]  ;;  %v7547_v24 = vld [vmem:[#allocation29_spill] sm:$0xff] }
 0x80c   :  { %v3645_v27 = vpop.eup %3644 }
 0x80d   :  { %v6470_v23 = vadd.f32 %v2554_v17, %v2553_v56  ;;  %v7546_v17 = vld [vmem:[#allocation28_spill] sm:$0xff]  ;;  %v7549_v56 = vld [vmem:[#allocation67_spill] sm:$0xff] }
 0x80f   :  { %3646 = vtanh.f32 %v6470_v23 }
 0x819   :  { %v3647_v53 = vpop.eup %3646 }
 0x81a   :  { %v2557_v12 = vmul.f32 %v3647_v53, %v3645_v27  ;;  %v7550_v27 = vld [vmem:[#allocation68_spill] sm:$0xff] }
 0x81c   :  { %v2558_v1 = vpack.c.bf16 %v2557_v12, %v2557_v12 }
 0x81e   :  { %2593 = vmatmul.mubr.bf16.vlgmr.msra.gmra.mrb[68].mxu0 %v2558_v1  ;;  %2634 = vmatmul.mubr.bf16.vlgmr.msra.gmra.mrb[68].mxu1 %v2558_v1 }
 0x81f   :  { %2673 = vmatpush1.bf16.msra.mxu0 %v5765_v38  ;;  %2714 = vmatpush1.bf16.msra.mxu1 %v5771_v26  ;;  %v7497_v38 = vld [vmem:[#allocation59_spill] sm:$0xff]  ;;  %v7498_v26 = vld [vmem:[#allocation60_spill] sm:$0xff] }
 0x820   :  { %2674 = vmatprep.subr.bf16.mxu0 %v5777_v11  ;;  %2715 = vmatprep.subr.bf16.mxu1 %v5783_v6  ;;  %v7499_v11 = vld [vmem:[#allocation61_spill] sm:$0xff]  ;;  %v7500_v6 = vld [vmem:[#allocation62_spill] sm:$0xff] }
 0x821   :  { %2704 = vmatprep.mubr.bf16.mxu0 %v7108_v31  ;;  %2745 = vmatprep.mubr.bf16.mxu1 %v7108_v31  ;;  %v7496_v31 = vld [vmem:[#allocation58_spill] sm:$0xff] }
 0x823   :  { %2675 = vmatpush1.bf16.msra.mxu0 %v5791_v45  ;;  %2716 = vmatpush1.bf16.msra.mxu1 %v5797_v49  ;;  %v7501_v45 = vld [vmem:[#allocation46_spill] sm:$0xff]  ;;  %v7502_v49 = vld [vmem:[#allocation47_spill] sm:$0xff] }
 0x824   :  { %2676 = vmatprep.subr.bf16.mxu0 %v5803_v54  ;;  %2717 = vmatprep.subr.bf16.mxu1 %v5809_v47  ;;  %v7503_v54 = vld [vmem:[#allocation48_spill] sm:$0xff]  ;;  %v7504_v47 = vld [vmem:[#allocation49_spill] sm:$0xff] }
 0x827   :  { %2677 = vmatpush1.bf16.msra.mxu0 %v5815_v32  ;;  %2718 = vmatpush1.bf16.msra.mxu1 %v5821_v21  ;;  %v7505_v32 = vld [vmem:[#allocation50_spill] sm:$0xff]  ;;  %v7506_v21 = vld [vmem:[#allocation51_spill] sm:$0xff] }
 0x828   :  { %2678 = vmatprep.subr.bf16.mxu0 %v5827_v46  ;;  %2719 = vmatprep.subr.bf16.mxu1 %v5833_v25  ;;  %v7507_v46 = vld [vmem:[#allocation52_spill] sm:$0xff]  ;;  %v7508_v25 = vld [vmem:[#allocation53_spill] sm:$0xff] }
 0x82b   :  { %2679 = vmatpush1.bf16.msra.mxu0 %v5839_v40  ;;  %2720 = vmatpush1.bf16.msra.mxu1 %v5845_v39  ;;  %v7509_v40 = vld [vmem:[#allocation54_spill] sm:$0xff]  ;;  %v7510_v39 = vld [vmem:[#allocation55_spill] sm:$0xff] }
 0x82c   :  { %2680 = vmatprep.subr.bf16.mxu0 %v7417_v42  ;;  %2721 = vmatprep.subr.bf16.mxu1 %v7418_v29  ;;  %v7514_v42 = vld [vmem:[#allocation4_spill] sm:$0xff]  ;;  %v7515_v29 = vld [vmem:[#allocation5_spill] sm:$0xff] }
 0x82f   :  { %2681 = vmatpush1.bf16.msra.mxu0 %v7419_v20  ;;  %2722 = vmatpush1.bf16.msra.mxu1 %v7420_v43  ;;  %v7516_v20 = vld [vmem:[#allocation63_spill] sm:$0xff]  ;;  %v7517_v43 = vld [vmem:[#allocation64_spill] sm:$0xff] }
 0x830   :  { %2682 = vmatprep.subr.bf16.mxu0 %v7421_v22  ;;  %2723 = vmatprep.subr.bf16.mxu1 %v7422_v50  ;;  %v7518_v22 = vld [vmem:[#allocation65_spill] sm:$0xff]  ;;  %v7519_v50 = vld [vmem:[#allocation66_spill] sm:$0xff] }
 0x833   :  { %2683 = vmatpush1.bf16.msra.mxu0 %v7423_v51  ;;  %2724 = vmatpush1.bf16.msra.mxu1 %v7424_v55  ;;  %v7520_v51 = vld [vmem:[#allocation10_spill] sm:$0xff]  ;;  %v7521_v55 = vld [vmem:[#allocation11_spill] sm:$0xff] }
 0x834   :  { %2684 = vmatprep.subr.bf16.mxu0 %v7425_v58  ;;  %2725 = vmatprep.subr.bf16.mxu1 %v7426_v59  ;;  %v7522_v58 = vld [vmem:[#allocation12_spill] sm:$0xff]  ;;  %v7523_v59 = vld [vmem:[#allocation71_spill] sm:$0xff] }
 0x837   :  { %2685 = vmatpush1.bf16.msra.mxu0 %v7427_v18  ;;  %2726 = vmatpush1.bf16.msra.mxu1 %v7428_v60  ;;  %v7524_v18 = vld [vmem:[#allocation72_spill] sm:$0xff]  ;;  %v7525_v60 = vld [vmem:[#allocation73_spill] sm:$0xff] }
 0x838   :  { %2686 = vmatprep.subr.bf16.mxu0 %v7429_v63  ;;  %2727 = vmatprep.subr.bf16.mxu1 %v7430_v0  ;;  %v7526_v63 = vld [vmem:[#allocation74_spill] sm:$0xff]  ;;  %v7527_v0 = vld [vmem:[#allocation13_spill] sm:$0xff] }
 0x83b   :  { %2687 = vmatpush1.bf16.msra.mxu0 %v5935_v41  ;;  %2728 = vmatpush1.bf16.msra.mxu1 %v7431_v7  ;;  %v7512_v41 = vld [vmem:[#allocation57_spill] sm:$0xff]  ;;  %v7528_v7 = vld [vmem:[#allocation14_spill] sm:$0xff] }
 0x83c   :  { %2784 = vmatprep.subr.bf16.mxu0 %v7432_v2  ;;  %2825 = vmatprep.subr.bf16.mxu1 %v7433_v4  ;;  %v7529_v2 = vld [vmem:[#allocation15_spill] sm:$0xff]  ;;  %v7530_v4 = vld [vmem:[#allocation16_spill] sm:$0xff] }
 0x83e   :  { %2705 = vmatmul.mubr.bf16.vlgmr.msra.gmra.mrb[72].mxu0 %v2558_v1  ;;  %2746 = vmatmul.mubr.bf16.vlgmr.msra.gmra.mrb[72].mxu1 %v2558_v1 }
 0x83f   :  { %2785 = vmatpush1.bf16.msra.mxu0 %v7434_v8  ;;  %2826 = vmatpush1.bf16.msra.mxu1 %v7435_v10  ;;  %v7531_v8 = vld [vmem:[#allocation17_spill] sm:$0xff]  ;;  %v7532_v10 = vld [vmem:[#allocation18_spill] sm:$0xff] }
 0x840   :  { %2786 = vmatprep.subr.bf16.mxu0 %v7436_v13  ;;  %2827 = vmatprep.subr.bf16.mxu1 %v7437_v14  ;;  %v7533_v13 = vld [vmem:[#allocation19_spill] sm:$0xff]  ;;  %v7534_v14 = vld [vmem:[#allocation20_spill] sm:$0xff] }
 0x843   :  { %2787 = vmatpush1.bf16.msra.mxu0 %v7438_v16  ;;  %2828 = vmatpush1.bf16.msra.mxu1 %v7439_v52  ;;  %v7535_v16 = vld [vmem:[#allocation21_spill] sm:$0xff]  ;;  %v7536_v52 = vld [vmem:[#allocation22_spill] sm:$0xff] }
 0x844   :  { %2788 = vmatprep.subr.bf16.mxu0 %v5997_v61  ;;  %2829 = vmatprep.subr.bf16.mxu1 %v7496_v31  ;;  %v7511_v61 = vld [vmem:[#allocation56_spill] sm:$0xff] }
 0x847   :  { %2789 = vmatpush1.bf16.msra.mxu0 %v7497_v38  ;;  %2830 = vmatpush1.bf16.msra.mxu1 %v7498_v26  ;;  %v7551_v26 = vld [vmem:[#allocation6_spill] sm:$0xff] }
 0x848   :  { %2790 = vmatprep.subr.bf16.mxu0 %v7499_v11  ;;  %2831 = vmatprep.subr.bf16.mxu1 %v7500_v6 }
 0x84b   :  { %2791 = vmatpush1.bf16.msra.mxu0 %v7501_v45  ;;  %2832 = vmatpush1.bf16.msra.mxu1 %v7502_v49 }
 0x84c   :  { %2792 = vmatprep.subr.bf16.mxu0 %v7503_v54  ;;  %2833 = vmatprep.subr.bf16.mxu1 %v7504_v47 }
 0x84f   :  { %2793 = vmatpush1.bf16.msra.mxu0 %v7505_v32  ;;  %2834 = vmatpush1.bf16.msra.mxu1 %v7506_v21  ;;  %v7552_v21 = vld [vmem:[#allocation7_spill] sm:$0xff] }
 0x850   :  { %2794 = vmatprep.subr.bf16.mxu0 %v7507_v46  ;;  %2835 = vmatprep.subr.bf16.mxu1 %v7508_v25  ;;  %v7553_v25 = vld [vmem:[#allocation8_spill] sm:$0xff] }
 0x853   :  { %2795 = vmatpush1.bf16.msra.mxu0 %v7509_v40  ;;  %2836 = vmatpush1.bf16.msra.mxu1 %v7510_v39 }
 0x854   :  { %2796 = vmatprep.subr.bf16.mxu0 %v7511_v61  ;;  %2837 = vmatprep.subr.bf16.mxu1 %v7512_v41 }
 0x857   :  { %2797 = vmatpush1.bf16.msra.mxu0 %v7513_v36  ;;  %2838 = vmatpush1.bf16.msra.mxu1 %v7514_v42 }
 0x858   :  { %2798 = vmatprep.subr.bf16.mxu0 %v7515_v29  ;;  %2839 = vmatprep.subr.bf16.mxu1 %v7516_v20 }
 0x85b   :  { %2799 = vmatpush1.bf16.msra.mxu0 %v7517_v43  ;;  %2840 = vmatpush1.bf16.msra.mxu1 %v7518_v22 }
 0x85c   :  { %2800 = vmatprep.subr.bf16.mxu0 %v7519_v50  ;;  %2841 = vmatprep.subr.bf16.mxu1 %v7520_v51 }
 0x85f   :  { %2801 = vmatpush1.bf16.msra.mxu0 %v7521_v55  ;;  %2842 = vmatpush1.bf16.msra.mxu1 %v7522_v58 }
 0x860   :  { %2802 = vmatprep.subr.bf16.mxu0 %v7523_v59  ;;  %2843 = vmatprep.subr.bf16.mxu1 %v7524_v18 }
 0x863   :  { %2803 = vmatpush1.bf16.msra.mxu0 %v7525_v60  ;;  %2844 = vmatpush1.bf16.msra.mxu1 %v7526_v63  ;;  %v7554_v60 = vld [vmem:[#allocation83_spill] sm:$0xff] }
 0x864   :  { %2804 = vmatprep.subr.bf16.mxu0 %v7527_v0  ;;  %2845 = vmatprep.subr.bf16.mxu1 %v7528_v7  ;;  %v7555_v0 = vld [vmem:[#allocation84_spill] sm:$0xff] }
 0x867   :  { %2805 = vmatpush1.bf16.msra.mxu0 %v7529_v2  ;;  %2846 = vmatpush1.bf16.msra.mxu1 %v7530_v4 }
 0x868   :  { %2806 = vmatprep.subr.bf16.mxu0 %v7531_v8  ;;  %2847 = vmatprep.subr.bf16.mxu1 %v7532_v10  ;;  %v7556_v8 = vld [vmem:[#allocation85_spill] sm:$0xff] }
 0x86b   :  { %2807 = vmatpush1.bf16.msra.mxu0 %v7533_v13  ;;  %2848 = vmatpush1.bf16.msra.mxu1 %v7534_v14  ;;  %v7557_v13 = vld [vmem:[#allocation86_spill] sm:$0xff] }
 0x86c   :  { %2808 = vmatprep.subr.bf16.mxu0 %v7535_v16  ;;  %2849 = vmatprep.subr.bf16.mxu1 %v7536_v52 }
 0x86f   :  { %2809 = vmatpush1.bf16.msra.mxu0 %v7537_v34  ;;  %2850 = vmatpush1.bf16.msra.mxu1 %v7538_v35 }
 0x870   :  { %2810 = vmatprep.subr.bf16.mxu0 %v7539_v62  ;;  %2851 = vmatprep.subr.bf16.mxu1 %v7540_v19 }
 0x873   :  { %2811 = vmatpush1.bf16.msra.mxu0 %v7541_v30  ;;  %2852 = vmatpush1.bf16.msra.mxu1 %v7542_v48 }
 0x874   :  { %2812 = vmatprep.subr.bf16.mxu0 %v7543_v9  ;;  %2853 = vmatprep.subr.bf16.mxu1 %v7544_v5 }
 0x877   :  { %2813 = vmatpush1.bf16.msra.mxu0 %v7545_v28  ;;  %2854 = vmatpush1.bf16.msra.mxu1 %v7546_v17 }
 0x878   :  { %2814 = vmatprep.subr.bf16.mxu0 %v7547_v24  ;;  %2855 = vmatprep.subr.bf16.mxu1 %v7548_v37 }
 0x87b   :  { %2815 = vmatpush1.bf16.msra.mxu0 %v7549_v56  ;;  %2856 = vmatpush1.bf16.msra.mxu1 %v7550_v27 }
 0x8f1   :  { %v2594_v53 = vpop.f32.mrb[68].mxu0  ;;  %v2635_v12 = vpop.f32.mrb[68].mxu1 }
 0x8f2   :  { %v2595_v1 = vadd.f32 %v2594_v53, %v7218_v57  ;;  %v2596_v31 = vpop.f32.mrb[69].mxu0  ;;  %v2637_v38 = vpop.f32.mrb[69].mxu1  ;;  %v2636_v46 = vadd.f32 %v2635_v12, %v7552_v21 }
 0x8f3   :  { %v2597_v11 = vadd.f32 %v2596_v31, %v7551_v26  ;;  %v2598_v6 = vpop.f32.mrb[70].mxu0  ;;  %v2639_v45 = vpop.f32.mrb[70].mxu1  ;;  %v2638_v40 = vadd.f32 %v2637_v38, %v7553_v25 }
 0x8f4   :  { %v3185_v49 = vmul.f32 -1.442695, %v2595_v1  ;;  %v2599_v54 = vpop.f32.mrb[71].mxu0  ;;  %v2640_v47 = vpop.f32.mrb[71].mxu1  ;;  %v3187_v39 = vmul.f32 -1.442695, %v2636_v46 }
 0x8f5   :  { %v3186_v32 = vmul.f32 -1.442695, %v2597_v11  ;;  %v3893_v54 = vmov 0.0   ;;  %v3434_v47 = vld [vmem:[%s6633_s10 + $0x10] sm:$0xff]   ;;  %v3436_v46 = vld [vmem:[%s6633_s10 + $0x20] sm:$0xff]  }
 0x8f6   :  { %3648 = vpow2.f32 %v3185_v49  ;;  %v3432_v49 = vld [vmem:[%s6633_s10] sm:$0xff]   ;;  %3213 = vmatprep.subr.bf16.mxu0 %v3893_v54 }
 0x8f7   :  { %3650 = vpow2.f32 %v3186_v32  ;;  %v3435_v32 = vld [vmem:[%s6633_s10 + $0x18] sm:$0xff]  }
 0x8f8   :  { %3652 = vtanh.f32 %v2638_v40  ;;  %v3437_v40 = vld [vmem:[%s6633_s10 + $0x28] sm:$0xff]  }
 0x8f9   :  { %3654 = vpow2.f32 %v3187_v39  ;;  %v3438_v39 = vld [vmem:[%s6633_s10 + $0x30] sm:$0xff]  }
 0x900   :  { %v3649_v61 = vpop.eup %3648 }
 0x901   :  { %v2651_v41 = vadd.f32 1.0, %v3649_v61  ;;  %v3651_v36 = vpop.eup %3650  ;;  %v3439_v61 = vld [vmem:[%s6633_s10 + $0x38] sm:$0xff]  }
 0x902   :  { %v2652_v42 = vadd.f32 1.0, %v3651_v36  ;;  %v3653_v29 = vpop.eup %3652 }
 0x903   :  { %3656 = vrcp.f32 %v2651_v41  ;;  %v3655_v20 = vpop.eup %3654 }
 0x904   :  { %3658 = vrcp.f32 %v2652_v42  ;;  %v2653_v51 = vadd.f32 1.0, %v3655_v20 }
 0x906   :  { %3660 = vrcp.f32 %v2653_v51 }
 0x90d   :  { %v3657_v43 = vpop.eup %3656 }
 0x90e   :  { %v2662_v22 = vmul.f32 %v3657_v43, %v3653_v29  ;;  %v3659_v50 = vpop.eup %3658 }
 0x90f   :  { %v2661_v55 = vmul.f32 %v3659_v50, %v6456_v33 }
 0x910   :  { %v3661_v19 = vpop.eup %3660 }
 0x911   :  { %v2706_v58 = vpop.f32.mrb[72].mxu0  ;;  %v2747_v59 = vpop.f32.mrb[72].mxu1  ;;  %v6574_v18 = vadd.f32 %v2662_v22, %v2661_v55 }
 0x912   :  { %v2754_v63 = vadd.f32 %v2706_v58, %v7554_v60  ;;  %v2756_v7 = vadd.f32 %v2747_v59, %v7555_v0  ;;  %v2708_v2 = vpop.f32.mrb[73].mxu0  ;;  %v2749_v4 = vpop.f32.mrb[73].mxu1 }
 0x913   :  { %v2755_v10 = vadd.f32 %v2708_v2, %v7556_v8  ;;  %v2757_v14 = vadd.f32 %v2749_v4, %v7557_v13  ;;  %v2710_v16 = vpop.f32.mrb[74].mxu0  ;;  %v2751_v52 = vpop.f32.mrb[74].mxu1  ;;  %3662 = vtanh.f32 %v6574_v18 }
 0x914   :  { %v3188_v33 = vmul.f32 -1.442695, %v2754_v63  ;;  %v2711_v34 = vpop.f32.mrb[75].mxu0  ;;  %v2752_v35 = vpop.f32.mrb[75].mxu1  ;;  %v3190_v48 = vmul.f32 -1.442695, %v2756_v7 }
 0x915   :  { %v3189_v62 = vmul.f32 -1.442695, %v2755_v10 }
 0x916   :  { %3664 = vpow2.f32 %v3188_v33 }
 0x917   :  { %3666 = vpow2.f32 %v3189_v62 }
 0x918   :  { %3668 = vtanh.f32 %v2757_v14 }
 0x919   :  { %3670 = vpow2.f32 %v3190_v48 }
 0x91d   :  { %v3663_v30 = vpop.eup %3662 }
 0x91e   :  { %v2665_v9 = vmul.f32 %v3663_v30, %v3661_v19  ;;  %v3194_v19 = vld [vmem:[%s6634_s11] ss:$0 sm:$0xff] }
 0x920   :  { %v3665_v5 = vpop.eup %3664  ;;  %v6584_v17 = vmax.f32 %v2442_v3, %v2665_v9  ;;  %v2783_v24 = vpack.c.bf16 %v2665_v9, %v2665_v9 }
 0x921   :  { %v2767_v28 = vadd.f32 1.0, %v3665_v5  ;;  %v3667_v37 = vpop.eup %3666 }
 0x922   :  { %v2768_v56 = vadd.f32 1.0, %v3667_v37  ;;  %2816 = vmatprep.mubr.bf16.mxu0 %v2783_v24  ;;  %2857 = vmatprep.mubr.bf16.mxu1 %v2783_v24  ;;  %v3669_v27 = vpop.eup %3668 }
 0x923   :  { %3672 = vrcp.f32 %v2767_v28  ;;  %v3671_v53 = vpop.eup %3670 }
 0x924   :  { %3674 = vrcp.f32 %v2768_v56  ;;  %v2769_v38 = vadd.f32 1.0, %v3671_v53 }
 0x926   :  { %3676 = vrcp.f32 %v2769_v38 }
 0x92d   :  { %v3673_v12 = vpop.eup %3672 }
 0x92e   :  { %v2778_v1 = vmul.f32 %v3673_v12, %v3669_v27  ;;  %v3675_v31 = vpop.eup %3674 }
 0x92f   :  { %v2777_v11 = vmul.f32 %v3675_v31, %v6470_v23  ;;  %v3433_v23 = vld [vmem:[%s6633_s10 + $0x8] sm:$0xff]  }
 0x930   :  { %v3677_v15 = vpop.eup %3676 }
 0x931   :  { %v2779_v6 = vadd.f32 %v2778_v1, %v2777_v11 }
 0x933   :  { %3678 = vtanh.f32 %v2779_v6 }
 0x93d   :  { %v3679_v44 = vpop.eup %3678 }
 0x93e   :  { %v2781_v3 = vmul.f32 %v3679_v44, %v3677_v15 }
 0x940   :  { %v2782_v45 = vpack.c.bf16 %v2781_v3, %v2781_v3 }
 0x942   :  { %2817 = vmatmul.mubr.bf16.vlgmr.msra.gmra.mrb[76].mxu0 %v2782_v45  ;;  %2858 = vmatmul.mubr.bf16.vlgmr.msra.gmra.mrb[76].mxu1 %v2782_v45 }
 0x943   :  { %3214 = vmatpush3.bf16.msra.mxu0 %v3432_v49  ;;  %3229 = vmatprep.mubr.msk.bf16.mxu0 %vm3894_vm0, %v3893_v54 }
 0x944   :  { %3215 = vmatprep.subr.bf16.mxu0 %v3893_v54 }
 0x947   :  { %3216 = vmatpush3.bf16.msra.mxu0 %v3433_v23 }
 0x948   :  { %3217 = vmatprep.subr.bf16.mxu0 %v3893_v54 }
 0x94b   :  { %3218 = vmatpush3.bf16.msra.mxu0 %v3434_v47 }
 0x94c   :  { %3219 = vmatprep.subr.bf16.mxu0 %v3893_v54 }
 0x94f   :  { %3220 = vmatpush3.bf16.msra.mxu0 %v3435_v32 }
 0x950   :  { %3221 = vmatprep.subr.bf16.mxu0 %v3893_v54 }
 0x953   :  { %3222 = vmatpush3.bf16.msra.mxu0 %v3436_v46 }
 0x954   :  { %3223 = vmatprep.subr.bf16.mxu0 %v3893_v54 }
 0x957   :  { %3224 = vmatpush3.bf16.msra.mxu0 %v3437_v40 }
 0x958   :  { %3225 = vmatprep.subr.bf16.mxu0 %v3893_v54 }
 0x95b   :  { %3226 = vmatpush3.bf16.msra.mxu0 %v3438_v39 }
 0x95c   :  { %3227 = vmatprep.subr.bf16.mxu0 %v3893_v54 }
 0x95f   :  { %3228 = vmatpush3.bf16.msra.mxu0 %v3439_v61 }
 0xa15   :  { %v2818_v41 = vpop.f32.mrb[76].mxu0  ;;  %v2859_v36 = vpop.f32.mrb[76].mxu1 }
 0xa16   :  { %v2819_v42 = vadd.f32 %v2818_v41, %v7218_v57  ;;  %v2820_v29 = vpop.f32.mrb[77].mxu0  ;;  %v2861_v20 = vpop.f32.mrb[77].mxu1  ;;  %v2860_v60 = vadd.f32 %v2859_v36, %v7552_v21 }
 0xa17   :  { %v2821_v43 = vadd.f32 %v2820_v29, %v7551_v26  ;;  %v2822_v22 = vpop.f32.mrb[78].mxu0  ;;  %v2863_v50 = vpop.f32.mrb[78].mxu1  ;;  %v2862_v63 = vadd.f32 %v2861_v20, %v7553_v25 }
 0xa18   :  { %v3191_v51 = vmul.f32 -1.442695, %v2819_v42  ;;  %v2823_v55 = vpop.f32.mrb[79].mxu0  ;;  %v2864_v58 = vpop.f32.mrb[79].mxu1  ;;  %v3193_v0 = vmul.f32 -1.442695, %v2860_v60 }
 0xa19   :  { %v3192_v59 = vmul.f32 -1.442695, %v2821_v43 }
 0xa1a   :  { %3680 = vpow2.f32 %v3191_v51 }
 0xa1b   :  { %3682 = vpow2.f32 %v3192_v59 }
 0xa1c   :  { %3684 = vtanh.f32 %v2862_v63 }
 0xa1d   :  { %3686 = vpow2.f32 %v3193_v0 }
 0xa24   :  { %v3681_v7 = vpop.eup %3680 }
 0xa25   :  { %v2875_v2 = vadd.f32 1.0, %v3681_v7  ;;  %v3683_v57 = vpop.eup %3682 }
 0xa26   :  { %v2876_v26 = vadd.f32 1.0, %v3683_v57  ;;  %v3685_v4 = vpop.eup %3684 }
 0xa27   :  { %3688 = vrcp.f32 %v2875_v2  ;;  %v3687_v8 = vpop.eup %3686 }
 0xa28   :  { %3690 = vrcp.f32 %v2876_v26  ;;  %v2877_v16 = vadd.f32 1.0, %v3687_v8 }
 0xa2a   :  { %3692 = vrcp.f32 %v2877_v16 }
 0xa31   :  { %v3689_v10 = vpop.eup %3688 }
 0xa32   :  { %v2886_v13 = vmul.f32 %v3689_v10, %v3685_v4  ;;  %v3691_v14 = vpop.eup %3690 }
 0xa33   :  { %v2885_v52 = vmul.f32 %v3691_v14, %v6574_v18 }
 0xa34   :  { %v3693_v25 = vpop.eup %3692 }
 0xa35   :  { %v2887_v21 = vadd.f32 %v2886_v13, %v2885_v52 }
 0xa37   :  { %3694 = vtanh.f32 %v2887_v21 }
 0xa41   :  { %v3695_v33 = vpop.eup %3694 }
 0xa42   :  { %v2889_v34 = vmul.f32 %v3695_v33, %v3693_v25 }
 0xa44   :  { %v2890_v35 = vmax.f32 %v6584_v17, %v2889_v34 }
 0xa46   :  { %v2891_v62 = vpack.c.bf16 %v2890_v35, %v2890_v35 }
 0xa48   :  { %3230 = vmatmul.mubr.bf16.vlgmr.msra.gmra.mrb[80].mxu0 %v2891_v62 }
 0xb1b   :  { %v2997_v30 = vpop.f32.mrb[80].mxu0 }
 0xb1c   :  { %v2998_v48 = vadd.f32 %v3194_v19, %v2997_v30  ;;  %v3231_v9 = vpop.f32.mrb[81].mxu0 }
 0xb1d   :  { %v3000_v5 = vpop.f32.mrb[82].mxu0 }
 0xb1e   :  { %v3203_v28 = vmul.f32 -1.442695, %v2998_v48  ;;  %v3232_v18 = vpop.f32.mrb[83].mxu0 }
 0xb20   :  { %3696 = vpow2.f32 %v3203_v28 }
 0xb2a   :  { %v3697_v24 = vpop.eup %3696 }
 0xb2b   :  { %v3006_v37 = vadd.f32 1.0, %v3697_v24 }
 0xb2d   :  { %3698 = vrcp.f32 %v3006_v37 }
 0xb37   :  { %v3699_v56 = vpop.eup %3698 }
 0xb38   :  { %3009 = vst [vmem:[%s6635_s12] sm:$0xff] %v3699_v56 }

</bundles_post_ra>
